<compile_context>
chip_gen: v5e
topology: v5e:2x2
jax: 0.10.0
libtpu: 0.0.40
codegen_flags: <defaults>
</compile_context>

<pallas_src>
import jax
import jax.numpy as jnp
from jax.experimental import pallas as pl
from jax.experimental.pallas import tpu as pltpu


def _round_up(x, m):
    return (x + m - 1) // m * m


# ------------------------------ fused kernel ---------------------------------
def _make_fused_kernel(num_layers, seq_len, tile_b, hidden):
    H = hidden
    unroll = max(1, min(seq_len, 8))

    def kernel(*refs):
        x_ref = refs[0]
        layer_refs = [tuple(refs[1 + 3 * l: 4 + 3 * l]) for l in range(num_layers)]
        wfc_ref, bfc_ref = refs[1 + 3 * num_layers: 3 + 3 * num_layers]
        out_ref = refs[3 + 3 * num_layers]
        gates_scr, act_scr, h_scr, c_scr = refs[4 + 3 * num_layers:]

        for layer, (wih_ref, whh_ref, b_ref) in enumerate(layer_refs):
            # ---- Phase 1: time-parallel input projection, one big MXU matmul.
            if layer == 0:
                xin = x_ref[...]                       # (T*tb, Dp) bf16
            else:
                xin = act_scr[...]                     # (T*tb, H)  bf16
            gates_scr[...] = (
                jnp.dot(xin, wih_ref[...], preferred_element_type=jnp.float32)
                + b_ref[...]).astype(jnp.bfloat16)     # (T*tb, Gp) bf16

            # ---- Phase 2: sequential recurrence — only h @ W_hh^T per step.
            h_scr[...] = jnp.zeros_like(h_scr)
            c_scr[...] = jnp.zeros_like(c_scr)
            is_last = layer == num_layers - 1

            def step(t, carry):
                row = pl.multiple_of(t * tile_b, tile_b)
                g = (gates_scr[pl.ds(row, tile_b), :].astype(jnp.float32)
                     + jnp.dot(h_scr[...].astype(jnp.bfloat16), whh_ref[...],
                               preferred_element_type=jnp.float32))
                # PyTorch gate order i, f, g, o — compact (unpadded) H-wide slices.
                i_g = jax.nn.sigmoid(g[:, 0 * H:1 * H])
                f_g = jax.nn.sigmoid(g[:, 1 * H:2 * H])
                g_g = jnp.tanh(g[:, 2 * H:3 * H])
                o_g = jax.nn.sigmoid(g[:, 3 * H:4 * H])
                c_new = f_g * c_scr[...] + i_g * g_g
                h_new = o_g * jnp.tanh(c_new)
                c_scr[...] = c_new
                h_scr[...] = h_new
                if not is_last:                        # next layer's input
                    act_scr[pl.ds(row, tile_b), :] = h_new.astype(jnp.bfloat16)
                return carry

            jax.lax.fori_loop(0, seq_len, step, 0, unroll=unroll)

        # FC head on the last timestep's hidden state (lane-dense store).
        out_ref[...] = (
            jnp.dot(h_scr[...].astype(jnp.bfloat16), wfc_ref[...],
                    preferred_element_type=jnp.float32)
            + bfc_ref[...]).astype(out_ref.dtype)

    return kernel


# --------------------------- one-time param prep ------------------------------
def prepare_params(params, input_size, hidden_size, num_classes):
    """Transpose, pad to lane multiples (compact gate layout), sum biases, bf16."""
    H = hidden_size
    Gp = _round_up(4 * H, 128)          # compact gate width (no per-gate padding)
    Dp = _round_up(input_size, 128)
    Cp = _round_up(num_classes, 128)

    def pad_cols(m, width):
        return jnp.pad(m, ((0, 0), (0, width - m.shape[1])))

    flat = []
    for layer, (w_ih, w_hh, b_ih, b_hh) in enumerate(params["lstm"]):
        in_dim = input_size if layer == 0 else H
        in_dim_p = Dp if layer == 0 else H
        wih_t = pad_cols(jnp.asarray(w_ih, jnp.float32).T, Gp)       # (in, Gp)
        wih_t = jnp.pad(wih_t, ((0, in_dim_p - in_dim), (0, 0)))
        whh_t = pad_cols(jnp.asarray(w_hh, jnp.float32).T, Gp)       # (H, Gp)
        bias = pad_cols((b_ih + b_hh).astype(jnp.float32).reshape(1, 4 * H), Gp)
        flat += [wih_t.astype(jnp.bfloat16), whh_t.astype(jnp.bfloat16), bias]

    wfc_t = jnp.pad(jnp.asarray(params["fc_w"], jnp.float32).T,       # (H, Cp)
                    ((0, 0), (0, Cp - num_classes))).astype(jnp.bfloat16)
    bfc = jnp.pad(jnp.asarray(params["fc_b"], jnp.float32).reshape(1, -1),
                  ((0, 0), (0, Cp - num_classes)))
    flat += [wfc_t, bfc]
    dims = dict(num_layers=len(params["lstm"]), H=H, Gp=Gp, Dp=Dp,
                C=num_classes, Cp=Cp)
    return flat, dims


# ------------------------------- forward fn -----------------------------------
def make_forward_fn(flat_params, dims):
    num_layers, H = dims["num_layers"], dims["H"]
    Gp, Dp, Cp, C = dims["Gp"], dims["Dp"], dims["Cp"], dims["C"]

    device_kind = jax.devices()[0].device_kind.lower()
    dual_tc = "v7" in device_kind        # v7x: 2 TensorCores per chip

    def forward(x_btd):
        B, T, D = x_btd.shape
        Bp = _round_up(B, 8)
        # Split the batch into 2 tiles only when it can help (second TC on v7x,
        # or batch big enough that the per-step matmul is throughput-bound).
        n_bt = 2 if (Bp % 16 == 0 and (dual_tc or Bp >= 256)) else 1
        tb = Bp // n_bt

        x = jnp.transpose(x_btd, (1, 0, 2)).astype(jnp.float32)      # (T, B, D)
        x = jnp.pad(x, ((0, 0), (0, Bp - B), (0, Dp - D)))
        # (T, Bp, Dp) -> (n_bt, T*tb, Dp): time-major inside each batch tile.
        x = x.reshape(T, n_bt, tb, Dp).transpose(1, 0, 2, 3)
        x = x.reshape(n_bt, T * tb, Dp).astype(jnp.bfloat16)

        kernel = _make_fused_kernel(num_layers, T, tb, H)

        in_specs = [pl.BlockSpec((None, T * tb, Dp), lambda b: (b, 0, 0))]
        # All prepared params are 2D, fully resident (constant block index).
        in_specs += [pl.BlockSpec(p.shape, lambda b: (0, 0)) for p in flat_params]

        scratch = [
            pltpu.VMEM((T * tb, Gp), jnp.bfloat16),   # gate pre-activations
            pltpu.VMEM((T * tb, H), jnp.bfloat16),    # inter-layer activations
            pltpu.VMEM((tb, H), jnp.float32),         # h state (f32)
            pltpu.VMEM((tb, H), jnp.float32),         # c state (f32)
        ]

        # Rough VMEM footprint -> scoped limit with headroom (lane-padded est.).
        hl = _round_up(H, 128)
        params_bytes = sum(int(p.size) * p.dtype.itemsize for p in flat_params)
        est = (2 * T * tb * Dp * 2 + params_bytes + 2 * tb * Cp * 4
               + T * tb * Gp * 2 + T * tb * hl * 2 + 2 * max(tb, 8) * hl * 4)
        vmem_limit = int(min(max(2 * est + (4 << 20), 16 << 20), 48 << 20))

        out_pad = pl.pallas_call(
            kernel,
            out_shape=jax.ShapeDtypeStruct((Bp, Cp), jnp.float32),
            grid=(n_bt,),
            in_specs=in_specs,
            out_specs=pl.BlockSpec((tb, Cp), lambda b: (b, 0)),
            scratch_shapes=scratch,
            compiler_params=pltpu.CompilerParams(
                dimension_semantics=("parallel",),
                vmem_limit_bytes=vmem_limit),
        )(x, *flat_params)
        return out_pad[:B, :C]

    return jax.jit(forward)


# ---------------------- deterministic parameter init --------------------------
def init_params(key, input_size, hidden_size, num_layers, num_classes):
    k = float(hidden_size) ** -0.5            # PyTorch default uniform bound
    keys = jax.random.split(key, num_layers * 4 + 2)
    idx = 0
    layers = []
    for layer in range(num_layers):
        in_dim = input_size if layer == 0 else hidden_size
        w_ih = jax.random.uniform(keys[idx], (4 * hidden_size, in_dim),
                                  jnp.float32, -k, k); idx += 1
        w_hh = jax.random.uniform(keys[idx], (4 * hidden_size, hidden_size),
                                  jnp.float32, -k, k); idx += 1
        b_ih = jax.random.uniform(keys[idx], (4 * hidden_size,),
                                  jnp.float32, -k, k); idx += 1
        b_hh = jax.random.uniform(keys[idx], (4 * hidden_size,),
                                  jnp.float32, -k, k); idx += 1
        layers.append((w_ih, w_hh, b_ih, b_hh))
    fc_w = jax.random.uniform(keys[idx], (num_classes, hidden_size),
                              jnp.float32, -k, k); idx += 1
    fc_b = jax.random.uniform(keys[idx], (num_classes,), jnp.float32, -k, k)
    return {"lstm": layers, "fc_w": fc_w, "fc_b": fc_b}


# ----------------------------- pure-JAX reference ------------------------------
def reference_forward(x_btd, params):
    x = jnp.transpose(x_btd, (1, 0, 2)).astype(jnp.float32)   # (T, B, D)
    B = x.shape[1]
    for (w_ih, w_hh, b_ih, b_hh) in params["lstm"]:
        H = w_hh.shape[1]

        def step(carry, x_t):
            h, c = carry
            gates = x_t @ w_ih.T + h @ w_hh.T + b_ih + b_hh
            i, f, g, o = jnp.split(gates, 4, axis=-1)
            c = jax.nn.sigmoid(f) * c + jax.nn.sigmoid(i) * jnp.tanh(g)
            h = jax.nn.sigmoid(o) * jnp.tanh(c)
            return (h, c), h

        init = (jnp.zeros((B, H), jnp.float32), jnp.zeros((B, H), jnp.float32))
        _, x = jax.lax.scan(step, init, x)
    return x[-1] @ params["fc_w"].T + params["fc_b"]


if __name__ == "__main__":
    # Small shapes consistent with the module: (batch, seq, input_size).
    batch, seq_len = 8, 8
    input_size, hidden_size, num_layers, num_classes = 16, 32, 2, 2

    key = jax.random.PRNGKey(0)
    k_param, k_x = jax.random.split(key)
    params = init_params(k_param, input_size, hidden_size, num_layers,
                         num_classes)
    x = jax.random.normal(k_x, (batch, seq_len, input_size), jnp.float32)

    flat_params, dims = prepare_params(params, input_size, hidden_size,
                                       num_classes)
    forward = make_forward_fn(flat_params, dims)

    out = jax.block_until_ready(forward(x))
    ref = jax.block_until_ready(reference_forward(x, params))

    assert out.shape == (batch, num_classes)
    # bf16 MXU matmuls / bf16 gate storage (f32 accumulation and f32 cell state)
    # vs pure-f32 reference.
    assert jnp.allclose(out, ref, rtol=5e-2, atol=5e-2), (out, ref)
    print("KERNEL_OK")
</pallas_src>

<mosaic_0001>
module attributes {stable_mosaic.version = 11 : i64} {
  func.func @kernel(%arg0: i32, %arg1: memref<1x64x128xbf16, #tpu.memory_space<vmem>>, %arg2: memref<128x128xbf16, #tpu.memory_space<vmem>>, %arg3: memref<32x128xbf16, #tpu.memory_space<vmem>>, %arg4: memref<1x128xf32, #tpu.memory_space<vmem>>, %arg5: memref<32x128xbf16, #tpu.memory_space<vmem>>, %arg6: memref<32x128xbf16, #tpu.memory_space<vmem>>, %arg7: memref<1x128xf32, #tpu.memory_space<vmem>>, %arg8: memref<32x128xbf16, #tpu.memory_space<vmem>>, %arg9: memref<1x128xf32, #tpu.memory_space<vmem>>, %arg10: memref<8x128xf32, #tpu.memory_space<vmem>>, %arg11: memref<64x128xbf16, #tpu.memory_space<vmem>>, %arg12: memref<64x32xbf16, #tpu.memory_space<vmem>>, %arg13: memref<8x32xf32, #tpu.memory_space<vmem>>, %arg14: memref<8x32xf32, #tpu.memory_space<vmem>>) attributes {dimension_semantics = [#tpu.dimension_semantics<parallel>], iteration_bounds = array<i64: 1>, scalar_prefetch = 0 : i64, scratch_operands = 4 : i64, tpu.core_type = #tpu.core_type<tc>, window_params = [{transform_indices = @transform_0, window_bounds = array<i64: 1, 64, 128>}, {pipeline_mode = #tpu.pipeline_mode<synchronous>, transform_indices = @transform_1, window_bounds = array<i64: 128, 128>}, {pipeline_mode = #tpu.pipeline_mode<synchronous>, transform_indices = @transform_2, window_bounds = array<i64: 32, 128>}, {pipeline_mode = #tpu.pipeline_mode<synchronous>, transform_indices = @transform_3, window_bounds = array<i64: 1, 128>}, {pipeline_mode = #tpu.pipeline_mode<synchronous>, transform_indices = @transform_4, window_bounds = array<i64: 32, 128>}, {pipeline_mode = #tpu.pipeline_mode<synchronous>, transform_indices = @transform_5, window_bounds = array<i64: 32, 128>}, {pipeline_mode = #tpu.pipeline_mode<synchronous>, transform_indices = @transform_6, window_bounds = array<i64: 1, 128>}, {pipeline_mode = #tpu.pipeline_mode<synchronous>, transform_indices = @transform_7, window_bounds = array<i64: 32, 128>}, {pipeline_mode = #tpu.pipeline_mode<synchronous>, transform_indices = @transform_8, window_bounds = array<i64: 1, 128>}, {transform_indices = @transform_9, window_bounds = array<i64: 8, 128>}]} {
    %c0 = arith.constant 0 : index
    %c0_0 = arith.constant 0 : index
    %c0_1 = arith.constant 0 : index
    %0 = vector.load %arg1[%c0, %c0_0, %c0_1] : memref<1x64x128xbf16, #tpu.memory_space<vmem>>, vector<1x64x128xbf16>
    %1 = vector.shape_cast %0 : vector<1x64x128xbf16> to vector<64x128xbf16>
    %c0_2 = arith.constant 0 : index
    %c0_3 = arith.constant 0 : index
    %2 = vector.load %arg2[%c0_2, %c0_3] : memref<128x128xbf16, #tpu.memory_space<vmem>>, vector<128x128xbf16>
    %cst = arith.constant dense<0.000000e+00> : vector<64x128xf32>
    %3 = tpu.matmul %1, %2, %cst {dimension_numbers = #tpu.dot_dimension_numbers<[1], [0], [0], [1], [0, 0, 1, 1], [], []>} : vector<64x128xbf16>, vector<128x128xbf16>, vector<64x128xf32> -> vector<64x128xf32>
    %c0_4 = arith.constant 0 : index
    %c0_5 = arith.constant 0 : index
    %4 = vector.load %arg4[%c0_4, %c0_5] : memref<1x128xf32, #tpu.memory_space<vmem>>, vector<1x128xf32>
    %5 = vector.broadcast %4 : vector<1x128xf32> to vector<64x128xf32>
    %6 = arith.addf %3, %5 : vector<64x128xf32>
    %7 = arith.truncf %6 : vector<64x128xf32> to vector<64x128xbf16>
    %c0_6 = arith.constant 0 : index
    %c0_7 = arith.constant 0 : index
    %8 = vector.load %arg11[%c0_6, %c0_7] : memref<64x128xbf16, #tpu.memory_space<vmem>>, vector<64x128xbf16>
    tpu.vector_store %arg11[%c0_6, %c0_7], %7 {strides = array<i32>} : memref<64x128xbf16, #tpu.memory_space<vmem>>, vector<64x128xbf16>,
    %cst_8 = arith.constant 0.000000e+00 : f32
    %9 = vector.broadcast %cst_8 : f32 to vector<8x32xf32>
    %c0_9 = arith.constant 0 : index
    %c0_10 = arith.constant 0 : index
    %10 = vector.load %arg13[%c0_9, %c0_10] : memref<8x32xf32, #tpu.memory_space<vmem>>, vector<8x32xf32>
    tpu.vector_store %arg13[%c0_9, %c0_10], %9 {strides = array<i32>} : memref<8x32xf32, #tpu.memory_space<vmem>>, vector<8x32xf32>,
    %cst_11 = arith.constant 0.000000e+00 : f32
    %11 = vector.broadcast %cst_11 : f32 to vector<8x32xf32>
    %c0_12 = arith.constant 0 : index
    %c0_13 = arith.constant 0 : index
    %12 = vector.load %arg14[%c0_12, %c0_13] : memref<8x32xf32, #tpu.memory_space<vmem>>, vector<8x32xf32>
    tpu.vector_store %arg14[%c0_12, %c0_13], %11 {strides = array<i32>} : memref<8x32xf32, #tpu.memory_space<vmem>>, vector<8x32xf32>,
    %c0_i32 = arith.constant 0 : i32
    %c8_i32 = arith.constant 8 : i32
    %13 = arith.muli %c0_i32, %c8_i32 : i32
    %14 = tpu.assume_multiple %13, 8 : i32
    %15 = arith.index_cast %14 : i32 to index
    %c0_14 = arith.constant 0 : index
    %16 = vector.load %arg11[%15, %c0_14] : memref<64x128xbf16, #tpu.memory_space<vmem>>, vector<8x128xbf16>
    %17 = arith.extf %16 : vector<8x128xbf16> to vector<8x128xf32>
    %c0_15 = arith.constant 0 : index
    %c0_16 = arith.constant 0 : index
    %18 = vector.load %arg13[%c0_15, %c0_16] : memref<8x32xf32, #tpu.memory_space<vmem>>, vector<8x32xf32>
    %19 = arith.truncf %18 : vector<8x32xf32> to vector<8x32xbf16>
    %c0_17 = arith.constant 0 : index
    %c0_18 = arith.constant 0 : index
    %20 = vector.load %arg3[%c0_17, %c0_18] : memref<32x128xbf16, #tpu.memory_space<vmem>>, vector<32x128xbf16>
    %cst_19 = arith.constant dense<0.000000e+00> : vector<8x128xf32>
    %21 = tpu.matmul %19, %20, %cst_19 {dimension_numbers = #tpu.dot_dimension_numbers<[1], [0], [0], [1], [0, 0, 1, 1], [], []>} : vector<8x32xbf16>, vector<32x128xbf16>, vector<8x128xf32> -> vector<8x128xf32>
    %22 = arith.addf %17, %21 : vector<8x128xf32>
    %23 = vector.extract_strided_slice %22 {offsets = [0, 0], sizes = [8, 32], strides = [1, 1]} : vector<8x128xf32> to vector<8x32xf32>
    %24 = arith.negf %23 : vector<8x32xf32>
    %25 = math.exp %24 : vector<8x32xf32>
    %cst_20 = arith.constant 1.000000e+00 : f32
    %26 = vector.broadcast %cst_20 : f32 to vector<8x32xf32>
    %27 = arith.addf %26, %25 : vector<8x32xf32>
    %28 = arith.divf %26, %27 : vector<8x32xf32>
    %29 = vector.extract_strided_slice %22 {offsets = [0, 32], sizes = [8, 32], strides = [1, 1]} : vector<8x128xf32> to vector<8x32xf32>
    %30 = arith.negf %29 : vector<8x32xf32>
    %31 = math.exp %30 : vector<8x32xf32>
    %cst_21 = arith.constant 1.000000e+00 : f32
    %32 = vector.broadcast %cst_21 : f32 to vector<8x32xf32>
    %33 = arith.addf %32, %31 : vector<8x32xf32>
    %34 = arith.divf %32, %33 : vector<8x32xf32>
    %35 = vector.extract_strided_slice %22 {offsets = [0, 64], sizes = [8, 32], strides = [1, 1]} : vector<8x128xf32> to vector<8x32xf32>
    %36 = math.tanh %35 : vector<8x32xf32>
    %37 = vector.extract_strided_slice %22 {offsets = [0, 96], sizes = [8, 32], strides = [1, 1]} : vector<8x128xf32> to vector<8x32xf32>
    %38 = arith.negf %37 : vector<8x32xf32>
    %39 = math.exp %38 : vector<8x32xf32>
    %cst_22 = arith.constant 1.000000e+00 : f32
    %40 = vector.broadcast %cst_22 : f32 to vector<8x32xf32>
    %41 = arith.addf %40, %39 : vector<8x32xf32>
    %42 = arith.divf %40, %41 : vector<8x32xf32>
    %c0_23 = arith.constant 0 : index
    %c0_24 = arith.constant 0 : index
    %43 = vector.load %arg14[%c0_23, %c0_24] : memref<8x32xf32, #tpu.memory_space<vmem>>, vector<8x32xf32>
    %44 = arith.mulf %34, %43 : vector<8x32xf32>
    %45 = arith.mulf %28, %36 : vector<8x32xf32>
    %46 = arith.addf %44, %45 : vector<8x32xf32>
    %47 = math.tanh %46 : vector<8x32xf32>
    %48 = arith.mulf %42, %47 : vector<8x32xf32>
    %c0_25 = arith.constant 0 : index
    %c0_26 = arith.constant 0 : index
    %49 = vector.load %arg14[%c0_25, %c0_26] : memref<8x32xf32, #tpu.memory_space<vmem>>, vector<8x32xf32>
    tpu.vector_store %arg14[%c0_25, %c0_26], %46 {strides = array<i32>} : memref<8x32xf32, #tpu.memory_space<vmem>>, vector<8x32xf32>,
    %c0_27 = arith.constant 0 : index
    %c0_28 = arith.constant 0 : index
    %50 = vector.load %arg13[%c0_27, %c0_28] : memref<8x32xf32, #tpu.memory_space<vmem>>, vector<8x32xf32>
    tpu.vector_store %arg13[%c0_27, %c0_28], %48 {strides = array<i32>} : memref<8x32xf32, #tpu.memory_space<vmem>>, vector<8x32xf32>,
    %51 = arith.truncf %48 : vector<8x32xf32> to vector<8x32xbf16>
    %52 = arith.index_cast %14 : i32 to index
    %c0_29 = arith.constant 0 : index
    %53 = vector.load %arg12[%52, %c0_29] : memref<64x32xbf16, #tpu.memory_space<vmem>>, vector<8x32xbf16>
    tpu.vector_store %arg12[%52, %c0_29], %51 {strides = array<i32>} : memref<64x32xbf16, #tpu.memory_space<vmem>>, vector<8x32xbf16>,
    %c1_i32 = arith.constant 1 : i32
    %c8_i32_30 = arith.constant 8 : i32
    %54 = arith.muli %c1_i32, %c8_i32_30 : i32
    %55 = tpu.assume_multiple %54, 8 : i32
    %56 = arith.index_cast %55 : i32 to index
    %c0_31 = arith.constant 0 : index
    %57 = vector.load %arg11[%56, %c0_31] : memref<64x128xbf16, #tpu.memory_space<vmem>>, vector<8x128xbf16>
    %58 = arith.extf %57 : vector<8x128xbf16> to vector<8x128xf32>
    %c0_32 = arith.constant 0 : index
    %c0_33 = arith.constant 0 : index
    %59 = vector.load %arg13[%c0_32, %c0_33] : memref<8x32xf32, #tpu.memory_space<vmem>>, vector<8x32xf32>
    %60 = arith.truncf %59 : vector<8x32xf32> to vector<8x32xbf16>
    %c0_34 = arith.constant 0 : index
    %c0_35 = arith.constant 0 : index
    %61 = vector.load %arg3[%c0_34, %c0_35] : memref<32x128xbf16, #tpu.memory_space<vmem>>, vector<32x128xbf16>
    %cst_36 = arith.constant dense<0.000000e+00> : vector<8x128xf32>
    %62 = tpu.matmul %60, %61, %cst_36 {dimension_numbers = #tpu.dot_dimension_numbers<[1], [0], [0], [1], [0, 0, 1, 1], [], []>} : vector<8x32xbf16>, vector<32x128xbf16>, vector<8x128xf32> -> vector<8x128xf32>
    %63 = arith.addf %58, %62 : vector<8x128xf32>
    %64 = vector.extract_strided_slice %63 {offsets = [0, 0], sizes = [8, 32], strides = [1, 1]} : vector<8x128xf32> to vector<8x32xf32>
    %65 = arith.negf %64 : vector<8x32xf32>
    %66 = math.exp %65 : vector<8x32xf32>
    %cst_37 = arith.constant 1.000000e+00 : f32
    %67 = vector.broadcast %cst_37 : f32 to vector<8x32xf32>
    %68 = arith.addf %67, %66 : vector<8x32xf32>
    %69 = arith.divf %67, %68 : vector<8x32xf32>
    %70 = vector.extract_strided_slice %63 {offsets = [0, 32], sizes = [8, 32], strides = [1, 1]} : vector<8x128xf32> to vector<8x32xf32>
    %71 = arith.negf %70 : vector<8x32xf32>
    %72 = math.exp %71 : vector<8x32xf32>
    %cst_38 = arith.constant 1.000000e+00 : f32
    %73 = vector.broadcast %cst_38 : f32 to vector<8x32xf32>
    %74 = arith.addf %73, %72 : vector<8x32xf32>
    %75 = arith.divf %73, %74 : vector<8x32xf32>
    %76 = vector.extract_strided_slice %63 {offsets = [0, 64], sizes = [8, 32], strides = [1, 1]} : vector<8x128xf32> to vector<8x32xf32>
    %77 = math.tanh %76 : vector<8x32xf32>
    %78 = vector.extract_strided_slice %63 {offsets = [0, 96], sizes = [8, 32], strides = [1, 1]} : vector<8x128xf32> to vector<8x32xf32>
    %79 = arith.negf %78 : vector<8x32xf32>
    %80 = math.exp %79 : vector<8x32xf32>
    %cst_39 = arith.constant 1.000000e+00 : f32
    %81 = vector.broadcast %cst_39 : f32 to vector<8x32xf32>
    %82 = arith.addf %81, %80 : vector<8x32xf32>
    %83 = arith.divf %81, %82 : vector<8x32xf32>
    %c0_40 = arith.constant 0 : index
    %c0_41 = arith.constant 0 : index
    %84 = vector.load %arg14[%c0_40, %c0_41] : memref<8x32xf32, #tpu.memory_space<vmem>>, vector<8x32xf32>
    %85 = arith.mulf %75, %84 : vector<8x32xf32>
    %86 = arith.mulf %69, %77 : vector<8x32xf32>
    %87 = arith.addf %85, %86 : vector<8x32xf32>
    %88 = math.tanh %87 : vector<8x32xf32>
    %89 = arith.mulf %83, %88 : vector<8x32xf32>
    %c0_42 = arith.constant 0 : index
    %c0_43 = arith.constant 0 : index
    %90 = vector.load %arg14[%c0_42, %c0_43] : memref<8x32xf32, #tpu.memory_space<vmem>>, vector<8x32xf32>
    tpu.vector_store %arg14[%c0_42, %c0_43], %87 {strides = array<i32>} : memref<8x32xf32, #tpu.memory_space<vmem>>, vector<8x32xf32>,
    %c0_44 = arith.constant 0 : index
    %c0_45 = arith.constant 0 : index
    %91 = vector.load %arg13[%c0_44, %c0_45] : memref<8x32xf32, #tpu.memory_space<vmem>>, vector<8x32xf32>
    tpu.vector_store %arg13[%c0_44, %c0_45], %89 {strides = array<i32>} : memref<8x32xf32, #tpu.memory_space<vmem>>, vector<8x32xf32>,
    %92 = arith.truncf %89 : vector<8x32xf32> to vector<8x32xbf16>
    %93 = arith.index_cast %55 : i32 to index
    %c0_46 = arith.constant 0 : index
    %94 = vector.load %arg12[%93, %c0_46] : memref<64x32xbf16, #tpu.memory_space<vmem>>, vector<8x32xbf16>
    tpu.vector_store %arg12[%93, %c0_46], %92 {strides = array<i32>} : memref<64x32xbf16, #tpu.memory_space<vmem>>, vector<8x32xbf16>,
    %c2_i32 = arith.constant 2 : i32
    %c8_i32_47 = arith.constant 8 : i32
    %95 = arith.muli %c2_i32, %c8_i32_47 : i32
    %96 = tpu.assume_multiple %95, 8 : i32
    %97 = arith.index_cast %96 : i32 to index
    %c0_48 = arith.constant 0 : index
    %98 = vector.load %arg11[%97, %c0_48] : memref<64x128xbf16, #tpu.memory_space<vmem>>, vector<8x128xbf16>
    %99 = arith.extf %98 : vector<8x128xbf16> to vector<8x128xf32>
    %c0_49 = arith.constant 0 : index
    %c0_50 = arith.constant 0 : index
    %100 = vector.load %arg13[%c0_49, %c0_50] : memref<8x32xf32, #tpu.memory_space<vmem>>, vector<8x32xf32>
    %101 = arith.truncf %100 : vector<8x32xf32> to vector<8x32xbf16>
    %c0_51 = arith.constant 0 : index
    %c0_52 = arith.constant 0 : index
    %102 = vector.load %arg3[%c0_51, %c0_52] : memref<32x128xbf16, #tpu.memory_space<vmem>>, vector<32x128xbf16>
    %cst_53 = arith.constant dense<0.000000e+00> : vector<8x128xf32>
    %103 = tpu.matmul %101, %102, %cst_53 {dimension_numbers = #tpu.dot_dimension_numbers<[1], [0], [0], [1], [0, 0, 1, 1], [], []>} : vector<8x32xbf16>, vector<32x128xbf16>, vector<8x128xf32> -> vector<8x128xf32>
    %104 = arith.addf %99, %103 : vector<8x128xf32>
    %105 = vector.extract_strided_slice %104 {offsets = [0, 0], sizes = [8, 32], strides = [1, 1]} : vector<8x128xf32> to vector<8x32xf32>
    %106 = arith.negf %105 : vector<8x32xf32>
    %107 = math.exp %106 : vector<8x32xf32>
    %cst_54 = arith.constant 1.000000e+00 : f32
    %108 = vector.broadcast %cst_54 : f32 to vector<8x32xf32>
    %109 = arith.addf %108, %107 : vector<8x32xf32>
    %110 = arith.divf %108, %109 : vector<8x32xf32>
    %111 = vector.extract_strided_slice %104 {offsets = [0, 32], sizes = [8, 32], strides = [1, 1]} : vector<8x128xf32> to vector<8x32xf32>
    %112 = arith.negf %111 : vector<8x32xf32>
    %113 = math.exp %112 : vector<8x32xf32>
    %cst_55 = arith.constant 1.000000e+00 : f32
    %114 = vector.broadcast %cst_55 : f32 to vector<8x32xf32>
    %115 = arith.addf %114, %113 : vector<8x32xf32>
    %116 = arith.divf %114, %115 : vector<8x32xf32>
    %117 = vector.extract_strided_slice %104 {offsets = [0, 64], sizes = [8, 32], strides = [1, 1]} : vector<8x128xf32> to vector<8x32xf32>
    %118 = math.tanh %117 : vector<8x32xf32>
    %119 = vector.extract_strided_slice %104 {offsets = [0, 96], sizes = [8, 32], strides = [1, 1]} : vector<8x128xf32> to vector<8x32xf32>
    %120 = arith.negf %119 : vector<8x32xf32>
    %121 = math.exp %120 : vector<8x32xf32>
    %cst_56 = arith.constant 1.000000e+00 : f32
    %122 = vector.broadcast %cst_56 : f32 to vector<8x32xf32>
    %123 = arith.addf %122, %121 : vector<8x32xf32>
    %124 = arith.divf %122, %123 : vector<8x32xf32>
    %c0_57 = arith.constant 0 : index
    %c0_58 = arith.constant 0 : index
    %125 = vector.load %arg14[%c0_57, %c0_58] : memref<8x32xf32, #tpu.memory_space<vmem>>, vector<8x32xf32>
    %126 = arith.mulf %116, %125 : vector<8x32xf32>
    %127 = arith.mulf %110, %118 : vector<8x32xf32>
    %128 = arith.addf %126, %127 : vector<8x32xf32>
    %129 = math.tanh %128 : vector<8x32xf32>
    %130 = arith.mulf %124, %129 : vector<8x32xf32>
    %c0_59 = arith.constant 0 : index
    %c0_60 = arith.constant 0 : index
    %131 = vector.load %arg14[%c0_59, %c0_60] : memref<8x32xf32, #tpu.memory_space<vmem>>, vector<8x32xf32>
    tpu.vector_store %arg14[%c0_59, %c0_60], %128 {strides = array<i32>} : memref<8x32xf32, #tpu.memory_space<vmem>>, vector<8x32xf32>,
    %c0_61 = arith.constant 0 : index
    %c0_62 = arith.constant 0 : index
    %132 = vector.load %arg13[%c0_61, %c0_62] : memref<8x32xf32, #tpu.memory_space<vmem>>, vector<8x32xf32>
    tpu.vector_store %arg13[%c0_61, %c0_62], %130 {strides = array<i32>} : memref<8x32xf32, #tpu.memory_space<vmem>>, vector<8x32xf32>,
    %133 = arith.truncf %130 : vector<8x32xf32> to vector<8x32xbf16>
    %134 = arith.index_cast %96 : i32 to index
    %c0_63 = arith.constant 0 : index
    %135 = vector.load %arg12[%134, %c0_63] : memref<64x32xbf16, #tpu.memory_space<vmem>>, vector<8x32xbf16>
    tpu.vector_store %arg12[%134, %c0_63], %133 {strides = array<i32>} : memref<64x32xbf16, #tpu.memory_space<vmem>>, vector<8x32xbf16>,
    %c3_i32 = arith.constant 3 : i32
    %c8_i32_64 = arith.constant 8 : i32
    %136 = arith.muli %c3_i32, %c8_i32_64 : i32
    %137 = tpu.assume_multiple %136, 8 : i32
    %138 = arith.index_cast %137 : i32 to index
    %c0_65 = arith.constant 0 : index
    %139 = vector.load %arg11[%138, %c0_65] : memref<64x128xbf16, #tpu.memory_space<vmem>>, vector<8x128xbf16>
    %140 = arith.extf %139 : vector<8x128xbf16> to vector<8x128xf32>
    %c0_66 = arith.constant 0 : index
    %c0_67 = arith.constant 0 : index
    %141 = vector.load %arg13[%c0_66, %c0_67] : memref<8x32xf32, #tpu.memory_space<vmem>>, vector<8x32xf32>
    %142 = arith.truncf %141 : vector<8x32xf32> to vector<8x32xbf16>
    %c0_68 = arith.constant 0 : index
    %c0_69 = arith.constant 0 : index
    %143 = vector.load %arg3[%c0_68, %c0_69] : memref<32x128xbf16, #tpu.memory_space<vmem>>, vector<32x128xbf16>
    %cst_70 = arith.constant dense<0.000000e+00> : vector<8x128xf32>
    %144 = tpu.matmul %142, %143, %cst_70 {dimension_numbers = #tpu.dot_dimension_numbers<[1], [0], [0], [1], [0, 0, 1, 1], [], []>} : vector<8x32xbf16>, vector<32x128xbf16>, vector<8x128xf32> -> vector<8x128xf32>
    %145 = arith.addf %140, %144 : vector<8x128xf32>
    %146 = vector.extract_strided_slice %145 {offsets = [0, 0], sizes = [8, 32], strides = [1, 1]} : vector<8x128xf32> to vector<8x32xf32>
    %147 = arith.negf %146 : vector<8x32xf32>
    %148 = math.exp %147 : vector<8x32xf32>
    %cst_71 = arith.constant 1.000000e+00 : f32
    %149 = vector.broadcast %cst_71 : f32 to vector<8x32xf32>
    %150 = arith.addf %149, %148 : vector<8x32xf32>
    %151 = arith.divf %149, %150 : vector<8x32xf32>
    %152 = vector.extract_strided_slice %145 {offsets = [0, 32], sizes = [8, 32], strides = [1, 1]} : vector<8x128xf32> to vector<8x32xf32>
    %153 = arith.negf %152 : vector<8x32xf32>
    %154 = math.exp %153 : vector<8x32xf32>
    %cst_72 = arith.constant 1.000000e+00 : f32
    %155 = vector.broadcast %cst_72 : f32 to vector<8x32xf32>
    %156 = arith.addf %155, %154 : vector<8x32xf32>
    %157 = arith.divf %155, %156 : vector<8x32xf32>
    %158 = vector.extract_strided_slice %145 {offsets = [0, 64], sizes = [8, 32], strides = [1, 1]} : vector<8x128xf32> to vector<8x32xf32>
    %159 = math.tanh %158 : vector<8x32xf32>
    %160 = vector.extract_strided_slice %145 {offsets = [0, 96], sizes = [8, 32], strides = [1, 1]} : vector<8x128xf32> to vector<8x32xf32>
    %161 = arith.negf %160 : vector<8x32xf32>
    %162 = math.exp %161 : vector<8x32xf32>
    %cst_73 = arith.constant 1.000000e+00 : f32
    %163 = vector.broadcast %cst_73 : f32 to vector<8x32xf32>
    %164 = arith.addf %163, %162 : vector<8x32xf32>
    %165 = arith.divf %163, %164 : vector<8x32xf32>
    %c0_74 = arith.constant 0 : index
    %c0_75 = arith.constant 0 : index
    %166 = vector.load %arg14[%c0_74, %c0_75] : memref<8x32xf32, #tpu.memory_space<vmem>>, vector<8x32xf32>
    %167 = arith.mulf %157, %166 : vector<8x32xf32>
    %168 = arith.mulf %151, %159 : vector<8x32xf32>
    %169 = arith.addf %167, %168 : vector<8x32xf32>
    %170 = math.tanh %169 : vector<8x32xf32>
    %171 = arith.mulf %165, %170 : vector<8x32xf32>
    %c0_76 = arith.constant 0 : index
    %c0_77 = arith.constant 0 : index
    %172 = vector.load %arg14[%c0_76, %c0_77] : memref<8x32xf32, #tpu.memory_space<vmem>>, vector<8x32xf32>
    tpu.vector_store %arg14[%c0_76, %c0_77], %169 {strides = array<i32>} : memref<8x32xf32, #tpu.memory_space<vmem>>, vector<8x32xf32>,
    %c0_78 = arith.constant 0 : index
    %c0_79 = arith.constant 0 : index
    %173 = vector.load %arg13[%c0_78, %c0_79] : memref<8x32xf32, #tpu.memory_space<vmem>>, vector<8x32xf32>
    tpu.vector_store %arg13[%c0_78, %c0_79], %171 {strides = array<i32>} : memref<8x32xf32, #tpu.memory_space<vmem>>, vector<8x32xf32>,
    %174 = arith.truncf %171 : vector<8x32xf32> to vector<8x32xbf16>
    %175 = arith.index_cast %137 : i32 to index
    %c0_80 = arith.constant 0 : index
    %176 = vector.load %arg12[%175, %c0_80] : memref<64x32xbf16, #tpu.memory_space<vmem>>, vector<8x32xbf16>
    tpu.vector_store %arg12[%175, %c0_80], %174 {strides = array<i32>} : memref<64x32xbf16, #tpu.memory_space<vmem>>, vector<8x32xbf16>,
    %c4_i32 = arith.constant 4 : i32
    %c8_i32_81 = arith.constant 8 : i32
    %177 = arith.muli %c4_i32, %c8_i32_81 : i32
    %178 = tpu.assume_multiple %177, 8 : i32
    %179 = arith.index_cast %178 : i32 to index
    %c0_82 = arith.constant 0 : index
    %180 = vector.load %arg11[%179, %c0_82] : memref<64x128xbf16, #tpu.memory_space<vmem>>, vector<8x128xbf16>
    %181 = arith.extf %180 : vector<8x128xbf16> to vector<8x128xf32>
    %c0_83 = arith.constant 0 : index
    %c0_84 = arith.constant 0 : index
    %182 = vector.load %arg13[%c0_83, %c0_84] : memref<8x32xf32, #tpu.memory_space<vmem>>, vector<8x32xf32>
    %183 = arith.truncf %182 : vector<8x32xf32> to vector<8x32xbf16>
    %c0_85 = arith.constant 0 : index
    %c0_86 = arith.constant 0 : index
    %184 = vector.load %arg3[%c0_85, %c0_86] : memref<32x128xbf16, #tpu.memory_space<vmem>>, vector<32x128xbf16>
    %cst_87 = arith.constant dense<0.000000e+00> : vector<8x128xf32>
    %185 = tpu.matmul %183, %184, %cst_87 {dimension_numbers = #tpu.dot_dimension_numbers<[1], [0], [0], [1], [0, 0, 1, 1], [], []>} : vector<8x32xbf16>, vector<32x128xbf16>, vector<8x128xf32> -> vector<8x128xf32>
    %186 = arith.addf %181, %185 : vector<8x128xf32>
    %187 = vector.extract_strided_slice %186 {offsets = [0, 0], sizes = [8, 32], strides = [1, 1]} : vector<8x128xf32> to vector<8x32xf32>
    %188 = arith.negf %187 : vector<8x32xf32>
    %189 = math.exp %188 : vector<8x32xf32>
    %cst_88 = arith.constant 1.000000e+00 : f32
    %190 = vector.broadcast %cst_88 : f32 to vector<8x32xf32>
    %191 = arith.addf %190, %189 : vector<8x32xf32>
    %192 = arith.divf %190, %191 : vector<8x32xf32>
    %193 = vector.extract_strided_slice %186 {offsets = [0, 32], sizes = [8, 32], strides = [1, 1]} : vector<8x128xf32> to vector<8x32xf32>
    %194 = arith.negf %193 : vector<8x32xf32>
    %195 = math.exp %194 : vector<8x32xf32>
    %cst_89 = arith.constant 1.000000e+00 : f32
    %196 = vector.broadcast %cst_89 : f32 to vector<8x32xf32>
    %197 = arith.addf %196, %195 : vector<8x32xf32>
    %198 = arith.divf %196, %197 : vector<8x32xf32>
    %199 = vector.extract_strided_slice %186 {offsets = [0, 64], sizes = [8, 32], strides = [1, 1]} : vector<8x128xf32> to vector<8x32xf32>
    %200 = math.tanh %199 : vector<8x32xf32>
    %201 = vector.extract_strided_slice %186 {offsets = [0, 96], sizes = [8, 32], strides = [1, 1]} : vector<8x128xf32> to vector<8x32xf32>
    %202 = arith.negf %201 : vector<8x32xf32>
    %203 = math.exp %202 : vector<8x32xf32>
    %cst_90 = arith.constant 1.000000e+00 : f32
    %204 = vector.broadcast %cst_90 : f32 to vector<8x32xf32>
    %205 = arith.addf %204, %203 : vector<8x32xf32>
    %206 = arith.divf %204, %205 : vector<8x32xf32>
    %c0_91 = arith.constant 0 : index
    %c0_92 = arith.constant 0 : index
    %207 = vector.load %arg14[%c0_91, %c0_92] : memref<8x32xf32, #tpu.memory_space<vmem>>, vector<8x32xf32>
    %208 = arith.mulf %198, %207 : vector<8x32xf32>
    %209 = arith.mulf %192, %200 : vector<8x32xf32>
    %210 = arith.addf %208, %209 : vector<8x32xf32>
    %211 = math.tanh %210 : vector<8x32xf32>
    %212 = arith.mulf %206, %211 : vector<8x32xf32>
    %c0_93 = arith.constant 0 : index
    %c0_94 = arith.constant 0 : index
    %213 = vector.load %arg14[%c0_93, %c0_94] : memref<8x32xf32, #tpu.memory_space<vmem>>, vector<8x32xf32>
    tpu.vector_store %arg14[%c0_93, %c0_94], %210 {strides = array<i32>} : memref<8x32xf32, #tpu.memory_space<vmem>>, vector<8x32xf32>,
    %c0_95 = arith.constant 0 : index
    %c0_96 = arith.constant 0 : index
    %214 = vector.load %arg13[%c0_95, %c0_96] : memref<8x32xf32, #tpu.memory_space<vmem>>, vector<8x32xf32>
    tpu.vector_store %arg13[%c0_95, %c0_96], %212 {strides = array<i32>} : memref<8x32xf32, #tpu.memory_space<vmem>>, vector<8x32xf32>,
    %215 = arith.truncf %212 : vector<8x32xf32> to vector<8x32xbf16>
    %216 = arith.index_cast %178 : i32 to index
    %c0_97 = arith.constant 0 : index
    %217 = vector.load %arg12[%216, %c0_97] : memref<64x32xbf16, #tpu.memory_space<vmem>>, vector<8x32xbf16>
    tpu.vector_store %arg12[%216, %c0_97], %215 {strides = array<i32>} : memref<64x32xbf16, #tpu.memory_space<vmem>>, vector<8x32xbf16>,
    %c5_i32 = arith.constant 5 : i32
    %c8_i32_98 = arith.constant 8 : i32
    %218 = arith.muli %c5_i32, %c8_i32_98 : i32
    %219 = tpu.assume_multiple %218, 8 : i32
    %220 = arith.index_cast %219 : i32 to index
    %c0_99 = arith.constant 0 : index
    %221 = vector.load %arg11[%220, %c0_99] : memref<64x128xbf16, #tpu.memory_space<vmem>>, vector<8x128xbf16>
    %222 = arith.extf %221 : vector<8x128xbf16> to vector<8x128xf32>
    %c0_100 = arith.constant 0 : index
    %c0_101 = arith.constant 0 : index
    %223 = vector.load %arg13[%c0_100, %c0_101] : memref<8x32xf32, #tpu.memory_space<vmem>>, vector<8x32xf32>
    %224 = arith.truncf %223 : vector<8x32xf32> to vector<8x32xbf16>
    %c0_102 = arith.constant 0 : index
    %c0_103 = arith.constant 0 : index
    %225 = vector.load %arg3[%c0_102, %c0_103] : memref<32x128xbf16, #tpu.memory_space<vmem>>, vector<32x128xbf16>
    %cst_104 = arith.constant dense<0.000000e+00> : vector<8x128xf32>
    %226 = tpu.matmul %224, %225, %cst_104 {dimension_numbers = #tpu.dot_dimension_numbers<[1], [0], [0], [1], [0, 0, 1, 1], [], []>} : vector<8x32xbf16>, vector<32x128xbf16>, vector<8x128xf32> -> vector<8x128xf32>
    %227 = arith.addf %222, %226 : vector<8x128xf32>
    %228 = vector.extract_strided_slice %227 {offsets = [0, 0], sizes = [8, 32], strides = [1, 1]} : vector<8x128xf32> to vector<8x32xf32>
    %229 = arith.negf %228 : vector<8x32xf32>
    %230 = math.exp %229 : vector<8x32xf32>
    %cst_105 = arith.constant 1.000000e+00 : f32
    %231 = vector.broadcast %cst_105 : f32 to vector<8x32xf32>
    %232 = arith.addf %231, %230 : vector<8x32xf32>
    %233 = arith.divf %231, %232 : vector<8x32xf32>
    %234 = vector.extract_strided_slice %227 {offsets = [0, 32], sizes = [8, 32], strides = [1, 1]} : vector<8x128xf32> to vector<8x32xf32>
    %235 = arith.negf %234 : vector<8x32xf32>
    %236 = math.exp %235 : vector<8x32xf32>
    %cst_106 = arith.constant 1.000000e+00 : f32
    %237 = vector.broadcast %cst_106 : f32 to vector<8x32xf32>
    %238 = arith.addf %237, %236 : vector<8x32xf32>
    %239 = arith.divf %237, %238 : vector<8x32xf32>
    %240 = vector.extract_strided_slice %227 {offsets = [0, 64], sizes = [8, 32], strides = [1, 1]} : vector<8x128xf32> to vector<8x32xf32>
    %241 = math.tanh %240 : vector<8x32xf32>
    %242 = vector.extract_strided_slice %227 {offsets = [0, 96], sizes = [8, 32], strides = [1, 1]} : vector<8x128xf32> to vector<8x32xf32>
    %243 = arith.negf %242 : vector<8x32xf32>
    %244 = math.exp %243 : vector<8x32xf32>
    %cst_107 = arith.constant 1.000000e+00 : f32
    %245 = vector.broadcast %cst_107 : f32 to vector<8x32xf32>
    %246 = arith.addf %245, %244 : vector<8x32xf32>
    %247 = arith.divf %245, %246 : vector<8x32xf32>
    %c0_108 = arith.constant 0 : index
    %c0_109 = arith.constant 0 : index
    %248 = vector.load %arg14[%c0_108, %c0_109] : memref<8x32xf32, #tpu.memory_space<vmem>>, vector<8x32xf32>
    %249 = arith.mulf %239, %248 : vector<8x32xf32>
    %250 = arith.mulf %233, %241 : vector<8x32xf32>
    %251 = arith.addf %249, %250 : vector<8x32xf32>
    %252 = math.tanh %251 : vector<8x32xf32>
    %253 = arith.mulf %247, %252 : vector<8x32xf32>
    %c0_110 = arith.constant 0 : index
    %c0_111 = arith.constant 0 : index
    %254 = vector.load %arg14[%c0_110, %c0_111] : memref<8x32xf32, #tpu.memory_space<vmem>>, vector<8x32xf32>
    tpu.vector_store %arg14[%c0_110, %c0_111], %251 {strides = array<i32>} : memref<8x32xf32, #tpu.memory_space<vmem>>, vector<8x32xf32>,
    %c0_112 = arith.constant 0 : index
    %c0_113 = arith.constant 0 : index
    %255 = vector.load %arg13[%c0_112, %c0_113] : memref<8x32xf32, #tpu.memory_space<vmem>>, vector<8x32xf32>
    tpu.vector_store %arg13[%c0_112, %c0_113], %253 {strides = array<i32>} : memref<8x32xf32, #tpu.memory_space<vmem>>, vector<8x32xf32>,
    %256 = arith.truncf %253 : vector<8x32xf32> to vector<8x32xbf16>
    %257 = arith.index_cast %219 : i32 to index
    %c0_114 = arith.constant 0 : index
    %258 = vector.load %arg12[%257, %c0_114] : memref<64x32xbf16, #tpu.memory_space<vmem>>, vector<8x32xbf16>
    tpu.vector_store %arg12[%257, %c0_114], %256 {strides = array<i32>} : memref<64x32xbf16, #tpu.memory_space<vmem>>, vector<8x32xbf16>,
    %c6_i32 = arith.constant 6 : i32
    %c8_i32_115 = arith.constant 8 : i32
    %259 = arith.muli %c6_i32, %c8_i32_115 : i32
    %260 = tpu.assume_multiple %259, 8 : i32
    %261 = arith.index_cast %260 : i32 to index
    %c0_116 = arith.constant 0 : index
    %262 = vector.load %arg11[%261, %c0_116] : memref<64x128xbf16, #tpu.memory_space<vmem>>, vector<8x128xbf16>
    %263 = arith.extf %262 : vector<8x128xbf16> to vector<8x128xf32>
    %c0_117 = arith.constant 0 : index
    %c0_118 = arith.constant 0 : index
    %264 = vector.load %arg13[%c0_117, %c0_118] : memref<8x32xf32, #tpu.memory_space<vmem>>, vector<8x32xf32>
    %265 = arith.truncf %264 : vector<8x32xf32> to vector<8x32xbf16>
    %c0_119 = arith.constant 0 : index
    %c0_120 = arith.constant 0 : index
    %266 = vector.load %arg3[%c0_119, %c0_120] : memref<32x128xbf16, #tpu.memory_space<vmem>>, vector<32x128xbf16>
    %cst_121 = arith.constant dense<0.000000e+00> : vector<8x128xf32>
    %267 = tpu.matmul %265, %266, %cst_121 {dimension_numbers = #tpu.dot_dimension_numbers<[1], [0], [0], [1], [0, 0, 1, 1], [], []>} : vector<8x32xbf16>, vector<32x128xbf16>, vector<8x128xf32> -> vector<8x128xf32>
    %268 = arith.addf %263, %267 : vector<8x128xf32>
    %269 = vector.extract_strided_slice %268 {offsets = [0, 0], sizes = [8, 32], strides = [1, 1]} : vector<8x128xf32> to vector<8x32xf32>
    %270 = arith.negf %269 : vector<8x32xf32>
    %271 = math.exp %270 : vector<8x32xf32>
    %cst_122 = arith.constant 1.000000e+00 : f32
    %272 = vector.broadcast %cst_122 : f32 to vector<8x32xf32>
    %273 = arith.addf %272, %271 : vector<8x32xf32>
    %274 = arith.divf %272, %273 : vector<8x32xf32>
    %275 = vector.extract_strided_slice %268 {offsets = [0, 32], sizes = [8, 32], strides = [1, 1]} : vector<8x128xf32> to vector<8x32xf32>
    %276 = arith.negf %275 : vector<8x32xf32>
    %277 = math.exp %276 : vector<8x32xf32>
    %cst_123 = arith.constant 1.000000e+00 : f32
    %278 = vector.broadcast %cst_123 : f32 to vector<8x32xf32>
    %279 = arith.addf %278, %277 : vector<8x32xf32>
    %280 = arith.divf %278, %279 : vector<8x32xf32>
    %281 = vector.extract_strided_slice %268 {offsets = [0, 64], sizes = [8, 32], strides = [1, 1]} : vector<8x128xf32> to vector<8x32xf32>
    %282 = math.tanh %281 : vector<8x32xf32>
    %283 = vector.extract_strided_slice %268 {offsets = [0, 96], sizes = [8, 32], strides = [1, 1]} : vector<8x128xf32> to vector<8x32xf32>
    %284 = arith.negf %283 : vector<8x32xf32>
    %285 = math.exp %284 : vector<8x32xf32>
    %cst_124 = arith.constant 1.000000e+00 : f32
    %286 = vector.broadcast %cst_124 : f32 to vector<8x32xf32>
    %287 = arith.addf %286, %285 : vector<8x32xf32>
    %288 = arith.divf %286, %287 : vector<8x32xf32>
    %c0_125 = arith.constant 0 : index
    %c0_126 = arith.constant 0 : index
    %289 = vector.load %arg14[%c0_125, %c0_126] : memref<8x32xf32, #tpu.memory_space<vmem>>, vector<8x32xf32>
    %290 = arith.mulf %280, %289 : vector<8x32xf32>
    %291 = arith.mulf %274, %282 : vector<8x32xf32>
    %292 = arith.addf %290, %291 : vector<8x32xf32>
    %293 = math.tanh %292 : vector<8x32xf32>
    %294 = arith.mulf %288, %293 : vector<8x32xf32>
    %c0_127 = arith.constant 0 : index
    %c0_128 = arith.constant 0 : index
    %295 = vector.load %arg14[%c0_127, %c0_128] : memref<8x32xf32, #tpu.memory_space<vmem>>, vector<8x32xf32>
    tpu.vector_store %arg14[%c0_127, %c0_128], %292 {strides = array<i32>} : memref<8x32xf32, #tpu.memory_space<vmem>>, vector<8x32xf32>,
    %c0_129 = arith.constant 0 : index
    %c0_130 = arith.constant 0 : index
    %296 = vector.load %arg13[%c0_129, %c0_130] : memref<8x32xf32, #tpu.memory_space<vmem>>, vector<8x32xf32>
    tpu.vector_store %arg13[%c0_129, %c0_130], %294 {strides = array<i32>} : memref<8x32xf32, #tpu.memory_space<vmem>>, vector<8x32xf32>,
    %297 = arith.truncf %294 : vector<8x32xf32> to vector<8x32xbf16>
    %298 = arith.index_cast %260 : i32 to index
    %c0_131 = arith.constant 0 : index
    %299 = vector.load %arg12[%298, %c0_131] : memref<64x32xbf16, #tpu.memory_space<vmem>>, vector<8x32xbf16>
    tpu.vector_store %arg12[%298, %c0_131], %297 {strides = array<i32>} : memref<64x32xbf16, #tpu.memory_space<vmem>>, vector<8x32xbf16>,
    %c7_i32 = arith.constant 7 : i32
    %c8_i32_132 = arith.constant 8 : i32
    %300 = arith.muli %c7_i32, %c8_i32_132 : i32
    %301 = tpu.assume_multiple %300, 8 : i32
    %302 = arith.index_cast %301 : i32 to index
    %c0_133 = arith.constant 0 : index
    %303 = vector.load %arg11[%302, %c0_133] : memref<64x128xbf16, #tpu.memory_space<vmem>>, vector<8x128xbf16>
    %304 = arith.extf %303 : vector<8x128xbf16> to vector<8x128xf32>
    %c0_134 = arith.constant 0 : index
    %c0_135 = arith.constant 0 : index
    %305 = vector.load %arg13[%c0_134, %c0_135] : memref<8x32xf32, #tpu.memory_space<vmem>>, vector<8x32xf32>
    %306 = arith.truncf %305 : vector<8x32xf32> to vector<8x32xbf16>
    %c0_136 = arith.constant 0 : index
    %c0_137 = arith.constant 0 : index
    %307 = vector.load %arg3[%c0_136, %c0_137] : memref<32x128xbf16, #tpu.memory_space<vmem>>, vector<32x128xbf16>
    %cst_138 = arith.constant dense<0.000000e+00> : vector<8x128xf32>
    %308 = tpu.matmul %306, %307, %cst_138 {dimension_numbers = #tpu.dot_dimension_numbers<[1], [0], [0], [1], [0, 0, 1, 1], [], []>} : vector<8x32xbf16>, vector<32x128xbf16>, vector<8x128xf32> -> vector<8x128xf32>
    %309 = arith.addf %304, %308 : vector<8x128xf32>
    %310 = vector.extract_strided_slice %309 {offsets = [0, 0], sizes = [8, 32], strides = [1, 1]} : vector<8x128xf32> to vector<8x32xf32>
    %311 = arith.negf %310 : vector<8x32xf32>
    %312 = math.exp %311 : vector<8x32xf32>
    %cst_139 = arith.constant 1.000000e+00 : f32
    %313 = vector.broadcast %cst_139 : f32 to vector<8x32xf32>
    %314 = arith.addf %313, %312 : vector<8x32xf32>
    %315 = arith.divf %313, %314 : vector<8x32xf32>
    %316 = vector.extract_strided_slice %309 {offsets = [0, 32], sizes = [8, 32], strides = [1, 1]} : vector<8x128xf32> to vector<8x32xf32>
    %317 = arith.negf %316 : vector<8x32xf32>
    %318 = math.exp %317 : vector<8x32xf32>
    %cst_140 = arith.constant 1.000000e+00 : f32
    %319 = vector.broadcast %cst_140 : f32 to vector<8x32xf32>
    %320 = arith.addf %319, %318 : vector<8x32xf32>
    %321 = arith.divf %319, %320 : vector<8x32xf32>
    %322 = vector.extract_strided_slice %309 {offsets = [0, 64], sizes = [8, 32], strides = [1, 1]} : vector<8x128xf32> to vector<8x32xf32>
    %323 = math.tanh %322 : vector<8x32xf32>
    %324 = vector.extract_strided_slice %309 {offsets = [0, 96], sizes = [8, 32], strides = [1, 1]} : vector<8x128xf32> to vector<8x32xf32>
    %325 = arith.negf %324 : vector<8x32xf32>
    %326 = math.exp %325 : vector<8x32xf32>
    %cst_141 = arith.constant 1.000000e+00 : f32
    %327 = vector.broadcast %cst_141 : f32 to vector<8x32xf32>
    %328 = arith.addf %327, %326 : vector<8x32xf32>
    %329 = arith.divf %327, %328 : vector<8x32xf32>
    %c0_142 = arith.constant 0 : index
    %c0_143 = arith.constant 0 : index
    %330 = vector.load %arg14[%c0_142, %c0_143] : memref<8x32xf32, #tpu.memory_space<vmem>>, vector<8x32xf32>
    %331 = arith.mulf %321, %330 : vector<8x32xf32>
    %332 = arith.mulf %315, %323 : vector<8x32xf32>
    %333 = arith.addf %331, %332 : vector<8x32xf32>
    %334 = math.tanh %333 : vector<8x32xf32>
    %335 = arith.mulf %329, %334 : vector<8x32xf32>
    %c0_144 = arith.constant 0 : index
    %c0_145 = arith.constant 0 : index
    %336 = vector.load %arg14[%c0_144, %c0_145] : memref<8x32xf32, #tpu.memory_space<vmem>>, vector<8x32xf32>
    tpu.vector_store %arg14[%c0_144, %c0_145], %333 {strides = array<i32>} : memref<8x32xf32, #tpu.memory_space<vmem>>, vector<8x32xf32>,
    %c0_146 = arith.constant 0 : index
    %c0_147 = arith.constant 0 : index
    %337 = vector.load %arg13[%c0_146, %c0_147] : memref<8x32xf32, #tpu.memory_space<vmem>>, vector<8x32xf32>
    tpu.vector_store %arg13[%c0_146, %c0_147], %335 {strides = array<i32>} : memref<8x32xf32, #tpu.memory_space<vmem>>, vector<8x32xf32>,
    %338 = arith.truncf %335 : vector<8x32xf32> to vector<8x32xbf16>
    %339 = arith.index_cast %301 : i32 to index
    %c0_148 = arith.constant 0 : index
    %340 = vector.load %arg12[%339, %c0_148] : memref<64x32xbf16, #tpu.memory_space<vmem>>, vector<8x32xbf16>
    tpu.vector_store %arg12[%339, %c0_148], %338 {strides = array<i32>} : memref<64x32xbf16, #tpu.memory_space<vmem>>, vector<8x32xbf16>,
    %c8_i32_149 = arith.constant 8 : i32
    %c0_150 = arith.constant 0 : index
    %c0_151 = arith.constant 0 : index
    %341 = vector.load %arg12[%c0_150, %c0_151] : memref<64x32xbf16, #tpu.memory_space<vmem>>, vector<64x32xbf16>
    %c0_152 = arith.constant 0 : index
    %c0_153 = arith.constant 0 : index
    %342 = vector.load %arg5[%c0_152, %c0_153] : memref<32x128xbf16, #tpu.memory_space<vmem>>, vector<32x128xbf16>
    %cst_154 = arith.constant dense<0.000000e+00> : vector<64x128xf32>
    %343 = tpu.matmul %341, %342, %cst_154 {dimension_numbers = #tpu.dot_dimension_numbers<[1], [0], [0], [1], [0, 0, 1, 1], [], []>} : vector<64x32xbf16>, vector<32x128xbf16>, vector<64x128xf32> -> vector<64x128xf32>
    %c0_155 = arith.constant 0 : index
    %c0_156 = arith.constant 0 : index
    %344 = vector.load %arg7[%c0_155, %c0_156] : memref<1x128xf32, #tpu.memory_space<vmem>>, vector<1x128xf32>
    %345 = vector.broadcast %344 : vector<1x128xf32> to vector<64x128xf32>
    %346 = arith.addf %343, %345 : vector<64x128xf32>
    %347 = arith.truncf %346 : vector<64x128xf32> to vector<64x128xbf16>
    %c0_157 = arith.constant 0 : index
    %c0_158 = arith.constant 0 : index
    %348 = vector.load %arg11[%c0_157, %c0_158] : memref<64x128xbf16, #tpu.memory_space<vmem>>, vector<64x128xbf16>
    tpu.vector_store %arg11[%c0_157, %c0_158], %347 {strides = array<i32>} : memref<64x128xbf16, #tpu.memory_space<vmem>>, vector<64x128xbf16>,
    %cst_159 = arith.constant 0.000000e+00 : f32
    %349 = vector.broadcast %cst_159 : f32 to vector<8x32xf32>
    %c0_160 = arith.constant 0 : index
    %c0_161 = arith.constant 0 : index
    %350 = vector.load %arg13[%c0_160, %c0_161] : memref<8x32xf32, #tpu.memory_space<vmem>>, vector<8x32xf32>
    tpu.vector_store %arg13[%c0_160, %c0_161], %349 {strides = array<i32>} : memref<8x32xf32, #tpu.memory_space<vmem>>, vector<8x32xf32>,
    %cst_162 = arith.constant 0.000000e+00 : f32
    %351 = vector.broadcast %cst_162 : f32 to vector<8x32xf32>
    %c0_163 = arith.constant 0 : index
    %c0_164 = arith.constant 0 : index
    %352 = vector.load %arg14[%c0_163, %c0_164] : memref<8x32xf32, #tpu.memory_space<vmem>>, vector<8x32xf32>
    tpu.vector_store %arg14[%c0_163, %c0_164], %351 {strides = array<i32>} : memref<8x32xf32, #tpu.memory_space<vmem>>, vector<8x32xf32>,
    %c0_i32_165 = arith.constant 0 : i32
    %c8_i32_166 = arith.constant 8 : i32
    %353 = arith.muli %c0_i32_165, %c8_i32_166 : i32
    %354 = tpu.assume_multiple %353, 8 : i32
    %355 = arith.index_cast %354 : i32 to index
    %c0_167 = arith.constant 0 : index
    %356 = vector.load %arg11[%355, %c0_167] : memref<64x128xbf16, #tpu.memory_space<vmem>>, vector<8x128xbf16>
    %357 = arith.extf %356 : vector<8x128xbf16> to vector<8x128xf32>
    %c0_168 = arith.constant 0 : index
    %c0_169 = arith.constant 0 : index
    %358 = vector.load %arg13[%c0_168, %c0_169] : memref<8x32xf32, #tpu.memory_space<vmem>>, vector<8x32xf32>
    %359 = arith.truncf %358 : vector<8x32xf32> to vector<8x32xbf16>
    %c0_170 = arith.constant 0 : index
    %c0_171 = arith.constant 0 : index
    %360 = vector.load %arg6[%c0_170, %c0_171] : memref<32x128xbf16, #tpu.memory_space<vmem>>, vector<32x128xbf16>
    %cst_172 = arith.constant dense<0.000000e+00> : vector<8x128xf32>
    %361 = tpu.matmul %359, %360, %cst_172 {dimension_numbers = #tpu.dot_dimension_numbers<[1], [0], [0], [1], [0, 0, 1, 1], [], []>} : vector<8x32xbf16>, vector<32x128xbf16>, vector<8x128xf32> -> vector<8x128xf32>
    %362 = arith.addf %357, %361 : vector<8x128xf32>
    %363 = vector.extract_strided_slice %362 {offsets = [0, 0], sizes = [8, 32], strides = [1, 1]} : vector<8x128xf32> to vector<8x32xf32>
    %364 = arith.negf %363 : vector<8x32xf32>
    %365 = math.exp %364 : vector<8x32xf32>
    %cst_173 = arith.constant 1.000000e+00 : f32
    %366 = vector.broadcast %cst_173 : f32 to vector<8x32xf32>
    %367 = arith.addf %366, %365 : vector<8x32xf32>
    %368 = arith.divf %366, %367 : vector<8x32xf32>
    %369 = vector.extract_strided_slice %362 {offsets = [0, 32], sizes = [8, 32], strides = [1, 1]} : vector<8x128xf32> to vector<8x32xf32>
    %370 = arith.negf %369 : vector<8x32xf32>
    %371 = math.exp %370 : vector<8x32xf32>
    %cst_174 = arith.constant 1.000000e+00 : f32
    %372 = vector.broadcast %cst_174 : f32 to vector<8x32xf32>
    %373 = arith.addf %372, %371 : vector<8x32xf32>
    %374 = arith.divf %372, %373 : vector<8x32xf32>
    %375 = vector.extract_strided_slice %362 {offsets = [0, 64], sizes = [8, 32], strides = [1, 1]} : vector<8x128xf32> to vector<8x32xf32>
    %376 = math.tanh %375 : vector<8x32xf32>
    %377 = vector.extract_strided_slice %362 {offsets = [0, 96], sizes = [8, 32], strides = [1, 1]} : vector<8x128xf32> to vector<8x32xf32>
    %378 = arith.negf %377 : vector<8x32xf32>
    %379 = math.exp %378 : vector<8x32xf32>
    %cst_175 = arith.constant 1.000000e+00 : f32
    %380 = vector.broadcast %cst_175 : f32 to vector<8x32xf32>
    %381 = arith.addf %380, %379 : vector<8x32xf32>
    %382 = arith.divf %380, %381 : vector<8x32xf32>
    %c0_176 = arith.constant 0 : index
    %c0_177 = arith.constant 0 : index
    %383 = vector.load %arg14[%c0_176, %c0_177] : memref<8x32xf32, #tpu.memory_space<vmem>>, vector<8x32xf32>
    %384 = arith.mulf %374, %383 : vector<8x32xf32>
    %385 = arith.mulf %368, %376 : vector<8x32xf32>
    %386 = arith.addf %384, %385 : vector<8x32xf32>
    %387 = math.tanh %386 : vector<8x32xf32>
    %388 = arith.mulf %382, %387 : vector<8x32xf32>
    %c0_178 = arith.constant 0 : index
    %c0_179 = arith.constant 0 : index
    %389 = vector.load %arg14[%c0_178, %c0_179] : memref<8x32xf32, #tpu.memory_space<vmem>>, vector<8x32xf32>
    tpu.vector_store %arg14[%c0_178, %c0_179], %386 {strides = array<i32>} : memref<8x32xf32, #tpu.memory_space<vmem>>, vector<8x32xf32>,
    %c0_180 = arith.constant 0 : index
    %c0_181 = arith.constant 0 : index
    %390 = vector.load %arg13[%c0_180, %c0_181] : memref<8x32xf32, #tpu.memory_space<vmem>>, vector<8x32xf32>
    tpu.vector_store %arg13[%c0_180, %c0_181], %388 {strides = array<i32>} : memref<8x32xf32, #tpu.memory_space<vmem>>, vector<8x32xf32>,
    %c1_i32_182 = arith.constant 1 : i32
    %c8_i32_183 = arith.constant 8 : i32
    %391 = arith.muli %c1_i32_182, %c8_i32_183 : i32
    %392 = tpu.assume_multiple %391, 8 : i32
    %393 = arith.index_cast %392 : i32 to index
    %c0_184 = arith.constant 0 : index
    %394 = vector.load %arg11[%393, %c0_184] : memref<64x128xbf16, #tpu.memory_space<vmem>>, vector<8x128xbf16>
    %395 = arith.extf %394 : vector<8x128xbf16> to vector<8x128xf32>
    %c0_185 = arith.constant 0 : index
    %c0_186 = arith.constant 0 : index
    %396 = vector.load %arg13[%c0_185, %c0_186] : memref<8x32xf32, #tpu.memory_space<vmem>>, vector<8x32xf32>
    %397 = arith.truncf %396 : vector<8x32xf32> to vector<8x32xbf16>
    %c0_187 = arith.constant 0 : index
    %c0_188 = arith.constant 0 : index
    %398 = vector.load %arg6[%c0_187, %c0_188] : memref<32x128xbf16, #tpu.memory_space<vmem>>, vector<32x128xbf16>
    %cst_189 = arith.constant dense<0.000000e+00> : vector<8x128xf32>
    %399 = tpu.matmul %397, %398, %cst_189 {dimension_numbers = #tpu.dot_dimension_numbers<[1], [0], [0], [1], [0, 0, 1, 1], [], []>} : vector<8x32xbf16>, vector<32x128xbf16>, vector<8x128xf32> -> vector<8x128xf32>
    %400 = arith.addf %395, %399 : vector<8x128xf32>
    %401 = vector.extract_strided_slice %400 {offsets = [0, 0], sizes = [8, 32], strides = [1, 1]} : vector<8x128xf32> to vector<8x32xf32>
    %402 = arith.negf %401 : vector<8x32xf32>
    %403 = math.exp %402 : vector<8x32xf32>
    %cst_190 = arith.constant 1.000000e+00 : f32
    %404 = vector.broadcast %cst_190 : f32 to vector<8x32xf32>
    %405 = arith.addf %404, %403 : vector<8x32xf32>
    %406 = arith.divf %404, %405 : vector<8x32xf32>
    %407 = vector.extract_strided_slice %400 {offsets = [0, 32], sizes = [8, 32], strides = [1, 1]} : vector<8x128xf32> to vector<8x32xf32>
    %408 = arith.negf %407 : vector<8x32xf32>
    %409 = math.exp %408 : vector<8x32xf32>
    %cst_191 = arith.constant 1.000000e+00 : f32
    %410 = vector.broadcast %cst_191 : f32 to vector<8x32xf32>
    %411 = arith.addf %410, %409 : vector<8x32xf32>
    %412 = arith.divf %410, %411 : vector<8x32xf32>
    %413 = vector.extract_strided_slice %400 {offsets = [0, 64], sizes = [8, 32], strides = [1, 1]} : vector<8x128xf32> to vector<8x32xf32>
    %414 = math.tanh %413 : vector<8x32xf32>
    %415 = vector.extract_strided_slice %400 {offsets = [0, 96], sizes = [8, 32], strides = [1, 1]} : vector<8x128xf32> to vector<8x32xf32>
    %416 = arith.negf %415 : vector<8x32xf32>
    %417 = math.exp %416 : vector<8x32xf32>
    %cst_192 = arith.constant 1.000000e+00 : f32
    %418 = vector.broadcast %cst_192 : f32 to vector<8x32xf32>
    %419 = arith.addf %418, %417 : vector<8x32xf32>
    %420 = arith.divf %418, %419 : vector<8x32xf32>
    %c0_193 = arith.constant 0 : index
    %c0_194 = arith.constant 0 : index
    %421 = vector.load %arg14[%c0_193, %c0_194] : memref<8x32xf32, #tpu.memory_space<vmem>>, vector<8x32xf32>
    %422 = arith.mulf %412, %421 : vector<8x32xf32>
    %423 = arith.mulf %406, %414 : vector<8x32xf32>
    %424 = arith.addf %422, %423 : vector<8x32xf32>
    %425 = math.tanh %424 : vector<8x32xf32>
    %426 = arith.mulf %420, %425 : vector<8x32xf32>
    %c0_195 = arith.constant 0 : index
    %c0_196 = arith.constant 0 : index
    %427 = vector.load %arg14[%c0_195, %c0_196] : memref<8x32xf32, #tpu.memory_space<vmem>>, vector<8x32xf32>
    tpu.vector_store %arg14[%c0_195, %c0_196], %424 {strides = array<i32>} : memref<8x32xf32, #tpu.memory_space<vmem>>, vector<8x32xf32>,
    %c0_197 = arith.constant 0 : index
    %c0_198 = arith.constant 0 : index
    %428 = vector.load %arg13[%c0_197, %c0_198] : memref<8x32xf32, #tpu.memory_space<vmem>>, vector<8x32xf32>
    tpu.vector_store %arg13[%c0_197, %c0_198], %426 {strides = array<i32>} : memref<8x32xf32, #tpu.memory_space<vmem>>, vector<8x32xf32>,
    %c2_i32_199 = arith.constant 2 : i32
    %c8_i32_200 = arith.constant 8 : i32
    %429 = arith.muli %c2_i32_199, %c8_i32_200 : i32
    %430 = tpu.assume_multiple %429, 8 : i32
    %431 = arith.index_cast %430 : i32 to index
    %c0_201 = arith.constant 0 : index
    %432 = vector.load %arg11[%431, %c0_201] : memref<64x128xbf16, #tpu.memory_space<vmem>>, vector<8x128xbf16>
    %433 = arith.extf %432 : vector<8x128xbf16> to vector<8x128xf32>
    %c0_202 = arith.constant 0 : index
    %c0_203 = arith.constant 0 : index
    %434 = vector.load %arg13[%c0_202, %c0_203] : memref<8x32xf32, #tpu.memory_space<vmem>>, vector<8x32xf32>
    %435 = arith.truncf %434 : vector<8x32xf32> to vector<8x32xbf16>
    %c0_204 = arith.constant 0 : index
    %c0_205 = arith.constant 0 : index
    %436 = vector.load %arg6[%c0_204, %c0_205] : memref<32x128xbf16, #tpu.memory_space<vmem>>, vector<32x128xbf16>
    %cst_206 = arith.constant dense<0.000000e+00> : vector<8x128xf32>
    %437 = tpu.matmul %435, %436, %cst_206 {dimension_numbers = #tpu.dot_dimension_numbers<[1], [0], [0], [1], [0, 0, 1, 1], [], []>} : vector<8x32xbf16>, vector<32x128xbf16>, vector<8x128xf32> -> vector<8x128xf32>
    %438 = arith.addf %433, %437 : vector<8x128xf32>
    %439 = vector.extract_strided_slice %438 {offsets = [0, 0], sizes = [8, 32], strides = [1, 1]} : vector<8x128xf32> to vector<8x32xf32>
    %440 = arith.negf %439 : vector<8x32xf32>
    %441 = math.exp %440 : vector<8x32xf32>
    %cst_207 = arith.constant 1.000000e+00 : f32
    %442 = vector.broadcast %cst_207 : f32 to vector<8x32xf32>
    %443 = arith.addf %442, %441 : vector<8x32xf32>
    %444 = arith.divf %442, %443 : vector<8x32xf32>
    %445 = vector.extract_strided_slice %438 {offsets = [0, 32], sizes = [8, 32], strides = [1, 1]} : vector<8x128xf32> to vector<8x32xf32>
    %446 = arith.negf %445 : vector<8x32xf32>
    %447 = math.exp %446 : vector<8x32xf32>
    %cst_208 = arith.constant 1.000000e+00 : f32
    %448 = vector.broadcast %cst_208 : f32 to vector<8x32xf32>
    %449 = arith.addf %448, %447 : vector<8x32xf32>
    %450 = arith.divf %448, %449 : vector<8x32xf32>
    %451 = vector.extract_strided_slice %438 {offsets = [0, 64], sizes = [8, 32], strides = [1, 1]} : vector<8x128xf32> to vector<8x32xf32>
    %452 = math.tanh %451 : vector<8x32xf32>
    %453 = vector.extract_strided_slice %438 {offsets = [0, 96], sizes = [8, 32], strides = [1, 1]} : vector<8x128xf32> to vector<8x32xf32>
    %454 = arith.negf %453 : vector<8x32xf32>
    %455 = math.exp %454 : vector<8x32xf32>
    %cst_209 = arith.constant 1.000000e+00 : f32
    %456 = vector.broadcast %cst_209 : f32 to vector<8x32xf32>
    %457 = arith.addf %456, %455 : vector<8x32xf32>
    %458 = arith.divf %456, %457 : vector<8x32xf32>
    %c0_210 = arith.constant 0 : index
    %c0_211 = arith.constant 0 : index
    %459 = vector.load %arg14[%c0_210, %c0_211] : memref<8x32xf32, #tpu.memory_space<vmem>>, vector<8x32xf32>
    %460 = arith.mulf %450, %459 : vector<8x32xf32>
    %461 = arith.mulf %444, %452 : vector<8x32xf32>
    %462 = arith.addf %460, %461 : vector<8x32xf32>
    %463 = math.tanh %462 : vector<8x32xf32>
    %464 = arith.mulf %458, %463 : vector<8x32xf32>
    %c0_212 = arith.constant 0 : index
    %c0_213 = arith.constant 0 : index
    %465 = vector.load %arg14[%c0_212, %c0_213] : memref<8x32xf32, #tpu.memory_space<vmem>>, vector<8x32xf32>
    tpu.vector_store %arg14[%c0_212, %c0_213], %462 {strides = array<i32>} : memref<8x32xf32, #tpu.memory_space<vmem>>, vector<8x32xf32>,
    %c0_214 = arith.constant 0 : index
    %c0_215 = arith.constant 0 : index
    %466 = vector.load %arg13[%c0_214, %c0_215] : memref<8x32xf32, #tpu.memory_space<vmem>>, vector<8x32xf32>
    tpu.vector_store %arg13[%c0_214, %c0_215], %464 {strides = array<i32>} : memref<8x32xf32, #tpu.memory_space<vmem>>, vector<8x32xf32>,
    %c3_i32_216 = arith.constant 3 : i32
    %c8_i32_217 = arith.constant 8 : i32
    %467 = arith.muli %c3_i32_216, %c8_i32_217 : i32
    %468 = tpu.assume_multiple %467, 8 : i32
    %469 = arith.index_cast %468 : i32 to index
    %c0_218 = arith.constant 0 : index
    %470 = vector.load %arg11[%469, %c0_218] : memref<64x128xbf16, #tpu.memory_space<vmem>>, vector<8x128xbf16>
    %471 = arith.extf %470 : vector<8x128xbf16> to vector<8x128xf32>
    %c0_219 = arith.constant 0 : index
    %c0_220 = arith.constant 0 : index
    %472 = vector.load %arg13[%c0_219, %c0_220] : memref<8x32xf32, #tpu.memory_space<vmem>>, vector<8x32xf32>
    %473 = arith.truncf %472 : vector<8x32xf32> to vector<8x32xbf16>
    %c0_221 = arith.constant 0 : index
    %c0_222 = arith.constant 0 : index
    %474 = vector.load %arg6[%c0_221, %c0_222] : memref<32x128xbf16, #tpu.memory_space<vmem>>, vector<32x128xbf16>
    %cst_223 = arith.constant dense<0.000000e+00> : vector<8x128xf32>
    %475 = tpu.matmul %473, %474, %cst_223 {dimension_numbers = #tpu.dot_dimension_numbers<[1], [0], [0], [1], [0, 0, 1, 1], [], []>} : vector<8x32xbf16>, vector<32x128xbf16>, vector<8x128xf32> -> vector<8x128xf32>
    %476 = arith.addf %471, %475 : vector<8x128xf32>
    %477 = vector.extract_strided_slice %476 {offsets = [0, 0], sizes = [8, 32], strides = [1, 1]} : vector<8x128xf32> to vector<8x32xf32>
    %478 = arith.negf %477 : vector<8x32xf32>
    %479 = math.exp %478 : vector<8x32xf32>
    %cst_224 = arith.constant 1.000000e+00 : f32
    %480 = vector.broadcast %cst_224 : f32 to vector<8x32xf32>
    %481 = arith.addf %480, %479 : vector<8x32xf32>
    %482 = arith.divf %480, %481 : vector<8x32xf32>
    %483 = vector.extract_strided_slice %476 {offsets = [0, 32], sizes = [8, 32], strides = [1, 1]} : vector<8x128xf32> to vector<8x32xf32>
    %484 = arith.negf %483 : vector<8x32xf32>
    %485 = math.exp %484 : vector<8x32xf32>
    %cst_225 = arith.constant 1.000000e+00 : f32
    %486 = vector.broadcast %cst_225 : f32 to vector<8x32xf32>
    %487 = arith.addf %486, %485 : vector<8x32xf32>
    %488 = arith.divf %486, %487 : vector<8x32xf32>
    %489 = vector.extract_strided_slice %476 {offsets = [0, 64], sizes = [8, 32], strides = [1, 1]} : vector<8x128xf32> to vector<8x32xf32>
    %490 = math.tanh %489 : vector<8x32xf32>
    %491 = vector.extract_strided_slice %476 {offsets = [0, 96], sizes = [8, 32], strides = [1, 1]} : vector<8x128xf32> to vector<8x32xf32>
    %492 = arith.negf %491 : vector<8x32xf32>
    %493 = math.exp %492 : vector<8x32xf32>
    %cst_226 = arith.constant 1.000000e+00 : f32
    %494 = vector.broadcast %cst_226 : f32 to vector<8x32xf32>
    %495 = arith.addf %494, %493 : vector<8x32xf32>
    %496 = arith.divf %494, %495 : vector<8x32xf32>
    %c0_227 = arith.constant 0 : index
    %c0_228 = arith.constant 0 : index
    %497 = vector.load %arg14[%c0_227, %c0_228] : memref<8x32xf32, #tpu.memory_space<vmem>>, vector<8x32xf32>
    %498 = arith.mulf %488, %497 : vector<8x32xf32>
    %499 = arith.mulf %482, %490 : vector<8x32xf32>
    %500 = arith.addf %498, %499 : vector<8x32xf32>
    %501 = math.tanh %500 : vector<8x32xf32>
    %502 = arith.mulf %496, %501 : vector<8x32xf32>
    %c0_229 = arith.constant 0 : index
    %c0_230 = arith.constant 0 : index
    %503 = vector.load %arg14[%c0_229, %c0_230] : memref<8x32xf32, #tpu.memory_space<vmem>>, vector<8x32xf32>
    tpu.vector_store %arg14[%c0_229, %c0_230], %500 {strides = array<i32>} : memref<8x32xf32, #tpu.memory_space<vmem>>, vector<8x32xf32>,
    %c0_231 = arith.constant 0 : index
    %c0_232 = arith.constant 0 : index
    %504 = vector.load %arg13[%c0_231, %c0_232] : memref<8x32xf32, #tpu.memory_space<vmem>>, vector<8x32xf32>
    tpu.vector_store %arg13[%c0_231, %c0_232], %502 {strides = array<i32>} : memref<8x32xf32, #tpu.memory_space<vmem>>, vector<8x32xf32>,
    %c4_i32_233 = arith.constant 4 : i32
    %c8_i32_234 = arith.constant 8 : i32
    %505 = arith.muli %c4_i32_233, %c8_i32_234 : i32
    %506 = tpu.assume_multiple %505, 8 : i32
    %507 = arith.index_cast %506 : i32 to index
    %c0_235 = arith.constant 0 : index
    %508 = vector.load %arg11[%507, %c0_235] : memref<64x128xbf16, #tpu.memory_space<vmem>>, vector<8x128xbf16>
    %509 = arith.extf %508 : vector<8x128xbf16> to vector<8x128xf32>
    %c0_236 = arith.constant 0 : index
    %c0_237 = arith.constant 0 : index
    %510 = vector.load %arg13[%c0_236, %c0_237] : memref<8x32xf32, #tpu.memory_space<vmem>>, vector<8x32xf32>
    %511 = arith.truncf %510 : vector<8x32xf32> to vector<8x32xbf16>
    %c0_238 = arith.constant 0 : index
    %c0_239 = arith.constant 0 : index
    %512 = vector.load %arg6[%c0_238, %c0_239] : memref<32x128xbf16, #tpu.memory_space<vmem>>, vector<32x128xbf16>
    %cst_240 = arith.constant dense<0.000000e+00> : vector<8x128xf32>
    %513 = tpu.matmul %511, %512, %cst_240 {dimension_numbers = #tpu.dot_dimension_numbers<[1], [0], [0], [1], [0, 0, 1, 1], [], []>} : vector<8x32xbf16>, vector<32x128xbf16>, vector<8x128xf32> -> vector<8x128xf32>
    %514 = arith.addf %509, %513 : vector<8x128xf32>
    %515 = vector.extract_strided_slice %514 {offsets = [0, 0], sizes = [8, 32], strides = [1, 1]} : vector<8x128xf32> to vector<8x32xf32>
    %516 = arith.negf %515 : vector<8x32xf32>
    %517 = math.exp %516 : vector<8x32xf32>
    %cst_241 = arith.constant 1.000000e+00 : f32
    %518 = vector.broadcast %cst_241 : f32 to vector<8x32xf32>
    %519 = arith.addf %518, %517 : vector<8x32xf32>
    %520 = arith.divf %518, %519 : vector<8x32xf32>
    %521 = vector.extract_strided_slice %514 {offsets = [0, 32], sizes = [8, 32], strides = [1, 1]} : vector<8x128xf32> to vector<8x32xf32>
    %522 = arith.negf %521 : vector<8x32xf32>
    %523 = math.exp %522 : vector<8x32xf32>
    %cst_242 = arith.constant 1.000000e+00 : f32
    %524 = vector.broadcast %cst_242 : f32 to vector<8x32xf32>
    %525 = arith.addf %524, %523 : vector<8x32xf32>
    %526 = arith.divf %524, %525 : vector<8x32xf32>
    %527 = vector.extract_strided_slice %514 {offsets = [0, 64], sizes = [8, 32], strides = [1, 1]} : vector<8x128xf32> to vector<8x32xf32>
    %528 = math.tanh %527 : vector<8x32xf32>
    %529 = vector.extract_strided_slice %514 {offsets = [0, 96], sizes = [8, 32], strides = [1, 1]} : vector<8x128xf32> to vector<8x32xf32>
    %530 = arith.negf %529 : vector<8x32xf32>
    %531 = math.exp %530 : vector<8x32xf32>
    %cst_243 = arith.constant 1.000000e+00 : f32
    %532 = vector.broadcast %cst_243 : f32 to vector<8x32xf32>
    %533 = arith.addf %532, %531 : vector<8x32xf32>
    %534 = arith.divf %532, %533 : vector<8x32xf32>
    %c0_244 = arith.constant 0 : index
    %c0_245 = arith.constant 0 : index
    %535 = vector.load %arg14[%c0_244, %c0_245] : memref<8x32xf32, #tpu.memory_space<vmem>>, vector<8x32xf32>
    %536 = arith.mulf %526, %535 : vector<8x32xf32>
    %537 = arith.mulf %520, %528 : vector<8x32xf32>
    %538 = arith.addf %536, %537 : vector<8x32xf32>
    %539 = math.tanh %538 : vector<8x32xf32>
    %540 = arith.mulf %534, %539 : vector<8x32xf32>
    %c0_246 = arith.constant 0 : index
    %c0_247 = arith.constant 0 : index
    %541 = vector.load %arg14[%c0_246, %c0_247] : memref<8x32xf32, #tpu.memory_space<vmem>>, vector<8x32xf32>
    tpu.vector_store %arg14[%c0_246, %c0_247], %538 {strides = array<i32>} : memref<8x32xf32, #tpu.memory_space<vmem>>, vector<8x32xf32>,
    %c0_248 = arith.constant 0 : index
    %c0_249 = arith.constant 0 : index
    %542 = vector.load %arg13[%c0_248, %c0_249] : memref<8x32xf32, #tpu.memory_space<vmem>>, vector<8x32xf32>
    tpu.vector_store %arg13[%c0_248, %c0_249], %540 {strides = array<i32>} : memref<8x32xf32, #tpu.memory_space<vmem>>, vector<8x32xf32>,
    %c5_i32_250 = arith.constant 5 : i32
    %c8_i32_251 = arith.constant 8 : i32
    %543 = arith.muli %c5_i32_250, %c8_i32_251 : i32
    %544 = tpu.assume_multiple %543, 8 : i32
    %545 = arith.index_cast %544 : i32 to index
    %c0_252 = arith.constant 0 : index
    %546 = vector.load %arg11[%545, %c0_252] : memref<64x128xbf16, #tpu.memory_space<vmem>>, vector<8x128xbf16>
    %547 = arith.extf %546 : vector<8x128xbf16> to vector<8x128xf32>
    %c0_253 = arith.constant 0 : index
    %c0_254 = arith.constant 0 : index
    %548 = vector.load %arg13[%c0_253, %c0_254] : memref<8x32xf32, #tpu.memory_space<vmem>>, vector<8x32xf32>
    %549 = arith.truncf %548 : vector<8x32xf32> to vector<8x32xbf16>
    %c0_255 = arith.constant 0 : index
    %c0_256 = arith.constant 0 : index
    %550 = vector.load %arg6[%c0_255, %c0_256] : memref<32x128xbf16, #tpu.memory_space<vmem>>, vector<32x128xbf16>
    %cst_257 = arith.constant dense<0.000000e+00> : vector<8x128xf32>
    %551 = tpu.matmul %549, %550, %cst_257 {dimension_numbers = #tpu.dot_dimension_numbers<[1], [0], [0], [1], [0, 0, 1, 1], [], []>} : vector<8x32xbf16>, vector<32x128xbf16>, vector<8x128xf32> -> vector<8x128xf32>
    %552 = arith.addf %547, %551 : vector<8x128xf32>
    %553 = vector.extract_strided_slice %552 {offsets = [0, 0], sizes = [8, 32], strides = [1, 1]} : vector<8x128xf32> to vector<8x32xf32>
    %554 = arith.negf %553 : vector<8x32xf32>
    %555 = math.exp %554 : vector<8x32xf32>
    %cst_258 = arith.constant 1.000000e+00 : f32
    %556 = vector.broadcast %cst_258 : f32 to vector<8x32xf32>
    %557 = arith.addf %556, %555 : vector<8x32xf32>
    %558 = arith.divf %556, %557 : vector<8x32xf32>
    %559 = vector.extract_strided_slice %552 {offsets = [0, 32], sizes = [8, 32], strides = [1, 1]} : vector<8x128xf32> to vector<8x32xf32>
    %560 = arith.negf %559 : vector<8x32xf32>
    %561 = math.exp %560 : vector<8x32xf32>
    %cst_259 = arith.constant 1.000000e+00 : f32
    %562 = vector.broadcast %cst_259 : f32 to vector<8x32xf32>
    %563 = arith.addf %562, %561 : vector<8x32xf32>
    %564 = arith.divf %562, %563 : vector<8x32xf32>
    %565 = vector.extract_strided_slice %552 {offsets = [0, 64], sizes = [8, 32], strides = [1, 1]} : vector<8x128xf32> to vector<8x32xf32>
    %566 = math.tanh %565 : vector<8x32xf32>
    %567 = vector.extract_strided_slice %552 {offsets = [0, 96], sizes = [8, 32], strides = [1, 1]} : vector<8x128xf32> to vector<8x32xf32>
    %568 = arith.negf %567 : vector<8x32xf32>
    %569 = math.exp %568 : vector<8x32xf32>
    %cst_260 = arith.constant 1.000000e+00 : f32
    %570 = vector.broadcast %cst_260 : f32 to vector<8x32xf32>
    %571 = arith.addf %570, %569 : vector<8x32xf32>
    %572 = arith.divf %570, %571 : vector<8x32xf32>
    %c0_261 = arith.constant 0 : index
    %c0_262 = arith.constant 0 : index
    %573 = vector.load %arg14[%c0_261, %c0_262] : memref<8x32xf32, #tpu.memory_space<vmem>>, vector<8x32xf32>
    %574 = arith.mulf %564, %573 : vector<8x32xf32>
    %575 = arith.mulf %558, %566 : vector<8x32xf32>
    %576 = arith.addf %574, %575 : vector<8x32xf32>
    %577 = math.tanh %576 : vector<8x32xf32>
    %578 = arith.mulf %572, %577 : vector<8x32xf32>
    %c0_263 = arith.constant 0 : index
    %c0_264 = arith.constant 0 : index
    %579 = vector.load %arg14[%c0_263, %c0_264] : memref<8x32xf32, #tpu.memory_space<vmem>>, vector<8x32xf32>
    tpu.vector_store %arg14[%c0_263, %c0_264], %576 {strides = array<i32>} : memref<8x32xf32, #tpu.memory_space<vmem>>, vector<8x32xf32>,
    %c0_265 = arith.constant 0 : index
    %c0_266 = arith.constant 0 : index
    %580 = vector.load %arg13[%c0_265, %c0_266] : memref<8x32xf32, #tpu.memory_space<vmem>>, vector<8x32xf32>
    tpu.vector_store %arg13[%c0_265, %c0_266], %578 {strides = array<i32>} : memref<8x32xf32, #tpu.memory_space<vmem>>, vector<8x32xf32>,
    %c6_i32_267 = arith.constant 6 : i32
    %c8_i32_268 = arith.constant 8 : i32
    %581 = arith.muli %c6_i32_267, %c8_i32_268 : i32
    %582 = tpu.assume_multiple %581, 8 : i32
    %583 = arith.index_cast %582 : i32 to index
    %c0_269 = arith.constant 0 : index
    %584 = vector.load %arg11[%583, %c0_269] : memref<64x128xbf16, #tpu.memory_space<vmem>>, vector<8x128xbf16>
    %585 = arith.extf %584 : vector<8x128xbf16> to vector<8x128xf32>
    %c0_270 = arith.constant 0 : index
    %c0_271 = arith.constant 0 : index
    %586 = vector.load %arg13[%c0_270, %c0_271] : memref<8x32xf32, #tpu.memory_space<vmem>>, vector<8x32xf32>
    %587 = arith.truncf %586 : vector<8x32xf32> to vector<8x32xbf16>
    %c0_272 = arith.constant 0 : index
    %c0_273 = arith.constant 0 : index
    %588 = vector.load %arg6[%c0_272, %c0_273] : memref<32x128xbf16, #tpu.memory_space<vmem>>, vector<32x128xbf16>
    %cst_274 = arith.constant dense<0.000000e+00> : vector<8x128xf32>
    %589 = tpu.matmul %587, %588, %cst_274 {dimension_numbers = #tpu.dot_dimension_numbers<[1], [0], [0], [1], [0, 0, 1, 1], [], []>} : vector<8x32xbf16>, vector<32x128xbf16>, vector<8x128xf32> -> vector<8x128xf32>
    %590 = arith.addf %585, %589 : vector<8x128xf32>
    %591 = vector.extract_strided_slice %590 {offsets = [0, 0], sizes = [8, 32], strides = [1, 1]} : vector<8x128xf32> to vector<8x32xf32>
    %592 = arith.negf %591 : vector<8x32xf32>
    %593 = math.exp %592 : vector<8x32xf32>
    %cst_275 = arith.constant 1.000000e+00 : f32
    %594 = vector.broadcast %cst_275 : f32 to vector<8x32xf32>
    %595 = arith.addf %594, %593 : vector<8x32xf32>
    %596 = arith.divf %594, %595 : vector<8x32xf32>
    %597 = vector.extract_strided_slice %590 {offsets = [0, 32], sizes = [8, 32], strides = [1, 1]} : vector<8x128xf32> to vector<8x32xf32>
    %598 = arith.negf %597 : vector<8x32xf32>
    %599 = math.exp %598 : vector<8x32xf32>
    %cst_276 = arith.constant 1.000000e+00 : f32
    %600 = vector.broadcast %cst_276 : f32 to vector<8x32xf32>
    %601 = arith.addf %600, %599 : vector<8x32xf32>
    %602 = arith.divf %600, %601 : vector<8x32xf32>
    %603 = vector.extract_strided_slice %590 {offsets = [0, 64], sizes = [8, 32], strides = [1, 1]} : vector<8x128xf32> to vector<8x32xf32>
    %604 = math.tanh %603 : vector<8x32xf32>
    %605 = vector.extract_strided_slice %590 {offsets = [0, 96], sizes = [8, 32], strides = [1, 1]} : vector<8x128xf32> to vector<8x32xf32>
    %606 = arith.negf %605 : vector<8x32xf32>
    %607 = math.exp %606 : vector<8x32xf32>
    %cst_277 = arith.constant 1.000000e+00 : f32
    %608 = vector.broadcast %cst_277 : f32 to vector<8x32xf32>
    %609 = arith.addf %608, %607 : vector<8x32xf32>
    %610 = arith.divf %608, %609 : vector<8x32xf32>
    %c0_278 = arith.constant 0 : index
    %c0_279 = arith.constant 0 : index
    %611 = vector.load %arg14[%c0_278, %c0_279] : memref<8x32xf32, #tpu.memory_space<vmem>>, vector<8x32xf32>
    %612 = arith.mulf %602, %611 : vector<8x32xf32>
    %613 = arith.mulf %596, %604 : vector<8x32xf32>
    %614 = arith.addf %612, %613 : vector<8x32xf32>
    %615 = math.tanh %614 : vector<8x32xf32>
    %616 = arith.mulf %610, %615 : vector<8x32xf32>
    %c0_280 = arith.constant 0 : index
    %c0_281 = arith.constant 0 : index
    %617 = vector.load %arg14[%c0_280, %c0_281] : memref<8x32xf32, #tpu.memory_space<vmem>>, vector<8x32xf32>
    tpu.vector_store %arg14[%c0_280, %c0_281], %614 {strides = array<i32>} : memref<8x32xf32, #tpu.memory_space<vmem>>, vector<8x32xf32>,
    %c0_282 = arith.constant 0 : index
    %c0_283 = arith.constant 0 : index
    %618 = vector.load %arg13[%c0_282, %c0_283] : memref<8x32xf32, #tpu.memory_space<vmem>>, vector<8x32xf32>
    tpu.vector_store %arg13[%c0_282, %c0_283], %616 {strides = array<i32>} : memref<8x32xf32, #tpu.memory_space<vmem>>, vector<8x32xf32>,
    %c7_i32_284 = arith.constant 7 : i32
    %c8_i32_285 = arith.constant 8 : i32
    %619 = arith.muli %c7_i32_284, %c8_i32_285 : i32
    %620 = tpu.assume_multiple %619, 8 : i32
    %621 = arith.index_cast %620 : i32 to index
    %c0_286 = arith.constant 0 : index
    %622 = vector.load %arg11[%621, %c0_286] : memref<64x128xbf16, #tpu.memory_space<vmem>>, vector<8x128xbf16>
    %623 = arith.extf %622 : vector<8x128xbf16> to vector<8x128xf32>
    %c0_287 = arith.constant 0 : index
    %c0_288 = arith.constant 0 : index
    %624 = vector.load %arg13[%c0_287, %c0_288] : memref<8x32xf32, #tpu.memory_space<vmem>>, vector<8x32xf32>
    %625 = arith.truncf %624 : vector<8x32xf32> to vector<8x32xbf16>
    %c0_289 = arith.constant 0 : index
    %c0_290 = arith.constant 0 : index
    %626 = vector.load %arg6[%c0_289, %c0_290] : memref<32x128xbf16, #tpu.memory_space<vmem>>, vector<32x128xbf16>
    %cst_291 = arith.constant dense<0.000000e+00> : vector<8x128xf32>
    %627 = tpu.matmul %625, %626, %cst_291 {dimension_numbers = #tpu.dot_dimension_numbers<[1], [0], [0], [1], [0, 0, 1, 1], [], []>} : vector<8x32xbf16>, vector<32x128xbf16>, vector<8x128xf32> -> vector<8x128xf32>
    %628 = arith.addf %623, %627 : vector<8x128xf32>
    %629 = vector.extract_strided_slice %628 {offsets = [0, 0], sizes = [8, 32], strides = [1, 1]} : vector<8x128xf32> to vector<8x32xf32>
    %630 = arith.negf %629 : vector<8x32xf32>
    %631 = math.exp %630 : vector<8x32xf32>
    %cst_292 = arith.constant 1.000000e+00 : f32
    %632 = vector.broadcast %cst_292 : f32 to vector<8x32xf32>
    %633 = arith.addf %632, %631 : vector<8x32xf32>
    %634 = arith.divf %632, %633 : vector<8x32xf32>
    %635 = vector.extract_strided_slice %628 {offsets = [0, 32], sizes = [8, 32], strides = [1, 1]} : vector<8x128xf32> to vector<8x32xf32>
    %636 = arith.negf %635 : vector<8x32xf32>
    %637 = math.exp %636 : vector<8x32xf32>
    %cst_293 = arith.constant 1.000000e+00 : f32
    %638 = vector.broadcast %cst_293 : f32 to vector<8x32xf32>
    %639 = arith.addf %638, %637 : vector<8x32xf32>
    %640 = arith.divf %638, %639 : vector<8x32xf32>
    %641 = vector.extract_strided_slice %628 {offsets = [0, 64], sizes = [8, 32], strides = [1, 1]} : vector<8x128xf32> to vector<8x32xf32>
    %642 = math.tanh %641 : vector<8x32xf32>
    %643 = vector.extract_strided_slice %628 {offsets = [0, 96], sizes = [8, 32], strides = [1, 1]} : vector<8x128xf32> to vector<8x32xf32>
    %644 = arith.negf %643 : vector<8x32xf32>
    %645 = math.exp %644 : vector<8x32xf32>
    %cst_294 = arith.constant 1.000000e+00 : f32
    %646 = vector.broadcast %cst_294 : f32 to vector<8x32xf32>
    %647 = arith.addf %646, %645 : vector<8x32xf32>
    %648 = arith.divf %646, %647 : vector<8x32xf32>
    %c0_295 = arith.constant 0 : index
    %c0_296 = arith.constant 0 : index
    %649 = vector.load %arg14[%c0_295, %c0_296] : memref<8x32xf32, #tpu.memory_space<vmem>>, vector<8x32xf32>
    %650 = arith.mulf %640, %649 : vector<8x32xf32>
    %651 = arith.mulf %634, %642 : vector<8x32xf32>
    %652 = arith.addf %650, %651 : vector<8x32xf32>
    %653 = math.tanh %652 : vector<8x32xf32>
    %654 = arith.mulf %648, %653 : vector<8x32xf32>
    %c0_297 = arith.constant 0 : index
    %c0_298 = arith.constant 0 : index
    %655 = vector.load %arg14[%c0_297, %c0_298] : memref<8x32xf32, #tpu.memory_space<vmem>>, vector<8x32xf32>
    tpu.vector_store %arg14[%c0_297, %c0_298], %652 {strides = array<i32>} : memref<8x32xf32, #tpu.memory_space<vmem>>, vector<8x32xf32>,
    %c0_299 = arith.constant 0 : index
    %c0_300 = arith.constant 0 : index
    %656 = vector.load %arg13[%c0_299, %c0_300] : memref<8x32xf32, #tpu.memory_space<vmem>>, vector<8x32xf32>
    tpu.vector_store %arg13[%c0_299, %c0_300], %654 {strides = array<i32>} : memref<8x32xf32, #tpu.memory_space<vmem>>, vector<8x32xf32>,
    %c8_i32_301 = arith.constant 8 : i32
    %c0_302 = arith.constant 0 : index
    %c0_303 = arith.constant 0 : index
    %657 = vector.load %arg13[%c0_302, %c0_303] : memref<8x32xf32, #tpu.memory_space<vmem>>, vector<8x32xf32>
    %658 = arith.truncf %657 : vector<8x32xf32> to vector<8x32xbf16>
    %c0_304 = arith.constant 0 : index
    %c0_305 = arith.constant 0 : index
    %659 = vector.load %arg8[%c0_304, %c0_305] : memref<32x128xbf16, #tpu.memory_space<vmem>>, vector<32x128xbf16>
    %cst_306 = arith.constant dense<0.000000e+00> : vector<8x128xf32>
    %660 = tpu.matmul %658, %659, %cst_306 {dimension_numbers = #tpu.dot_dimension_numbers<[1], [0], [0], [1], [0, 0, 1, 1], [], []>} : vector<8x32xbf16>, vector<32x128xbf16>, vector<8x128xf32> -> vector<8x128xf32>
    %c0_307 = arith.constant 0 : index
    %c0_308 = arith.constant 0 : index
    %661 = vector.load %arg9[%c0_307, %c0_308] : memref<1x128xf32, #tpu.memory_space<vmem>>, vector<1x128xf32>
    %662 = vector.broadcast %661 : vector<1x128xf32> to vector<8x128xf32>
    %663 = arith.addf %660, %662 : vector<8x128xf32>
    %c0_309 = arith.constant 0 : index
    %c0_310 = arith.constant 0 : index
    %664 = vector.load %arg10[%c0_309, %c0_310] : memref<8x128xf32, #tpu.memory_space<vmem>>, vector<8x128xf32>
    tpu.vector_store %arg10[%c0_309, %c0_310], %663 {strides = array<i32>} : memref<8x128xf32, #tpu.memory_space<vmem>>, vector<8x128xf32>,
    return
  }
  func.func @transform_0(%arg0: i32) -> (i32, i32, i32) {
    %c0_i32 = arith.constant 0 : i32
    %c0_i32_0 = arith.constant 0 : i32
    %c0_i32_1 = arith.constant 0 : i32
    return %arg0, %c0_i32, %c0_i32_0 : i32, i32, i32
  }
  func.func @transform_1(%arg0: i32) -> (i32, i32) {
    %c0_i32 = arith.constant 0 : i32
    %c0_i32_0 = arith.constant 0 : i32
    %c0_i32_1 = arith.constant 0 : i32
    return %c0_i32, %c0_i32_0 : i32, i32
  }
  func.func @transform_2(%arg0: i32) -> (i32, i32) {
    %c0_i32 = arith.constant 0 : i32
    %c0_i32_0 = arith.constant 0 : i32
    %c0_i32_1 = arith.constant 0 : i32
    return %c0_i32, %c0_i32_0 : i32, i32
  }
  func.func @transform_3(%arg0: i32) -> (i32, i32) {
    %c0_i32 = arith.constant 0 : i32
    %c0_i32_0 = arith.constant 0 : i32
    %c0_i32_1 = arith.constant 0 : i32
    return %c0_i32, %c0_i32_0 : i32, i32
  }
  func.func @transform_4(%arg0: i32) -> (i32, i32) {
    %c0_i32 = arith.constant 0 : i32
    %c0_i32_0 = arith.constant 0 : i32
    %c0_i32_1 = arith.constant 0 : i32
    return %c0_i32, %c0_i32_0 : i32, i32
  }
  func.func @transform_5(%arg0: i32) -> (i32, i32) {
    %c0_i32 = arith.constant 0 : i32
    %c0_i32_0 = arith.constant 0 : i32
    %c0_i32_1 = arith.constant 0 : i32
    return %c0_i32, %c0_i32_0 : i32, i32
  }
  func.func @transform_6(%arg0: i32) -> (i32, i32) {
    %c0_i32 = arith.constant 0 : i32
    %c0_i32_0 = arith.constant 0 : i32
    %c0_i32_1 = arith.constant 0 : i32
    return %c0_i32, %c0_i32_0 : i32, i32
  }
  func.func @transform_7(%arg0: i32) -> (i32, i32) {
    %c0_i32 = arith.constant 0 : i32
    %c0_i32_0 = arith.constant 0 : i32
    %c0_i32_1 = arith.constant 0 : i32
    return %c0_i32, %c0_i32_0 : i32, i32
  }
  func.func @transform_8(%arg0: i32) -> (i32, i32) {
    %c0_i32 = arith.constant 0 : i32
    %c0_i32_0 = arith.constant 0 : i32
    %c0_i32_1 = arith.constant 0 : i32
    return %c0_i32, %c0_i32_0 : i32, i32
  }
  func.func @transform_9(%arg0: i32) -> (i32, i32) {
    %c0_i32 = arith.constant 0 : i32
    %c0_i32_0 = arith.constant 0 : i32
    return %arg0, %c0_i32 : i32, i32
  }
}

</mosaic_0001>

<bundles_post_ra>
// kernel: forward.1
= control target key start
LH: loop header
LB: loop body
LE: loop exit
PB: predicated region body
PF: predicated region fallthrough
CT: control target
= control target key end

     0   :  { %vm178_vm0 = vcmask 261120   ;;  %v2296_v2 = vmov 0.0   ;;  %s2298_s12 = smov 32   ;;  %s2743_s1 = inlined_call_operand.vmem [shape: bf16[128,128], index: 1, kind: input, shape index: {}]   ;;  %s2744_s2 = inlined_call_operand.vmem [shape: bf16[32,128], index: 2, kind: input, shape index: {}]   ;;  %s2745_s3 = inlined_call_operand.vmem [shape: f32[1,128], index: 3, kind: input, shape index: {}]   ;;  %s2746_s0 = inlined_call_operand.vmem [shape: bf16[1,64,128], index: 0, kind: input, shape index: {}]   ;;  %s2747_s4 = inlined_call_operand.vmem [shape: bf16[32,128], index: 4, kind: input, shape index: {}]   ;;  %s2748_s6 = inlined_call_operand.vmem [shape: f32[1,128], index: 6, kind: input, shape index: {}]   ;;  %s2749_s5 = inlined_call_operand.vmem [shape: bf16[32,128], index: 5, kind: input, shape index: {}]   ;;  %s2750_s7 = inlined_call_operand.vmem [shape: bf16[32,128], index: 7, kind: input, shape index: {}]   ;;  %s2751_s8 = inlined_call_operand.vmem [shape: f32[1,128], index: 8, kind: input, shape index: {}]   ;;  %s2752_s9 = inlined_call_operand.vmem [shape: f32[8,128], index: 9, kind: output, shape index: {}]  }
   0x1   :  { %v2074_v0 = vld [vmem:[%s2743_s1 + $0x38] sm:$0xff]  ;;  %v2073_v1 = vld [vmem:[%s2743_s1 + $0x30] sm:$0xff]  ;;  %179 = vst.msk [vmem:[#allocation4] sm:$0xff] %vm178_vm0, %v2296_v2  ;;  %v2076_v3 = vld [vmem:[%s2744_s2 + $0x8] sm:$0xff] }
   0x2   :  { %133 = vmatpush.bf16.msra.mxu0 %v2074_v0  ;;  %180 = vst.msk [vmem:[#allocation5] sm:$0xff] %vm178_vm0, %v2296_v2  ;;  %210 = vmatpush.bf16.msra.mxu1 %v2076_v3  ;;  %v2075_v4 = vld [vmem:[%s2744_s2] sm:$0xff]  ;;  %v2072_v5 = vld [vmem:[%s2743_s1 + $0x28] sm:$0xff]  ;;  %v2070_v9 = vld [vmem:[%s2743_s1 + $0x18] sm:$0xff] }
   0x3   :  { %v2071_v7 = vld [vmem:[%s2743_s1 + $0x20] sm:$0xff]  ;;  %v2069_v10 = vld [vmem:[%s2743_s1 + $0x10] sm:$0xff]  ;;  %v2068_v11 = vld [vmem:[%s2743_s1 + $0x8] sm:$0xff] }
   0x4   :  { %v2067_v12 = vld [vmem:[%s2743_s1] sm:$0xff]  ;;  %s2297_s1 = smov 64   ;;  %v2078_v49 = vld [vmem:[%s2744_s2 + $0x8] sm:$0xff] }
   0x5   :  { %v2063_v13 = vld [vmem:[%s2746_s0] sm:$0xff]  ;;  %307 = vmatpush.bf16.msra.mxu2 %v2078_v49 }
   0x6   :  { %134 = vmatpush.bf16.msra.mxu0 %v2073_v1  ;;  %211 = vmatpush.bf16.msra.mxu1 %v2075_v4  ;;  %v2391_v17 = vld [vmem:[%s2745_s3] ss:$0 sm:$0xff]  ;;  %s2299_s3 = smov 96  }
   0x7   :  { %v2077_v50 = vld [vmem:[%s2744_s2] sm:$0xff] }
   0x8   :  { %v183_v6 = vld [vmem:[#allocation4] sm:$0xff] }
   0x9   :  { %v184_v8 = vpack.c.bf16 %v183_v6, %v183_v6  ;;  %v238_v26 = vld [vmem:[#allocation5] sm:$0xff]  ;;  %308 = vmatpush.bf16.msra.mxu2 %v2077_v50 }
   0xa   :  { %135 = vmatpush.bf16.msra.mxu0 %v2072_v5 }
   0xb   :  { %1874 = vmatmul.msk.bf16.vlgmr.msra.gmra.mxu1 %vm178_vm0, %v184_v8 }
   0xe   :  { %136 = vmatpush.bf16.msra.mxu0 %v2071_v7 }
  0x12   :  { %137 = vmatpush.bf16.msra.mxu0 %v2070_v9 }
  0x16   :  { %138 = vmatpush.bf16.msra.mxu0 %v2069_v10 }
  0x1a   :  { %139 = vmatpush.bf16.msra.mxu0 %v2068_v11 }
  0x1e   :  { %140 = vmatpush.bf16.msra.mxu0 %v2067_v12 }
  0x21   :  { %141 = vmatmul.bf16.vlgmr.msra.gmra.mxu0 %v2063_v13 }
  0x88   :  { %v213_v14 = vpop.f32.mrf.mxu1 }
  0x90   :  { %v215_v15 = vpop.f32.mrf.mxu1 }
  0x9e   :  { %v142_v16 = vpop.f32.mrf.mxu0 }
  0x9f   :  { %v143_v19 = vadd.f32 %v2391_v17, %v142_v16 }
  0xa6   :  { %v144_v18 = vpop.f32.mrf.mxu0 }
  0xa7   :  { %v145_v20 = vadd.f32 %v2391_v17, %v144_v18 }
  0xa9   :  { %v2118_v21 = vpack.c.bf16 %v145_v20, %v143_v19  ;;  %v2064_v20 = vld [vmem:[%s2746_s0 + $0x8] sm:$0xff] }
  0xaa   :  { %146 = vmatmul.bf16.gmra.mxu0 %v2064_v20 }
  0xab   :  { %2119 = vst [vmem:[#allocation2] sm:$0xff] %v2118_v21  }
  0xb2   :  { %v181_v22 = vld [vmem:[#allocation2] sm:$0xff]  }
  0xb3   :  { %v182_v23 = vunpack.c.l.bf16 %v181_v22  ;;  %v279_v56 = vunpack.c.h.bf16 %v181_v22 }
  0xb5   :  { %v217_v24 = vadd.f32 %v213_v14, %v182_v23 }
  0xb7   :  { %2168 = vtanh.f32 %v217_v24  ;;  %v1875_v27 = vmul.f32 -1.442695, %v217_v24  ;;  %v2080_v24 = vld [vmem:[%s2744_s2 + $0x8] sm:$0xff] }
  0xb8   :  { %404 = vmatpush.bf16.msra.mxu3 %v2080_v24 }
  0xb9   :  { %2170 = vpow2.f32 %v1875_v27 }
  0xbd   :  { %v2169_v25 = vpop.eup %2168 }
  0xbe   :  { %245 = vrot.lane.b32.xlu0 %v2169_v25, %s2297_s1  ;;  %v2079_v25 = vld [vmem:[%s2744_s2] sm:$0xff] }
  0xbf   :  { %v2171_v28 = vpop.eup %2170  ;;  %405 = vmatpush.bf16.msra.mxu3 %v2079_v25 }
  0xc0   :  { %v221_v29 = vadd.f32 1.0, %v2171_v28 }
  0xc2   :  { %2172 = vrcp.f32 %v221_v29  ;;  %v233_v35 = vand.u32 2147483648, %v221_v29  ;;  %vm227_vm2 = vweird.f32 %v221_v29  ;;  %v231_v36 = vand.u32 2147483647, %v221_v29 }
  0xc4   :  { %v234_v38 = vor.u32 1.1754944e-38, %v233_v35  ;;  %vm232_vm4 = vcmp.eq.f32.partialorder %v231_v36, 8.507059e+37 }
  0xc6   :  { %240 = vrot.lane.b32.xlu0 %v238_v26, %s2298_s12 }
  0xc8   :  { %v2173_v30 = vpop.eup %2172 }
  0xc9   :  { %v223_v31 = vmul.f32 %v2173_v30, %v221_v29  ;;  %vm228_vm1 = vweird.f32 %v2173_v30 }
  0xca   :  { %vm229_vm3 = vmor %vm227_vm2, %vm228_vm1 }
  0xcb   :  { %v224_v32 = vsub.f32 1.0, %v223_v31 }
  0xcd   :  { %v225_v33 = vmul.f32 %v2173_v30, %v224_v32 }
  0xcf   :  { %v226_v34 = vadd.f32 %v2173_v30, %v225_v33 }
  0xd1   :  { %v230_v37 = vsel %vm229_vm3, %v2173_v30, %v226_v34 }
  0xd2   :  { %v235_v40 = vsel %vm232_vm4, %v234_v38, %v230_v37 }
 0x127   :  { %v147_v26 = vpop.f32.mrf.mxu0 }
 0x128   :  { %v148_v27 = vadd.f32 %v2391_v17, %v147_v26 }
 0x12f   :  { %v149_v28 = vpop.f32.mrf.mxu0 }
 0x130   :  { %v246_v39 = vpop.permute.xlu0 %245  ;;  %v150_v29 = vadd.f32 %v2391_v17, %v149_v28 }
 0x131   :  { %v248_v41 = vmul.f32 %v246_v39, %v235_v40 }
 0x132   :  { %v2123_v31 = vpack.c.bf16 %v150_v29, %v148_v27 }
 0x133   :  { %250 = vrot.lane.b32.xlu1 %v248_v41, %s2298_s12 }
 0x134   :  { %2155 = vst [vmem:[#allocation2 + $0x8] sm:$0xff] %v2123_v31  }
 0x138   :  { %v241_v42 = vpop.permute.xlu0 %240 }
 0x139   :  { %v243_v43 = vmul.f32 %v241_v42, %v235_v40 }
 0x13b   :  { %v375_v34 = vld [vmem:[#allocation2 + $0x8] sm:$0xff]  }
 0x13c   :  { %v376_v35 = vunpack.c.l.bf16 %v375_v34 }
 0x1a5   :  { %v251_v44 = vpop.permute.xlu1 %250 }
 0x1a6   :  { %v253_v45 = vadd.f32 %v251_v44, %v243_v43 }
 0x1a8   :  { %2174 = vtanh.f32 %v253_v45 }
 0x1ae   :  { %v2175_v46 = vpop.eup %2174 }
 0x1af   :  { %256 = vrot.lane.b32.xlu1 %v2175_v46, %s2297_s1 }
 0x221   :  { %v257_v47 = vpop.permute.xlu1 %256 }
 0x222   :  { %v2399_v48 = vmul.f32 %v257_v47, %v235_v40 }
 0x224   :  { %266 = vrot.lane.b32.xlu2 %v2399_v48, %s2298_s12 }
 0x22c   :  { %261 = vrot.lane.b32.xlu2 %v253_v45, %s2299_s3 }
 0x27e   :  { %v267_v51 = vpop.permute.xlu2 %266 }
 0x27f   :  { %269 = vst.msk [vmem:[#allocation4] sm:$0xff] %vm178_vm0, %v267_v51 }
 0x286   :  { %v262_v52 = vpop.permute.xlu2 %261  ;;  %v280_v53 = vld [vmem:[#allocation4] sm:$0xff] }
 0x287   :  { %264 = vst.msk [vmem:[#allocation5] sm:$0xff] %vm178_vm0, %v262_v52  ;;  %v281_v54 = vpack.c.bf16 %v280_v53, %v280_v53 }
 0x289   :  { %1884 = vmatmul.msk.bf16.vlgmr.msra.gmra.mxu2 %vm178_vm0, %v281_v54 }
 0x28e   :  { %v335_v55 = vld [vmem:[#allocation5] sm:$0xff] }
 0x28f   :  { %337 = vrot.lane.b32.xlu1 %v335_v55, %s2298_s12 }
 0x301   :  { %v338_v13 = vpop.permute.xlu1 %337 }
 0x30c   :  { %v310_v57 = vpop.f32.mrf.mxu2 }
 0x30d   :  { %v314_v58 = vadd.f32 %v310_v57, %v279_v56 }
 0x30f   :  { %2176 = vtanh.f32 %v314_v58  ;;  %v1885_v61 = vmul.f32 -1.442695, %v314_v58 }
 0x311   :  { %2178 = vpow2.f32 %v1885_v61 }
 0x314   :  { %v312_v59 = vpop.f32.mrf.mxu2 }
 0x315   :  { %v2177_v60 = vpop.eup %2176 }
 0x316   :  { %342 = vrot.lane.b32.xlu0 %v2177_v60, %s2297_s1 }
 0x317   :  { %v2179_v62 = vpop.eup %2178 }
 0x318   :  { %v318_v63 = vadd.f32 1.0, %v2179_v62  ;;  %v2082_v62 = vld [vmem:[%s2744_s2 + $0x8] sm:$0xff] }
 0x319   :  { %501 = vmatpush.bf16.msrb.mxu1 %v2082_v62 }
 0x31a   :  { %2180 = vrcp.f32 %v318_v63  ;;  %v330_v6 = vand.u32 2147483648, %v318_v63  ;;  %vm324_vm6 = vweird.f32 %v318_v63  ;;  %v328_v7 = vand.u32 2147483647, %v318_v63 }
 0x31c   :  { %v331_v9 = vor.u32 1.1754944e-38, %v330_v6  ;;  %vm329_vm8 = vcmp.eq.f32.partialorder %v328_v7, 8.507059e+37  ;;  %v473_v7 = vunpack.c.h.bf16 %v375_v34 }
 0x320   :  { %v2181_v0 = vpop.eup %2180 }
 0x321   :  { %v320_v1 = vmul.f32 %v2181_v0, %v318_v63  ;;  %vm325_vm5 = vweird.f32 %v2181_v0 }
 0x322   :  { %vm326_vm7 = vmor %vm324_vm6, %vm325_vm5 }
 0x323   :  { %v321_v3 = vsub.f32 1.0, %v320_v1 }
 0x325   :  { %v322_v4 = vmul.f32 %v2181_v0, %v321_v3  ;;  %v2081_v3 = vld [vmem:[%s2744_s2] sm:$0xff] }
 0x326   :  { %502 = vmatpush.bf16.msrb.mxu1 %v2081_v3 }
 0x327   :  { %v323_v5 = vadd.f32 %v2181_v0, %v322_v4 }
 0x329   :  { %v327_v8 = vsel %vm326_vm7, %v2181_v0, %v323_v5 }
 0x32a   :  { %v332_v11 = vsel %vm329_vm8, %v331_v9, %v327_v8 }
 0x32b   :  { %v340_v14 = vmul.f32 %v338_v13, %v332_v11 }
 0x388   :  { %v343_v10 = vpop.permute.xlu0 %342 }
 0x389   :  { %v345_v12 = vmul.f32 %v343_v10, %v332_v11 }
 0x38b   :  { %347 = vrot.lane.b32.xlu2 %v345_v12, %s2298_s12 }
 0x3e5   :  { %v348_v15 = vpop.permute.xlu2 %347 }
 0x3e6   :  { %v350_v16 = vadd.f32 %v348_v15, %v340_v14 }
 0x3e8   :  { %2182 = vtanh.f32 %v350_v16  ;;  %358 = vrot.lane.b32.xlu2 %v350_v16, %s2299_s3 }
 0x3ee   :  { %v2183_v18 = vpop.eup %2182 }
 0x3ef   :  { %353 = vrot.lane.b32.xlu0 %v2183_v18, %s2297_s1 }
 0x442   :  { %v359_v19 = vpop.permute.xlu2 %358 }
 0x443   :  { %361 = vst.msk [vmem:[#allocation5] sm:$0xff] %vm178_vm0, %v359_v19 }
 0x44a   :  { %v432_v23 = vld [vmem:[#allocation5] sm:$0xff] }
 0x461   :  { %v354_v21 = vpop.permute.xlu0 %353 }
 0x462   :  { %v2422_v22 = vmul.f32 %v354_v21, %v332_v11 }
 0x464   :  { %363 = vrot.lane.b32.xlu1 %v2422_v22, %s2298_s12 }
 0x46c   :  { %434 = vrot.lane.b32.xlu1 %v432_v23, %s2298_s12 }
 0x4d6   :  { %v364_v30 = vpop.permute.xlu1 %363 }
 0x4d7   :  { %366 = vst.msk [vmem:[#allocation4] sm:$0xff] %vm178_vm0, %v364_v30 }
 0x4de   :  { %v377_v32 = vld [vmem:[#allocation4] sm:$0xff]  ;;  %v435_v56 = vpop.permute.xlu1 %434 }
 0x4df   :  { %v378_v33 = vpack.c.bf16 %v377_v32, %v377_v32 }
 0x4e1   :  { %1894 = vmatmul.msk.bf16.vlgmr.msra.gmra.mxu3 %vm178_vm0, %v378_v33 }
 0x564   :  { %v407_v36 = vpop.f32.mrf.mxu3 }
 0x565   :  { %v411_v37 = vadd.f32 %v407_v36, %v376_v35  ;;  %v2065_v35 = vld [vmem:[%s2746_s0 + $0x10] sm:$0xff]  ;;  %v2084_v36 = vld [vmem:[%s2744_s2 + $0x8] sm:$0xff] }
 0x566   :  { %151 = vmatmul.bf16.gmra.mxu0 %v2065_v35  ;;  %598 = vmatpush.bf16.msrb.mxu2 %v2084_v36 }
 0x567   :  { %2184 = vtanh.f32 %v411_v37  ;;  %v1895_v40 = vmul.f32 -1.442695, %v411_v37 }
 0x569   :  { %2186 = vpow2.f32 %v1895_v40  ;;  %v2083_v40 = vld [vmem:[%s2744_s2] sm:$0xff] }
 0x56a   :  { %599 = vmatpush.bf16.msrb.mxu2 %v2083_v40 }
 0x56c   :  { %v409_v38 = vpop.f32.mrf.mxu3 }
 0x56d   :  { %v2185_v39 = vpop.eup %2184 }
 0x56e   :  { %439 = vrot.lane.b32.xlu0 %v2185_v39, %s2297_s1 }
 0x56f   :  { %v2187_v41 = vpop.eup %2186 }
 0x570   :  { %v415_v42 = vadd.f32 1.0, %v2187_v41 }
 0x572   :  { %2188 = vrcp.f32 %v415_v42  ;;  %v427_v49 = vand.u32 2147483648, %v415_v42  ;;  %vm421_vm10 = vweird.f32 %v415_v42  ;;  %v425_v50 = vand.u32 2147483647, %v415_v42 }
 0x574   :  { %v428_v52 = vor.u32 1.1754944e-38, %v427_v49  ;;  %vm426_vm12 = vcmp.eq.f32.partialorder %v425_v50, 8.507059e+37 }
 0x578   :  { %v2189_v43 = vpop.eup %2188 }
 0x579   :  { %v417_v44 = vmul.f32 %v2189_v43, %v415_v42  ;;  %vm422_vm9 = vweird.f32 %v2189_v43 }
 0x57a   :  { %vm423_vm11 = vmor %vm421_vm10, %vm422_vm9 }
 0x57b   :  { %v418_v45 = vsub.f32 1.0, %v417_v44 }
 0x57d   :  { %v419_v46 = vmul.f32 %v2189_v43, %v418_v45 }
 0x57f   :  { %v420_v47 = vadd.f32 %v2189_v43, %v419_v46 }
 0x581   :  { %v424_v51 = vsel %vm423_vm11, %v2189_v43, %v420_v47 }
 0x582   :  { %v429_v54 = vsel %vm426_vm12, %v428_v52, %v424_v51 }
 0x583   :  { %v437_v57 = vmul.f32 %v435_v56, %v429_v54 }
 0x5e0   :  { %v440_v53 = vpop.permute.xlu0 %439 }
 0x5e1   :  { %v442_v55 = vmul.f32 %v440_v53, %v429_v54 }
 0x5e3   :  { %444 = vrot.lane.b32.xlu2 %v442_v55, %s2298_s12  ;;  %v152_v41 = vpop.f32.mrf.mxu0 }
 0x5e4   :  { %v153_v42 = vadd.f32 %v2391_v17, %v152_v41 }
 0x5eb   :  { %v154_v43 = vpop.f32.mrf.mxu0 }
 0x5ec   :  { %v155_v44 = vadd.f32 %v2391_v17, %v154_v43 }
 0x5ee   :  { %v2128_v46 = vpack.c.bf16 %v155_v44, %v153_v42 }
 0x5f0   :  { %2156 = vst [vmem:[#allocation2 + $0x10] sm:$0xff] %v2128_v46  }
 0x5f7   :  { %v569_v50 = vld [vmem:[#allocation2 + $0x10] sm:$0xff]  }
 0x5f8   :  { %v570_v51 = vunpack.c.l.bf16 %v569_v50 }
 0x63d   :  { %v445_v58 = vpop.permute.xlu2 %444 }
 0x63e   :  { %v447_v59 = vadd.f32 %v445_v58, %v437_v57 }
 0x640   :  { %2190 = vtanh.f32 %v447_v59  ;;  %455 = vrot.lane.b32.xlu2 %v447_v59, %s2299_s3 }
 0x646   :  { %v2191_v60 = vpop.eup %2190 }
 0x647   :  { %450 = vrot.lane.b32.xlu0 %v2191_v60, %s2297_s1 }
 0x69a   :  { %v456_v61 = vpop.permute.xlu2 %455 }
 0x69b   :  { %458 = vst.msk [vmem:[#allocation5] sm:$0xff] %vm178_vm0, %v456_v61 }
 0x6a2   :  { %v529_v1 = vld [vmem:[#allocation5] sm:$0xff] }
 0x6b9   :  { %v451_v63 = vpop.permute.xlu0 %450 }
 0x6ba   :  { %v2445_v0 = vmul.f32 %v451_v63, %v429_v54 }
 0x6bc   :  { %460 = vrot.lane.b32.xlu1 %v2445_v0, %s2298_s12 }
 0x6c4   :  { %531 = vrot.lane.b32.xlu1 %v529_v1, %s2298_s12 }
 0x72e   :  { %v461_v4 = vpop.permute.xlu1 %460 }
 0x72f   :  { %463 = vst.msk [vmem:[#allocation4] sm:$0xff] %vm178_vm0, %v461_v4 }
 0x736   :  { %v474_v5 = vld [vmem:[#allocation4] sm:$0xff]  ;;  %v532_v29 = vpop.permute.xlu1 %531 }
 0x737   :  { %v475_v6 = vpack.c.bf16 %v474_v5, %v474_v5 }
 0x739   :  { %1904 = vmatmul.msk.bf16.vlgmr.msrb.gmra.mxu1 %vm178_vm0, %v475_v6 }
 0x7b6   :  { %v504_v8 = vpop.f32.mrf.mxu1 }
 0x7b7   :  { %v508_v9 = vadd.f32 %v504_v8, %v473_v7 }
 0x7b9   :  { %2192 = vtanh.f32 %v508_v9  ;;  %v1905_v12 = vmul.f32 -1.442695, %v508_v9 }
 0x7bb   :  { %2194 = vpow2.f32 %v1905_v12 }
 0x7be   :  { %v506_v10 = vpop.f32.mrf.mxu1 }
 0x7bf   :  { %v2193_v11 = vpop.eup %2192 }
 0x7c0   :  { %536 = vrot.lane.b32.xlu0 %v2193_v11, %s2297_s1 }
 0x7c1   :  { %v2195_v13 = vpop.eup %2194 }
 0x7c2   :  { %v512_v14 = vadd.f32 1.0, %v2195_v13 }
 0x7c4   :  { %2196 = vrcp.f32 %v512_v14  ;;  %v524_v21 = vand.u32 2147483648, %v512_v14  ;;  %vm518_vm14 = vweird.f32 %v512_v14  ;;  %v522_v23 = vand.u32 2147483647, %v512_v14 }
 0x7c6   :  { %v525_v25 = vor.u32 1.1754944e-38, %v524_v21  ;;  %vm523_vm1 = vcmp.eq.f32.partialorder %v522_v23, 8.507059e+37 }
 0x7ca   :  { %v2197_v15 = vpop.eup %2196 }
 0x7cb   :  { %v514_v16 = vmul.f32 %v2197_v15, %v512_v14  ;;  %vm519_vm13 = vweird.f32 %v2197_v15 }
 0x7cc   :  { %vm520_vm15 = vmor %vm518_vm14, %vm519_vm13  ;;  %vm275_vm14 = vcmask 257024  }
 0x7cd   :  { %v515_v18 = vsub.f32 1.0, %v514_v16 }
 0x7cf   :  { %v516_v19 = vmul.f32 %v2197_v15, %v515_v18 }
 0x7d1   :  { %v517_v20 = vadd.f32 %v2197_v15, %v516_v19 }
 0x7d3   :  { %v521_v24 = vsel %vm520_vm15, %v2197_v15, %v517_v20  ;;  %v2086_v15 = vld [vmem:[%s2744_s2 + $0x8] sm:$0xff]  ;;  %v2085_v20 = vld [vmem:[%s2744_s2] sm:$0xff] }
 0x7d4   :  { %v526_v27 = vsel %vm523_vm1, %v525_v25, %v521_v24  ;;  %695 = vmatpush.bf16.msrb.mxu3 %v2086_v15  ;;  %v667_v25 = vunpack.c.h.bf16 %v569_v50 }
 0x7d5   :  { %v534_v30 = vmul.f32 %v532_v29, %v526_v27 }
 0x7d8   :  { %696 = vmatpush.bf16.msrb.mxu3 %v2085_v20 }
 0x832   :  { %v537_v26 = vpop.permute.xlu0 %536 }
 0x833   :  { %v539_v28 = vmul.f32 %v537_v26, %v526_v27 }
 0x835   :  { %541 = vrot.lane.b32.xlu2 %v539_v28, %s2298_s12 }
 0x88f   :  { %v542_v31 = vpop.permute.xlu2 %541 }
 0x890   :  { %v544_v32 = vadd.f32 %v542_v31, %v534_v30 }
 0x892   :  { %2198 = vtanh.f32 %v544_v32  ;;  %552 = vrot.lane.b32.xlu2 %v544_v32, %s2299_s3 }
 0x898   :  { %v2199_v33 = vpop.eup %2198 }
 0x899   :  { %547 = vrot.lane.b32.xlu0 %v2199_v33, %s2297_s1 }
 0x8ec   :  { %v553_v34 = vpop.permute.xlu2 %552 }
 0x8ed   :  { %555 = vst.msk [vmem:[#allocation5] sm:$0xff] %vm178_vm0, %v553_v34 }
 0x8f4   :  { %v626_v39 = vld [vmem:[#allocation5] sm:$0xff] }
 0x90b   :  { %v548_v37 = vpop.permute.xlu0 %547 }
 0x90c   :  { %v2466_v38 = vmul.f32 %v548_v37, %v526_v27 }
 0x90e   :  { %557 = vrot.lane.b32.xlu1 %v2466_v38, %s2298_s12 }
 0x916   :  { %628 = vrot.lane.b32.xlu1 %v626_v39, %s2298_s12 }
 0x980   :  { %v558_v45 = vpop.permute.xlu1 %557 }
 0x981   :  { %560 = vst.msk [vmem:[#allocation4] sm:$0xff] %vm178_vm0, %v558_v45 }
 0x988   :  { %v571_v47 = vld [vmem:[#allocation4] sm:$0xff]  ;;  %v629_v9 = vpop.permute.xlu1 %628 }
 0x989   :  { %v572_v49 = vpack.c.bf16 %v571_v47, %v571_v47 }
 0x98b   :  { %1914 = vmatmul.msk.bf16.vlgmr.msrb.gmra.mxu2 %vm178_vm0, %v572_v49 }
 0xa0e   :  { %v601_v52 = vpop.f32.mrf.mxu2 }
 0xa0f   :  { %v605_v53 = vadd.f32 %v601_v52, %v570_v51 }
 0xa11   :  { %2200 = vtanh.f32 %v605_v53  ;;  %v1915_v56 = vmul.f32 -1.442695, %v605_v53  ;;  %v2066_v53 = vld [vmem:[%s2746_s0 + $0x18] sm:$0xff] }
 0xa12   :  { %156 = vmatmul.bf16.gmra.mxu0 %v2066_v53 }
 0xa13   :  { %2202 = vpow2.f32 %v1915_v56 }
 0xa16   :  { %v603_v54 = vpop.f32.mrf.mxu2 }
 0xa17   :  { %v2201_v55 = vpop.eup %2200  ;;  %v2088_v54 = vld [vmem:[%s2744_s2 + $0x8] sm:$0xff] }
 0xa18   :  { %633 = vrot.lane.b32.xlu0 %v2201_v55, %s2297_s1  ;;  %792 = vmatpush.bf16.msra.mxu1 %v2088_v54 }
 0xa19   :  { %v2203_v57 = vpop.eup %2202 }
 0xa1a   :  { %v609_v58 = vadd.f32 1.0, %v2203_v57 }
 0xa1c   :  { %2204 = vrcp.f32 %v609_v58  ;;  %v621_v1 = vand.u32 2147483648, %v609_v58  ;;  %vm615_vm3 = vweird.f32 %v609_v58  ;;  %v619_v3 = vand.u32 2147483647, %v609_v58 }
 0xa1e   :  { %v622_v5 = vor.u32 1.1754944e-38, %v621_v1  ;;  %vm620_vm5 = vcmp.eq.f32.partialorder %v619_v3, 8.507059e+37 }
 0xa22   :  { %v2205_v59 = vpop.eup %2204 }
 0xa23   :  { %v611_v60 = vmul.f32 %v2205_v59, %v609_v58  ;;  %vm616_vm2 = vweird.f32 %v2205_v59  ;;  %v2087_v58 = vld [vmem:[%s2744_s2] sm:$0xff] }
 0xa24   :  { %vm617_vm4 = vmor %vm615_vm3, %vm616_vm2  ;;  %793 = vmatpush.bf16.msra.mxu1 %v2087_v58 }
 0xa25   :  { %v612_v61 = vsub.f32 1.0, %v611_v60 }
 0xa27   :  { %v613_v62 = vmul.f32 %v2205_v59, %v612_v61 }
 0xa29   :  { %v614_v63 = vadd.f32 %v2205_v59, %v613_v62 }
 0xa2b   :  { %v618_v4 = vsel %vm617_vm4, %v2205_v59, %v614_v63 }
 0xa2c   :  { %v623_v7 = vsel %vm620_vm5, %v622_v5, %v618_v4 }
 0xa2d   :  { %v631_v10 = vmul.f32 %v629_v9, %v623_v7 }
 0xa8a   :  { %v634_v6 = vpop.permute.xlu0 %633 }
 0xa8b   :  { %v636_v8 = vmul.f32 %v634_v6, %v623_v7 }
 0xa8d   :  { %638 = vrot.lane.b32.xlu2 %v636_v8, %s2298_s12 }
 0xa8f   :  { %v157_v59 = vpop.f32.mrf.mxu0 }
 0xa90   :  { %v158_v60 = vadd.f32 %v2391_v17, %v157_v59 }
 0xa97   :  { %v159_v61 = vpop.f32.mrf.mxu0 }
 0xa98   :  { %v160_v62 = vadd.f32 %v2391_v17, %v159_v61 }
 0xa9a   :  { %v2133_v1 = vpack.c.bf16 %v160_v62, %v158_v60 }
 0xa9c   :  { %2157 = vst [vmem:[#allocation2 + $0x18] sm:$0xff] %v2133_v1  }
 0xaa3   :  { %v2519_v5 = vld [vmem:[#allocation2 + $0x18] sm:$0xff]  }
 0xaa4   :  { %v764_v6 = vunpack.c.l.bf16 %v2519_v5 }
 0xae7   :  { %v639_v11 = vpop.permute.xlu2 %638 }
 0xae8   :  { %v641_v12 = vadd.f32 %v639_v11, %v631_v10 }
 0xaea   :  { %2206 = vtanh.f32 %v641_v12  ;;  %649 = vrot.lane.b32.xlu2 %v641_v12, %s2299_s3 }
 0xaf0   :  { %v2207_v13 = vpop.eup %2206 }
 0xaf1   :  { %644 = vrot.lane.b32.xlu0 %v2207_v13, %s2297_s1 }
 0xb44   :  { %v650_v14 = vpop.permute.xlu2 %649 }
 0xb45   :  { %652 = vst.msk [vmem:[#allocation5] sm:$0xff] %vm178_vm0, %v650_v14 }
 0xb4c   :  { %v723_v19 = vld [vmem:[#allocation5] sm:$0xff] }
 0xb63   :  { %v645_v16 = vpop.permute.xlu0 %644 }
 0xb64   :  { %v2486_v18 = vmul.f32 %v645_v16, %v623_v7 }
 0xb66   :  { %654 = vrot.lane.b32.xlu1 %v2486_v18, %s2298_s12 }
 0xb6e   :  { %725 = vrot.lane.b32.xlu1 %v723_v19, %s2298_s12 }
 0xbd8   :  { %v655_v21 = vpop.permute.xlu1 %654 }
 0xbd9   :  { %657 = vst.msk [vmem:[#allocation4] sm:$0xff] %vm178_vm0, %v655_v21 }
 0xbe0   :  { %v668_v23 = vld [vmem:[#allocation4] sm:$0xff]  ;;  %v726_v46 = vpop.permute.xlu1 %725 }
 0xbe1   :  { %v669_v24 = vpack.c.bf16 %v668_v23, %v668_v23 }
 0xbe3   :  { %1924 = vmatmul.msk.bf16.vlgmr.msrb.gmra.mxu3 %vm178_vm0, %v669_v24 }
 0xc66   :  { %v698_v26 = vpop.f32.mrf.mxu3 }
 0xc67   :  { %v702_v27 = vadd.f32 %v698_v26, %v667_v25 }
 0xc69   :  { %2208 = vtanh.f32 %v702_v27  ;;  %v1925_v30 = vmul.f32 -1.442695, %v702_v27 }
 0xc6b   :  { %2210 = vpow2.f32 %v1925_v30 }
 0xc6e   :  { %v700_v28 = vpop.f32.mrf.mxu3 }
 0xc6f   :  { %v2209_v29 = vpop.eup %2208 }
 0xc70   :  { %730 = vrot.lane.b32.xlu0 %v2209_v29, %s2297_s1 }
 0xc71   :  { %v2211_v31 = vpop.eup %2210 }
 0xc72   :  { %v706_v32 = vadd.f32 1.0, %v2211_v31 }
 0xc74   :  { %2212 = vrcp.f32 %v706_v32  ;;  %v718_v39 = vand.u32 2147483648, %v706_v32  ;;  %vm712_vm7 = vweird.f32 %v706_v32  ;;  %v716_v40 = vand.u32 2147483647, %v706_v32 }
 0xc76   :  { %v719_v42 = vor.u32 1.1754944e-38, %v718_v39  ;;  %vm717_vm9 = vcmp.eq.f32.partialorder %v716_v40, 8.507059e+37  ;;  %v270_v39 = vpack.c.bf16 %v2399_v48, %v2399_v48  ;;  %v2089_v40 = vld [vmem:[%s2744_s2] sm:$0xff]  ;;  %v861_v48 = vunpack.c.h.bf16 %v2519_v5 }
 0xc77   :  { %v367_v5 = vpack.c.bf16 %v2422_v22, %v2422_v22 }
 0xc7a   :  { %v2213_v33 = vpop.eup %2212 }
 0xc7b   :  { %v708_v34 = vmul.f32 %v2213_v33, %v706_v32  ;;  %vm713_vm6 = vweird.f32 %v2213_v33 }
 0xc7c   :  { %vm714_vm8 = vmor %vm712_vm7, %vm713_vm6 }
 0xc7d   :  { %v709_v35 = vsub.f32 1.0, %v708_v34  ;;  %v2090_v34 = vld [vmem:[%s2744_s2 + $0x8] sm:$0xff] }
 0xc7e   :  { %889 = vmatpush.bf16.msra.mxu2 %v2090_v34 }
 0xc7f   :  { %v710_v36 = vmul.f32 %v2213_v33, %v709_v35 }
 0xc81   :  { %v711_v37 = vadd.f32 %v2213_v33, %v710_v36 }
 0xc82   :  { %890 = vmatpush.bf16.msra.mxu2 %v2089_v40 }
 0xc83   :  { %v715_v41 = vsel %vm714_vm8, %v2213_v33, %v711_v37 }
 0xc84   :  { %v720_v44 = vsel %vm717_vm9, %v719_v42, %v715_v41 }
 0xc85   :  { %v728_v47 = vmul.f32 %v726_v46, %v720_v44 }
 0xce2   :  { %v731_v43 = vpop.permute.xlu0 %730 }
 0xce3   :  { %v733_v45 = vmul.f32 %v731_v43, %v720_v44 }
 0xce5   :  { %735 = vrot.lane.b32.xlu2 %v733_v45, %s2298_s12 }
 0xd3f   :  { %v736_v49 = vpop.permute.xlu2 %735 }
 0xd40   :  { %v738_v50 = vadd.f32 %v736_v49, %v728_v47 }
 0xd42   :  { %2214 = vtanh.f32 %v738_v50  ;;  %746 = vrot.lane.b32.xlu2 %v738_v50, %s2299_s3 }
 0xd48   :  { %v2215_v51 = vpop.eup %2214 }
 0xd49   :  { %741 = vrot.lane.b32.xlu0 %v2215_v51, %s2297_s1 }
 0xd9c   :  { %v747_v52 = vpop.permute.xlu2 %746 }
 0xd9d   :  { %749 = vst.msk [vmem:[#allocation5] sm:$0xff] %vm178_vm0, %v747_v52 }
 0xda4   :  { %v820_v57 = vld [vmem:[#allocation5] sm:$0xff] }
 0xdbb   :  { %v742_v55 = vpop.permute.xlu0 %741 }
 0xdbc   :  { %v2507_v56 = vmul.f32 %v742_v55, %v720_v44 }
 0xdbe   :  { %751 = vrot.lane.b32.xlu1 %v2507_v56, %s2298_s12 }
 0xdc6   :  { %822 = vrot.lane.b32.xlu1 %v820_v57, %s2298_s12 }
 0xe30   :  { %v752_v63 = vpop.permute.xlu1 %751 }
 0xe31   :  { %754 = vst.msk [vmem:[#allocation4] sm:$0xff] %vm178_vm0, %v752_v63 }
 0xe38   :  { %v765_v3 = vld [vmem:[#allocation4] sm:$0xff]  ;;  %v823_v28 = vpop.permute.xlu1 %822 }
 0xe39   :  { %v766_v4 = vpack.c.bf16 %v765_v3, %v765_v3 }
 0xe3b   :  { %1934 = vmatmul.msk.bf16.vlgmr.msra.gmra.mxu1 %vm178_vm0, %v766_v4 }
 0xeb8   :  { %v795_v7 = vpop.f32.mrf.mxu1 }
 0xeb9   :  { %v799_v8 = vadd.f32 %v795_v7, %v764_v6  ;;  %v2096_v6 = vld [vmem:[%s2747_s4 + $0x8] sm:$0xff]  ;;  %v2095_v7 = vld [vmem:[%s2747_s4] sm:$0xff] }
 0xeba   :  { %1022 = vmatpush.bf16.msra.mxu3 %v2096_v6 }
 0xebb   :  { %2216 = vtanh.f32 %v799_v8  ;;  %v1935_v17 = vmul.f32 -1.442695, %v799_v8 }
 0xebd   :  { %2218 = vpow2.f32 %v1935_v17 }
 0xebe   :  { %1023 = vmatpush.bf16.msra.mxu3 %v2095_v7 }
 0xec0   :  { %v797_v9 = vpop.f32.mrf.mxu1 }
 0xec1   :  { %v2217_v10 = vpop.eup %2216 }
 0xec2   :  { %827 = vrot.lane.b32.xlu0 %v2217_v10, %s2297_s1 }
 0xec3   :  { %v2219_v11 = vpop.eup %2218 }
 0xec4   :  { %v803_v12 = vadd.f32 1.0, %v2219_v11 }
 0xec6   :  { %2220 = vrcp.f32 %v803_v12  ;;  %v815_v20 = vand.u32 2147483648, %v803_v12  ;;  %vm809_vm11 = vweird.f32 %v803_v12  ;;  %v813_v21 = vand.u32 2147483647, %v803_v12 }
 0xec8   :  { %v816_v24 = vor.u32 1.1754944e-38, %v815_v20  ;;  %vm814_vm13 = vcmp.eq.f32.partialorder %v813_v21, 8.507059e+37 }
 0xecc   :  { %v2221_v13 = vpop.eup %2220 }
 0xecd   :  { %v805_v14 = vmul.f32 %v2221_v13, %v803_v12  ;;  %vm810_vm10 = vweird.f32 %v2221_v13 }
 0xece   :  { %vm811_vm12 = vmor %vm809_vm11, %vm810_vm10 }
 0xecf   :  { %v806_v15 = vsub.f32 1.0, %v805_v14 }
 0xed1   :  { %v807_v16 = vmul.f32 %v2221_v13, %v806_v15  ;;  %v2098_v15 = vld [vmem:[%s2749_s5 + $0x8] sm:$0xff] }
 0xed2   :  { %1092 = vmatpush.bf16.msrb.mxu1 %v2098_v15 }
 0xed3   :  { %v808_v19 = vadd.f32 %v2221_v13, %v807_v16 }
 0xed5   :  { %v812_v23 = vsel %vm811_vm12, %v2221_v13, %v808_v19  ;;  %v2573_v19 = vld [vmem:[%s2748_s6] ss:$0 sm:$0xff] }
 0xed6   :  { %v817_v26 = vsel %vm814_vm13, %v816_v24, %v812_v23 }
 0xed7   :  { %v825_v29 = vmul.f32 %v823_v28, %v817_v26 }
 0xf34   :  { %v828_v25 = vpop.permute.xlu0 %827 }
 0xf35   :  { %v830_v27 = vmul.f32 %v828_v25, %v817_v26  ;;  %v2097_v25 = vld [vmem:[%s2749_s5] sm:$0xff] }
 0xf36   :  { %1093 = vmatpush.bf16.msrb.mxu1 %v2097_v25 }
 0xf37   :  { %832 = vrot.lane.b32.xlu2 %v830_v27, %s2298_s12 }
 0xf91   :  { %v833_v30 = vpop.permute.xlu2 %832 }
 0xf92   :  { %v835_v31 = vadd.f32 %v833_v30, %v825_v29 }
 0xf94   :  { %2222 = vtanh.f32 %v835_v31  ;;  %843 = vrot.lane.b32.xlu2 %v835_v31, %s2299_s3 }
 0xf9a   :  { %v2223_v32 = vpop.eup %2222 }
 0xf9b   :  { %838 = vrot.lane.b32.xlu0 %v2223_v32, %s2297_s1 }
 0xfee   :  { %v844_v33 = vpop.permute.xlu2 %843 }
 0xfef   :  { %846 = vst.msk [vmem:[#allocation5] sm:$0xff] %vm178_vm0, %v844_v33 }
 0xff6   :  { %v917_v37 = vld [vmem:[#allocation5] sm:$0xff] }
0x100d   :  { %v839_v35 = vpop.permute.xlu0 %838 }
0x100e   :  { %v2530_v36 = vmul.f32 %v839_v35, %v817_v26 }
0x1010   :  { %848 = vrot.lane.b32.xlu1 %v2530_v36, %s2298_s12 }
0x1018   :  { %919 = vrot.lane.b32.xlu1 %v917_v37, %s2298_s12 }
0x1020   :  { %272 = vrot.lane.b32.xlu1 %v270_v39, %s2298_s12 }
0x1082   :  { %v849_v41 = vpop.permute.xlu1 %848 }
0x1083   :  { %851 = vst.msk [vmem:[#allocation4] sm:$0xff] %vm178_vm0, %v849_v41 }
0x108a   :  { %v920_v42 = vpop.permute.xlu1 %919  ;;  %v862_v43 = vld [vmem:[#allocation4] sm:$0xff] }
0x108b   :  { %v863_v44 = vpack.c.bf16 %v862_v43, %v862_v43 }
0x108d   :  { %1944 = vmatmul.msk.bf16.vlgmr.msra.gmra.mxu2 %vm178_vm0, %v863_v44 }
0x1092   :  { %v273_v45 = vpop.permute.xlu1 %272 }
0x1093   :  { %276 = vst.msk [vmem:[#allocation3] sm:$0xf] %vm275_vm14, %v273_v45 }
0x1110   :  { %v892_v46 = vpop.f32.mrf.mxu2 }
0x1111   :  { %v896_v47 = vadd.f32 %v892_v46, %v861_v48 }
0x1113   :  { %2224 = vtanh.f32 %v896_v47  ;;  %v1945_v51 = vmul.f32 -1.442695, %v896_v47 }
0x1115   :  { %2226 = vpow2.f32 %v1945_v51 }
0x1118   :  { %v894_v49 = vpop.f32.mrf.mxu2 }
0x1119   :  { %v2225_v50 = vpop.eup %2224 }
0x111a   :  { %924 = vrot.lane.b32.xlu0 %v2225_v50, %s2297_s1 }
0x111b   :  { %v2227_v52 = vpop.eup %2226 }
0x111c   :  { %v900_v53 = vadd.f32 1.0, %v2227_v52 }
0x111e   :  { %2228 = vrcp.f32 %v900_v53  ;;  %v912_v60 = vand.u32 2147483648, %v900_v53  ;;  %vm906_vm1 = vweird.f32 %v900_v53  ;;  %v910_v61 = vand.u32 2147483647, %v900_v53 }
0x1120   :  { %v913_v63 = vor.u32 1.1754944e-38, %v912_v60  ;;  %vm911_vm3 = vcmp.eq.f32.partialorder %v910_v61, 8.507059e+37  ;;  %v2100_v60 = vld [vmem:[%s2749_s5 + $0x8] sm:$0xff] }
0x1121   :  { %1181 = vmatpush.bf16.msrb.mxu2 %v2100_v60 }
0x1124   :  { %v2229_v54 = vpop.eup %2228 }
0x1125   :  { %v902_v55 = vmul.f32 %v2229_v54, %v900_v53  ;;  %vm907_vm15 = vweird.f32 %v2229_v54 }
0x1126   :  { %vm908_vm2 = vmor %vm906_vm1, %vm907_vm15 }
0x1127   :  { %v903_v57 = vsub.f32 1.0, %v902_v55 }
0x1129   :  { %v904_v58 = vmul.f32 %v2229_v54, %v903_v57 }
0x112b   :  { %v905_v59 = vadd.f32 %v2229_v54, %v904_v58 }
0x112d   :  { %v909_v62 = vsel %vm908_vm2, %v2229_v54, %v905_v59 }
0x112e   :  { %v914_v3 = vsel %vm911_vm3, %v913_v63, %v909_v62  ;;  %v464_v63 = vpack.c.bf16 %v2445_v0, %v2445_v0 }
0x112f   :  { %v922_v8 = vmul.f32 %v920_v42, %v914_v3 }
0x118c   :  { %v925_v1 = vpop.permute.xlu0 %924 }
0x118d   :  { %v927_v4 = vmul.f32 %v925_v1, %v914_v3  ;;  %v2099_v1 = vld [vmem:[%s2749_s5] sm:$0xff] }
0x118e   :  { %1182 = vmatpush.bf16.msrb.mxu2 %v2099_v1 }
0x118f   :  { %929 = vrot.lane.b32.xlu2 %v927_v4, %s2298_s12 }
0x1197   :  { %369 = vrot.lane.b32.xlu2 %v367_v5, %s2298_s12 }
0x11e9   :  { %v930_v9 = vpop.permute.xlu2 %929 }
0x11ea   :  { %v932_v10 = vadd.f32 %v930_v9, %v922_v8 }
0x11ec   :  { %2230 = vtanh.f32 %v932_v10  ;;  %940 = vrot.lane.b32.xlu1 %v932_v10, %s2299_s3 }
0x11f1   :  { %v370_v17 = vpop.permute.xlu2 %369 }
0x11f2   :  { %v2231_v22 = vpop.eup %2230  ;;  %373 = vst.msk [vmem:[#allocation3 + $0x4] sm:$0xf] %vm275_vm14, %v370_v17 }
0x11f3   :  { %935 = vrot.lane.b32.xlu0 %v2231_v22, %s2297_s1 }
0x11f9   :  { %v2091_v11 = vld [vmem:[#allocation3] sm:$0xff] }
0x11fa   :  { %1970 = vmatmul.msk.bf16.vlgmr.msra.gmra.mxu3 %vm178_vm0, %v2091_v11 }
0x125e   :  { %v941_v12 = vpop.permute.xlu1 %940 }
0x125f   :  { %943 = vst.msk [vmem:[#allocation5] sm:$0xff] %vm178_vm0, %v941_v12 }
0x1260   :  { %1062 = vst.msk [vmem:[#allocation5] sm:$0xff] %vm178_vm0, %v2296_v2 }
0x1265   :  { %v936_v13 = vpop.permute.xlu0 %935 }
0x1266   :  { %v2563_v14 = vmul.f32 %v936_v13, %v914_v3 }
0x1267   :  { %v1120_v26 = vld [vmem:[#allocation5] sm:$0xff] }
0x1268   :  { %945 = vrot.lane.b32.xlu0 %v2563_v14, %s2298_s12 }
0x1270   :  { %1122 = vrot.lane.b32.xlu0 %v1120_v26, %s2298_s12 }
0x127d   :  { %v1025_v16 = vpop.f32.mrf.mxu3 }
0x127e   :  { %v1026_v21 = vadd.f32 %v2573_v19, %v1025_v16 }
0x1285   :  { %v1027_v20 = vpop.f32.mrf.mxu3 }
0x1286   :  { %v1028_v23 = vadd.f32 %v2573_v19, %v1027_v20 }
0x1288   :  { %v2138_v24 = vpack.c.bf16 %v1028_v23, %v1026_v21 }
0x128a   :  { %2139 = vst [vmem:[#allocation2] sm:$0xff] %v2138_v24  }
0x1291   :  { %v1063_v30 = vld [vmem:[#allocation2] sm:$0xff]  }
0x1292   :  { %v1064_v31 = vunpack.c.l.bf16 %v1063_v30  ;;  %v1153_v8 = vunpack.c.h.bf16 %v1063_v30  ;;  %v561_v30 = vpack.c.bf16 %v2466_v38, %v2466_v38 }
0x12da   :  { %v946_v27 = vpop.permute.xlu0 %945 }
0x12db   :  { %948 = vst.msk [vmem:[#allocation4] sm:$0xff] %vm178_vm0, %v946_v27 }
0x12dc   :  { %1061 = vst.msk [vmem:[#allocation4] sm:$0xff] %vm178_vm0, %v2296_v2 }
0x12e2   :  { %v1123_v52 = vpop.permute.xlu0 %1122 }
0x12e3   :  { %v1065_v28 = vld [vmem:[#allocation4] sm:$0xff] }
0x12e4   :  { %v1066_v29 = vpack.c.bf16 %v1065_v28, %v1065_v28 }
0x12e6   :  { %1982 = vmatmul.msk.bf16.vlgmr.msrb.gmra.mxu1 %vm178_vm0, %v1066_v29 }
0x1363   :  { %v1095_v32 = vpop.f32.mrf.mxu1 }
0x1364   :  { %v1099_v33 = vadd.f32 %v1095_v32, %v1064_v31 }
0x1366   :  { %2232 = vtanh.f32 %v1099_v33  ;;  %v1983_v37 = vmul.f32 -1.442695, %v1099_v33 }
0x1368   :  { %2234 = vpow2.f32 %v1983_v37 }
0x136b   :  { %v1097_v34 = vpop.f32.mrf.mxu1 }
0x136c   :  { %v2233_v35 = vpop.eup %2232 }
0x136d   :  { %1127 = vrot.lane.b32.xlu2 %v2233_v35, %s2297_s1 }
0x136e   :  { %v2235_v39 = vpop.eup %2234 }
0x136f   :  { %v1103_v40 = vadd.f32 1.0, %v2235_v39 }
0x1371   :  { %2236 = vrcp.f32 %v1103_v40  ;;  %v1115_v45 = vand.u32 2147483648, %v1103_v40  ;;  %vm1109_vm5 = vweird.f32 %v1103_v40  ;;  %v1113_v48 = vand.u32 2147483647, %v1103_v40 }
0x1373   :  { %v1116_v47 = vor.u32 1.1754944e-38, %v1115_v45  ;;  %vm1114_vm7 = vcmp.eq.f32.partialorder %v1113_v48, 8.507059e+37 }
0x1377   :  { %v2237_v41 = vpop.eup %2236 }
0x1378   :  { %v1105_v2 = vmul.f32 %v2237_v41, %v1103_v40  ;;  %vm1110_vm4 = vweird.f32 %v2237_v41 }
0x1379   :  { %vm1111_vm6 = vmor %vm1109_vm5, %vm1110_vm4 }
0x137a   :  { %v1106_v42 = vsub.f32 1.0, %v1105_v2  ;;  %v2102_v2 = vld [vmem:[%s2749_s5 + $0x8] sm:$0xff] }
0x137b   :  { %1270 = vmatpush.bf16.msra.mxu1 %v2102_v2 }
0x137c   :  { %v1107_v43 = vmul.f32 %v2237_v41, %v1106_v42 }
0x137e   :  { %v1108_v44 = vadd.f32 %v2237_v41, %v1107_v43 }
0x1380   :  { %v1112_v46 = vsel %vm1111_vm6, %v2237_v41, %v1108_v44 }
0x1381   :  { %v1117_v49 = vsel %vm1114_vm7, %v1116_v47, %v1112_v46  ;;  %v2101_v46 = vld [vmem:[%s2749_s5] sm:$0xff] }
0x1382   :  { %v1125_v53 = vmul.f32 %v1123_v52, %v1117_v49  ;;  %1271 = vmatpush.bf16.msra.mxu1 %v2101_v46 }
0x13c7   :  { %v1128_v50 = vpop.permute.xlu2 %1127 }
0x13c8   :  { %v1130_v51 = vmul.f32 %v1128_v50, %v1117_v49 }
0x13ca   :  { %1132 = vrot.lane.b32.xlu1 %v1130_v51, %s2298_s12 }
0x143c   :  { %v1133_v54 = vpop.permute.xlu1 %1132 }
0x143d   :  { %v1135_v55 = vadd.f32 %v1133_v54, %v1125_v53 }
0x143f   :  { %2238 = vtanh.f32 %v1135_v55  ;;  %1143 = vrot.lane.b32.xlu1 %v1135_v55, %s2299_s3 }
0x1445   :  { %v2239_v57 = vpop.eup %2238 }
0x1446   :  { %1138 = vrot.lane.b32.xlu2 %v2239_v57, %s2297_s1 }
0x14a0   :  { %v1139_v58 = vpop.permute.xlu2 %1138 }
0x14a1   :  { %v1141_v59 = vmul.f32 %v1139_v58, %v1117_v49 }
0x14a3   :  { %1148 = vrot.lane.b32.xlu0 %v1141_v59, %s2298_s12 }
0x14b1   :  { %v1144_v61 = vpop.permute.xlu1 %1143 }
0x14b2   :  { %1146 = vst.msk [vmem:[#allocation5] sm:$0xff] %vm178_vm0, %v1144_v61 }
0x14b9   :  { %v1209_v62 = vld [vmem:[#allocation5] sm:$0xff] }
0x14ba   :  { %1211 = vrot.lane.b32.xlu0 %v1209_v62, %s2298_s12 }
0x14c2   :  { %466 = vrot.lane.b32.xlu0 %v464_v63, %s2298_s12 }
0x1515   :  { %v1149_v3 = vpop.permute.xlu0 %1148 }
0x1516   :  { %1151 = vst.msk [vmem:[#allocation4] sm:$0xff] %vm178_vm0, %v1149_v3 }
0x151d   :  { %v1154_v4 = vld [vmem:[#allocation4] sm:$0xff] }
0x151e   :  { %v1155_v5 = vpack.c.bf16 %v1154_v4, %v1154_v4 }
0x1520   :  { %1992 = vmatmul.msk.bf16.vlgmr.msrb.gmra.mxu2 %vm178_vm0, %v1155_v5 }
0x152c   :  { %v1212_v6 = vpop.permute.xlu0 %1211 }
0x1534   :  { %v467_v7 = vpop.permute.xlu0 %466 }
0x1535   :  { %470 = vst.msk [vmem:[#allocation3 + $0x8] sm:$0xf] %vm275_vm14, %v467_v7 }
0x15a3   :  { %v1184_v0 = vpop.f32.mrf.mxu2 }
0x15a4   :  { %v1188_v9 = vadd.f32 %v1184_v0, %v1153_v8 }
0x15a6   :  { %2240 = vtanh.f32 %v1188_v9  ;;  %v1993_v22 = vmul.f32 -1.442695, %v1188_v9 }
0x15a8   :  { %2242 = vpow2.f32 %v1993_v22 }
0x15ab   :  { %v1186_v10 = vpop.f32.mrf.mxu2 }
0x15ac   :  { %v2241_v17 = vpop.eup %2240 }
0x15ad   :  { %1216 = vrot.lane.b32.xlu2 %v2241_v17, %s2297_s1 }
0x15ae   :  { %v2243_v11 = vpop.eup %2242 }
0x15af   :  { %v1192_v12 = vadd.f32 1.0, %v2243_v11 }
0x15b1   :  { %2244 = vrcp.f32 %v1192_v12  ;;  %v1204_v23 = vand.u32 2147483648, %v1192_v12  ;;  %vm1198_vm9 = vweird.f32 %v1192_v12  ;;  %v1202_v24 = vand.u32 2147483647, %v1192_v12 }
0x15b3   :  { %v1205_v26 = vor.u32 1.1754944e-38, %v1204_v23  ;;  %vm1203_vm11 = vcmp.eq.f32.partialorder %v1202_v24, 8.507059e+37  ;;  %v658_v23 = vpack.c.bf16 %v2486_v18, %v2486_v18  ;;  %v2103_v24 = vld [vmem:[%s2749_s5] sm:$0xff] }
0x15b7   :  { %v2245_v13 = vpop.eup %2244 }
0x15b8   :  { %v1194_v15 = vmul.f32 %v2245_v13, %v1192_v12  ;;  %vm1199_vm8 = vweird.f32 %v2245_v13 }
0x15b9   :  { %vm1200_vm10 = vmor %vm1198_vm9, %vm1199_vm8 }
0x15ba   :  { %v1195_v16 = vsub.f32 1.0, %v1194_v15 }
0x15bc   :  { %v1196_v20 = vmul.f32 %v2245_v13, %v1195_v16 }
0x15be   :  { %v1197_v21 = vadd.f32 %v2245_v13, %v1196_v20 }
0x15c0   :  { %v1201_v25 = vsel %vm1200_vm10, %v2245_v13, %v1197_v21  ;;  %v2104_v13 = vld [vmem:[%s2749_s5 + $0x8] sm:$0xff] }
0x15c1   :  { %v1206_v28 = vsel %vm1203_vm11, %v1205_v26, %v1201_v25  ;;  %1359 = vmatpush.bf16.msra.mxu2 %v2104_v13 }
0x15c2   :  { %v1214_v31 = vmul.f32 %v1212_v6, %v1206_v28 }
0x15c5   :  { %1360 = vmatpush.bf16.msra.mxu2 %v2103_v24 }
0x1607   :  { %v1217_v27 = vpop.permute.xlu2 %1216 }
0x1608   :  { %v1219_v29 = vmul.f32 %v1217_v27, %v1206_v28 }
0x160a   :  { %1221 = vrot.lane.b32.xlu1 %v1219_v29, %s2298_s12 }
0x1612   :  { %563 = vrot.lane.b32.xlu1 %v561_v30, %s2298_s12 }
0x167c   :  { %v1222_v32 = vpop.permute.xlu1 %1221 }
0x167d   :  { %v1224_v33 = vadd.f32 %v1222_v32, %v1214_v31 }
0x167f   :  { %2246 = vtanh.f32 %v1224_v33  ;;  %1232 = vrot.lane.b32.xlu0 %v1224_v33, %s2299_s3 }
0x1684   :  { %v564_v34 = vpop.permute.xlu1 %563 }
0x1685   :  { %v2247_v35 = vpop.eup %2246  ;;  %567 = vst.msk [vmem:[#allocation3 + $0xc] sm:$0xf] %vm275_vm14, %v564_v34 }
0x1686   :  { %1227 = vrot.lane.b32.xlu2 %v2247_v35, %s2297_s1 }
0x168c   :  { %v2092_v37 = vld [vmem:[#allocation3 + $0x8] sm:$0xff] }
0x168d   :  { %1971 = vmatmul.msk.bf16.gmra.mxu3 %vm178_vm0, %v2092_v37 }
0x16e0   :  { %v1228_v39 = vpop.permute.xlu2 %1227 }
0x16e1   :  { %v1230_v40 = vmul.f32 %v1228_v39, %v1206_v28 }
0x16e3   :  { %1237 = vrot.lane.b32.xlu2 %v1230_v40, %s2298_s12 }
0x16f1   :  { %v1233_v38 = vpop.permute.xlu0 %1232 }
0x16f2   :  { %1235 = vst.msk [vmem:[#allocation5] sm:$0xff] %vm178_vm0, %v1233_v38 }
0x16f9   :  { %v1298_v41 = vld [vmem:[#allocation5] sm:$0xff] }
0x16fa   :  { %1300 = vrot.lane.b32.xlu2 %v1298_v41, %s2298_s12 }
0x1710   :  { %v1030_v42 = vpop.f32.mrf.mxu3 }
0x1711   :  { %v1031_v44 = vadd.f32 %v2573_v19, %v1030_v42 }
0x1718   :  { %v1032_v43 = vpop.f32.mrf.mxu3 }
0x1719   :  { %v1033_v45 = vadd.f32 %v2573_v19, %v1032_v43 }
0x171b   :  { %v2143_v48 = vpack.c.bf16 %v1033_v45, %v1031_v44 }
0x171d   :  { %2158 = vst [vmem:[#allocation2 + $0x8] sm:$0xff] %v2143_v48  }
0x1724   :  { %v1241_v51 = vld [vmem:[#allocation2 + $0x8] sm:$0xff]  }
0x1725   :  { %v1242_v52 = vunpack.c.l.bf16 %v1241_v51  ;;  %v1331_v30 = vunpack.c.h.bf16 %v1241_v51 }
0x173d   :  { %v1238_v47 = vpop.permute.xlu2 %1237 }
0x173e   :  { %1240 = vst.msk [vmem:[#allocation4] sm:$0xff] %vm178_vm0, %v1238_v47 }
0x1745   :  { %v1243_v49 = vld [vmem:[#allocation4] sm:$0xff] }
0x1746   :  { %v1244_v50 = vpack.c.bf16 %v1243_v49, %v1243_v49  ;;  %v755_v49 = vpack.c.bf16 %v2507_v56, %v2507_v56 }
0x1748   :  { %2002 = vmatmul.msk.bf16.vlgmr.msra.gmra.mxu1 %vm178_vm0, %v1244_v50 }
0x1754   :  { %v1301_v10 = vpop.permute.xlu2 %1300 }
0x17c5   :  { %v1273_v53 = vpop.f32.mrf.mxu1 }
0x17c6   :  { %v1277_v54 = vadd.f32 %v1273_v53, %v1242_v52 }
0x17c8   :  { %2248 = vtanh.f32 %v1277_v54  ;;  %v2003_v58 = vmul.f32 -1.442695, %v1277_v54 }
0x17ca   :  { %2250 = vpow2.f32 %v2003_v58 }
0x17cd   :  { %v1275_v55 = vpop.f32.mrf.mxu1 }
0x17ce   :  { %v2249_v57 = vpop.eup %2248 }
0x17cf   :  { %1305 = vrot.lane.b32.xlu1 %v2249_v57, %s2297_s1 }
0x17d0   :  { %v2251_v59 = vpop.eup %2250 }
0x17d1   :  { %v1281_v60 = vadd.f32 1.0, %v2251_v59  ;;  %v2106_v59 = vld [vmem:[%s2749_s5 + $0x8] sm:$0xff] }
0x17d2   :  { %1448 = vmatpush.bf16.msrb.mxu1 %v2106_v59 }
0x17d3   :  { %2252 = vrcp.f32 %v1281_v60  ;;  %v1293_v4 = vand.u32 2147483648, %v1281_v60  ;;  %vm1287_vm13 = vweird.f32 %v1281_v60  ;;  %v1291_v5 = vand.u32 2147483647, %v1281_v60 }
0x17d5   :  { %v1294_v7 = vor.u32 1.1754944e-38, %v1293_v4  ;;  %vm1292_vm1 = vcmp.eq.f32.partialorder %v1291_v5, 8.507059e+37  ;;  %v2105_v4 = vld [vmem:[%s2749_s5] sm:$0xff] }
0x17d6   :  { %1449 = vmatpush.bf16.msrb.mxu1 %v2105_v4  ;;  %v949_v4 = vpack.c.bf16 %v2563_v14, %v2563_v14 }
0x17d9   :  { %v2253_v61 = vpop.eup %2252 }
0x17da   :  { %v1283_v62 = vmul.f32 %v2253_v61, %v1281_v60  ;;  %vm1288_vm12 = vweird.f32 %v2253_v61 }
0x17db   :  { %vm1289_vm15 = vmor %vm1287_vm13, %vm1288_vm12 }
0x17dc   :  { %v1284_v63 = vsub.f32 1.0, %v1283_v62 }
0x17de   :  { %v1285_v1 = vmul.f32 %v2253_v61, %v1284_v63 }
0x17e0   :  { %v1286_v3 = vadd.f32 %v2253_v61, %v1285_v1 }
0x17e2   :  { %v1290_v6 = vsel %vm1289_vm15, %v2253_v61, %v1286_v3 }
0x17e3   :  { %v1295_v0 = vsel %vm1292_vm1, %v1294_v7, %v1290_v6 }
0x17e4   :  { %v1303_v17 = vmul.f32 %v1301_v10, %v1295_v0 }
0x1841   :  { %v1306_v8 = vpop.permute.xlu1 %1305 }
0x1842   :  { %v1308_v9 = vmul.f32 %v1306_v8, %v1295_v0 }
0x1844   :  { %1310 = vrot.lane.b32.xlu0 %v1308_v9, %s2298_s12 }
0x18b6   :  { %v1311_v22 = vpop.permute.xlu0 %1310 }
0x18b7   :  { %v1313_v11 = vadd.f32 %v1311_v22, %v1303_v17 }
0x18b9   :  { %2254 = vtanh.f32 %v1313_v11  ;;  %1321 = vrot.lane.b32.xlu0 %v1313_v11, %s2299_s3 }
0x18bf   :  { %v2255_v12 = vpop.eup %2254 }
0x18c0   :  { %1316 = vrot.lane.b32.xlu1 %v2255_v12, %s2297_s1 }
0x192b   :  { %v1322_v15 = vpop.permute.xlu0 %1321 }
0x192c   :  { %1324 = vst.msk [vmem:[#allocation5] sm:$0xff] %vm178_vm0, %v1322_v15 }
0x1932   :  { %v1317_v16 = vpop.permute.xlu1 %1316 }
0x1933   :  { %v1319_v20 = vmul.f32 %v1317_v16, %v1295_v0  ;;  %v1387_v21 = vld [vmem:[#allocation5] sm:$0xff] }
0x1935   :  { %1326 = vrot.lane.b32.xlu2 %v1319_v20, %s2298_s12 }
0x193d   :  { %1389 = vrot.lane.b32.xlu2 %v1387_v21, %s2298_s12 }
0x1945   :  { %660 = vrot.lane.b32.xlu2 %v658_v23, %s2298_s12 }
0x198f   :  { %v1327_v25 = vpop.permute.xlu2 %1326 }
0x1990   :  { %1329 = vst.msk [vmem:[#allocation4] sm:$0xff] %vm178_vm0, %v1327_v25 }
0x1997   :  { %v1390_v26 = vpop.permute.xlu2 %1389  ;;  %v1332_v27 = vld [vmem:[#allocation4] sm:$0xff] }
0x1998   :  { %v1333_v28 = vpack.c.bf16 %v1332_v27, %v1332_v27 }
0x199a   :  { %2012 = vmatmul.msk.bf16.vlgmr.msra.gmra.mxu2 %vm178_vm0, %v1333_v28 }
0x199f   :  { %v661_v29 = vpop.permute.xlu2 %660 }
0x19a0   :  { %664 = vst.msk [vmem:[#allocation3 + $0x10] sm:$0xf] %vm275_vm14, %v661_v29 }
0x1a1d   :  { %v1362_v18 = vpop.f32.mrf.mxu2 }
0x1a1e   :  { %v1366_v31 = vadd.f32 %v1362_v18, %v1331_v30 }
0x1a20   :  { %2256 = vtanh.f32 %v1366_v31  ;;  %v2013_v34 = vmul.f32 -1.442695, %v1366_v31 }
0x1a22   :  { %2258 = vpow2.f32 %v2013_v34 }
0x1a25   :  { %v1364_v32 = vpop.f32.mrf.mxu2 }
0x1a26   :  { %v2257_v33 = vpop.eup %2256 }
0x1a27   :  { %1394 = vrot.lane.b32.xlu1 %v2257_v33, %s2297_s1 }
0x1a28   :  { %v2259_v35 = vpop.eup %2258 }
0x1a29   :  { %v1370_v37 = vadd.f32 1.0, %v2259_v35 }
0x1a2b   :  { %2260 = vrcp.f32 %v1370_v37  ;;  %v1382_v42 = vand.u32 2147483648, %v1370_v37  ;;  %vm1376_vm3 = vweird.f32 %v1370_v37  ;;  %v1380_v43 = vand.u32 2147483647, %v1370_v37 }
0x1a2d   :  { %v1383_v45 = vor.u32 1.1754944e-38, %v1382_v42  ;;  %vm1381_vm5 = vcmp.eq.f32.partialorder %v1380_v43, 8.507059e+37 }
0x1a31   :  { %v2261_v39 = vpop.eup %2260 }
0x1a32   :  { %v1372_v40 = vmul.f32 %v2261_v39, %v1370_v37  ;;  %vm1377_vm2 = vweird.f32 %v2261_v39  ;;  %v2108_v37 = vld [vmem:[%s2749_s5 + $0x8] sm:$0xff] }
0x1a33   :  { %vm1378_vm4 = vmor %vm1376_vm3, %vm1377_vm2  ;;  %1537 = vmatpush.bf16.msrb.mxu2 %v2108_v37 }
0x1a34   :  { %v1373_v38 = vsub.f32 1.0, %v1372_v40 }
0x1a36   :  { %v1374_v41 = vmul.f32 %v2261_v39, %v1373_v38 }
0x1a38   :  { %v1375_v2 = vadd.f32 %v2261_v39, %v1374_v41  ;;  %v852_v41 = vpack.c.bf16 %v2530_v36, %v2530_v36 }
0x1a3a   :  { %v1379_v44 = vsel %vm1378_vm4, %v2261_v39, %v1375_v2  ;;  %v2107_v2 = vld [vmem:[%s2749_s5] sm:$0xff] }
0x1a3b   :  { %v1384_v46 = vsel %vm1381_vm5, %v1383_v45, %v1379_v44  ;;  %1538 = vmatpush.bf16.msrb.mxu2 %v2107_v2 }
0x1a3c   :  { %v1392_v50 = vmul.f32 %v1390_v26, %v1384_v46 }
0x1a99   :  { %v1395_v48 = vpop.permute.xlu1 %1394 }
0x1a9a   :  { %v1397_v47 = vmul.f32 %v1395_v48, %v1384_v46 }
0x1a9c   :  { %1399 = vrot.lane.b32.xlu0 %v1397_v47, %s2298_s12 }
0x1aa4   :  { %757 = vrot.lane.b32.xlu0 %v755_v49, %s2298_s12 }
0x1b0e   :  { %v1400_v51 = vpop.permute.xlu0 %1399 }
0x1b0f   :  { %v1402_v52 = vadd.f32 %v1400_v51, %v1392_v50 }
0x1b11   :  { %2262 = vtanh.f32 %v1402_v52  ;;  %1410 = vrot.lane.b32.xlu2 %v1402_v52, %s2299_s3 }
0x1b16   :  { %v758_v53 = vpop.permute.xlu0 %757 }
0x1b17   :  { %v2263_v54 = vpop.eup %2262  ;;  %761 = vst.msk [vmem:[#allocation3 + $0x14] sm:$0xf] %vm275_vm14, %v758_v53 }
0x1b18   :  { %1405 = vrot.lane.b32.xlu1 %v2263_v54, %s2297_s1 }
0x1b1e   :  { %v2093_v55 = vld [vmem:[#allocation3 + $0x10] sm:$0xff] }
0x1b1f   :  { %1972 = vmatmul.msk.bf16.gmra.mxu3 %vm178_vm0, %v2093_v55 }
0x1b6b   :  { %v1411_v57 = vpop.permute.xlu2 %1410 }
0x1b6c   :  { %1413 = vst.msk [vmem:[#allocation5] sm:$0xff] %vm178_vm0, %v1411_v57 }
0x1b73   :  { %v1476_v60 = vld [vmem:[#allocation5] sm:$0xff] }
0x1b8a   :  { %v1406_v56 = vpop.permute.xlu1 %1405 }
0x1b8b   :  { %v1408_v58 = vmul.f32 %v1406_v56, %v1384_v46 }
0x1b8d   :  { %1415 = vrot.lane.b32.xlu1 %v1408_v58, %s2298_s12 }
0x1b95   :  { %1478 = vrot.lane.b32.xlu1 %v1476_v60, %s2298_s12 }
0x1ba2   :  { %v1035_v61 = vpop.f32.mrf.mxu3 }
0x1ba3   :  { %v1036_v63 = vadd.f32 %v2573_v19, %v1035_v61 }
0x1baa   :  { %v1037_v62 = vpop.f32.mrf.mxu3 }
0x1bab   :  { %v1038_v1 = vadd.f32 %v2573_v19, %v1037_v62 }
0x1bad   :  { %v2148_v3 = vpack.c.bf16 %v1038_v1, %v1036_v63 }
0x1baf   :  { %2159 = vst [vmem:[#allocation2 + $0x10] sm:$0xff] %v2148_v3  }
0x1bb6   :  { %v1419_v8 = vld [vmem:[#allocation2 + $0x10] sm:$0xff]  }
0x1bb7   :  { %v1420_v0 = vunpack.c.l.bf16 %v1419_v8  ;;  %v1509_v46 = vunpack.c.h.bf16 %v1419_v8 }
0x1bff   :  { %v1416_v5 = vpop.permute.xlu1 %1415 }
0x1c00   :  { %1418 = vst.msk [vmem:[#allocation4] sm:$0xff] %vm178_vm0, %v1416_v5 }
0x1c07   :  { %v1421_v6 = vld [vmem:[#allocation4] sm:$0xff]  ;;  %v1479_v18 = vpop.permute.xlu1 %1478 }
0x1c08   :  { %v1422_v7 = vpack.c.bf16 %v1421_v6, %v1421_v6 }
0x1c0a   :  { %2022 = vmatmul.msk.bf16.vlgmr.msrb.gmra.mxu1 %vm178_vm0, %v1422_v7 }
0x1c87   :  { %v1451_v9 = vpop.f32.mrf.mxu1 }
0x1c88   :  { %v1455_v10 = vadd.f32 %v1451_v9, %v1420_v0 }
0x1c8a   :  { %2264 = vtanh.f32 %v1455_v10  ;;  %v2023_v11 = vmul.f32 -1.442695, %v1455_v10 }
0x1c8c   :  { %2266 = vpow2.f32 %v2023_v11  ;;  %v2109_v11 = vld [vmem:[%s2749_s5] sm:$0xff] }
0x1c8f   :  { %v1453_v17 = vpop.f32.mrf.mxu1 }
0x1c90   :  { %v2265_v22 = vpop.eup %2264 }
0x1c91   :  { %1483 = vrot.lane.b32.xlu0 %v2265_v22, %s2297_s1  ;;  %v2110_v22 = vld [vmem:[%s2749_s5 + $0x8] sm:$0xff] }
0x1c92   :  { %v2267_v12 = vpop.eup %2266  ;;  %1626 = vmatpush.bf16.msrb.mxu0 %v2110_v22 }
0x1c93   :  { %v1459_v13 = vadd.f32 1.0, %v2267_v12 }
0x1c95   :  { %2268 = vrcp.f32 %v1459_v13  ;;  %v1471_v24 = vand.u32 2147483648, %v1459_v13  ;;  %vm1465_vm7 = vweird.f32 %v1459_v13  ;;  %v1469_v25 = vand.u32 2147483647, %v1459_v13 }
0x1c96   :  { %1627 = vmatpush.bf16.msrb.mxu0 %v2109_v11 }
0x1c97   :  { %v1472_v27 = vor.u32 1.1754944e-38, %v1471_v24  ;;  %vm1470_vm9 = vcmp.eq.f32.partialorder %v1469_v25, 8.507059e+37 }
0x1c9b   :  { %v2269_v15 = vpop.eup %2268 }
0x1c9c   :  { %v1461_v16 = vmul.f32 %v2269_v15, %v1459_v13  ;;  %vm1466_vm6 = vweird.f32 %v2269_v15 }
0x1c9d   :  { %vm1467_vm8 = vmor %vm1465_vm7, %vm1466_vm6 }
0x1c9e   :  { %v1462_v20 = vsub.f32 1.0, %v1461_v16 }
0x1ca0   :  { %v1463_v21 = vmul.f32 %v2269_v15, %v1462_v20 }
0x1ca2   :  { %v1464_v23 = vadd.f32 %v2269_v15, %v1463_v21 }
0x1ca4   :  { %v1468_v26 = vsel %vm1467_vm8, %v2269_v15, %v1464_v23 }
0x1ca5   :  { %v1473_v29 = vsel %vm1470_vm9, %v1472_v27, %v1468_v26 }
0x1ca6   :  { %v1481_v31 = vmul.f32 %v1479_v18, %v1473_v29 }
0x1d03   :  { %v1484_v28 = vpop.permute.xlu0 %1483 }
0x1d04   :  { %v1486_v30 = vmul.f32 %v1484_v28, %v1473_v29 }
0x1d06   :  { %1488 = vrot.lane.b32.xlu2 %v1486_v30, %s2298_s12 }
0x1d60   :  { %v1489_v32 = vpop.permute.xlu2 %1488 }
0x1d61   :  { %v1491_v33 = vadd.f32 %v1489_v32, %v1481_v31 }
0x1d63   :  { %2270 = vtanh.f32 %v1491_v33  ;;  %1499 = vrot.lane.b32.xlu2 %v1491_v33, %s2299_s3 }
0x1d69   :  { %v2271_v34 = vpop.eup %2270 }
0x1d6a   :  { %1494 = vrot.lane.b32.xlu0 %v2271_v34, %s2297_s1 }
0x1dbd   :  { %v1500_v35 = vpop.permute.xlu2 %1499 }
0x1dbe   :  { %1502 = vst.msk [vmem:[#allocation5] sm:$0xff] %vm178_vm0, %v1500_v35 }
0x1dc5   :  { %v1565_v38 = vld [vmem:[#allocation5] sm:$0xff] }
0x1ddc   :  { %v1495_v39 = vpop.permute.xlu0 %1494 }
0x1ddd   :  { %v1497_v40 = vmul.f32 %v1495_v39, %v1473_v29 }
0x1ddf   :  { %1504 = vrot.lane.b32.xlu1 %v1497_v40, %s2298_s12 }
0x1de7   :  { %1567 = vrot.lane.b32.xlu1 %v1565_v38, %s2298_s12 }
0x1def   :  { %854 = vrot.lane.b32.xlu1 %v852_v41, %s2298_s12 }
0x1e51   :  { %v1505_v42 = vpop.permute.xlu1 %1504 }
0x1e52   :  { %1507 = vst.msk [vmem:[#allocation4] sm:$0xff] %vm178_vm0, %v1505_v42 }
0x1e59   :  { %v1568_v43 = vpop.permute.xlu1 %1567  ;;  %v1510_v44 = vld [vmem:[#allocation4] sm:$0xff] }
0x1e5a   :  { %v1511_v45 = vpack.c.bf16 %v1510_v44, %v1510_v44 }
0x1e5c   :  { %2032 = vmatmul.msk.bf16.vlgmr.msrb.gmra.mxu2 %vm178_vm0, %v1511_v45 }
0x1e61   :  { %v855_v48 = vpop.permute.xlu1 %854 }
0x1e62   :  { %858 = vst.msk [vmem:[#allocation3 + $0x18] sm:$0xf] %vm275_vm14, %v855_v48 }
0x1edf   :  { %v1540_v36 = vpop.f32.mrf.mxu2 }
0x1ee0   :  { %v1544_v47 = vadd.f32 %v1540_v36, %v1509_v46 }
0x1ee2   :  { %2272 = vtanh.f32 %v1544_v47  ;;  %v2033_v51 = vmul.f32 -1.442695, %v1544_v47 }
0x1ee4   :  { %2274 = vpow2.f32 %v2033_v51 }
0x1ee7   :  { %v1542_v49 = vpop.f32.mrf.mxu2 }
0x1ee8   :  { %v2273_v50 = vpop.eup %2272  ;;  %v2112_v49 = vld [vmem:[%s2749_s5 + $0x8] sm:$0xff] }
0x1ee9   :  { %1572 = vrot.lane.b32.xlu0 %v2273_v50, %s2297_s1  ;;  %1715 = vmatpush.bf16.msra.mxu1 %v2112_v49 }
0x1eea   :  { %v2275_v52 = vpop.eup %2274 }
0x1eeb   :  { %v1548_v53 = vadd.f32 1.0, %v2275_v52 }
0x1eed   :  { %2276 = vrcp.f32 %v1548_v53  ;;  %v1560_v59 = vand.u32 2147483648, %v1548_v53  ;;  %vm1554_vm11 = vweird.f32 %v1548_v53  ;;  %v1558_v60 = vand.u32 2147483647, %v1548_v53 }
0x1eef   :  { %v1561_v62 = vor.u32 1.1754944e-38, %v1560_v59  ;;  %vm1559_vm13 = vcmp.eq.f32.partialorder %v1558_v60, 8.507059e+37 }
0x1ef3   :  { %v2277_v54 = vpop.eup %2276 }
0x1ef4   :  { %v1550_v55 = vmul.f32 %v2277_v54, %v1548_v53  ;;  %vm1555_vm10 = vweird.f32 %v2277_v54 }
0x1ef5   :  { %vm1556_vm12 = vmor %vm1554_vm11, %vm1555_vm10 }
0x1ef6   :  { %v1551_v57 = vsub.f32 1.0, %v1550_v55 }
0x1ef8   :  { %v1552_v56 = vmul.f32 %v2277_v54, %v1551_v57 }
0x1efa   :  { %v1553_v58 = vadd.f32 %v2277_v54, %v1552_v56 }
0x1efc   :  { %v1557_v61 = vsel %vm1556_vm12, %v2277_v54, %v1553_v58  ;;  %v2111_v54 = vld [vmem:[%s2749_s5] sm:$0xff] }
0x1efd   :  { %v1562_v1 = vsel %vm1559_vm13, %v1561_v62, %v1557_v61  ;;  %1716 = vmatpush.bf16.msra.mxu1 %v2111_v54 }
0x1efe   :  { %v1570_v5 = vmul.f32 %v1568_v43, %v1562_v1 }
0x1f5b   :  { %v1573_v63 = vpop.permute.xlu0 %1572 }
0x1f5c   :  { %v1575_v3 = vmul.f32 %v1573_v63, %v1562_v1 }
0x1f5e   :  { %1577 = vrot.lane.b32.xlu2 %v1575_v3, %s2298_s12 }
0x1f66   :  { %951 = vrot.lane.b32.xlu2 %v949_v4, %s2298_s12 }
0x1fb8   :  { %v1578_v6 = vpop.permute.xlu2 %1577 }
0x1fb9   :  { %v1580_v7 = vadd.f32 %v1578_v6, %v1570_v5 }
0x1fbb   :  { %2278 = vtanh.f32 %v1580_v7  ;;  %1588 = vrot.lane.b32.xlu1 %v1580_v7, %s2299_s3 }
0x1fc0   :  { %v952_v8 = vpop.permute.xlu2 %951 }
0x1fc1   :  { %v2279_v0 = vpop.eup %2278  ;;  %955 = vst.msk [vmem:[#allocation3 + $0x1c] sm:$0xf] %vm275_vm14, %v952_v8 }
0x1fc2   :  { %1583 = vrot.lane.b32.xlu0 %v2279_v0, %s2297_s1 }
0x1fc8   :  { %v2094_v9 = vld [vmem:[#allocation3 + $0x18] sm:$0xff] }
0x1fc9   :  { %1973 = vmatmul.msk.bf16.gmra.mxu3 %vm178_vm0, %v2094_v9 }
0x202d   :  { %v1589_v10 = vpop.permute.xlu1 %1588 }
0x202e   :  { %1591 = vst.msk [vmem:[#allocation5] sm:$0xff] %vm178_vm0, %v1589_v10 }
0x2034   :  { %v1584_v14 = vpop.permute.xlu0 %1583 }
0x2035   :  { %v1586_v17 = vmul.f32 %v1584_v14, %v1562_v1  ;;  %v1654_v12 = vld [vmem:[#allocation5] sm:$0xff] }
0x2037   :  { %1593 = vrot.lane.b32.xlu0 %v1586_v17, %s2298_s12 }
0x203f   :  { %1656 = vrot.lane.b32.xlu0 %v1654_v12, %s2298_s12 }
0x204c   :  { %v1040_v13 = vpop.f32.mrf.mxu3 }
0x204d   :  { %v1041_v16 = vadd.f32 %v2573_v19, %v1040_v13 }
0x2054   :  { %v1042_v15 = vpop.f32.mrf.mxu3 }
0x2055   :  { %v1043_v20 = vadd.f32 %v2573_v19, %v1042_v15 }
0x2057   :  { %v2153_v21 = vpack.c.bf16 %v1043_v20, %v1041_v16 }
0x2059   :  { %2160 = vst [vmem:[#allocation2 + $0x18] sm:$0xff] %v2153_v21   ;;  %v2114_v21 = vld [vmem:[%s2750_s7 + $0x8] sm:$0xff] }
0x205a   :  { %1806 = vmatpush.bf16.msra.mxu2 %v2114_v21 }
0x2060   :  { %v1597_v26 = vld [vmem:[#allocation2 + $0x18] sm:$0xff]  }
0x2061   :  { %v1598_v27 = vunpack.c.l.bf16 %v1597_v26  ;;  %v1687_v58 = vunpack.c.h.bf16 %v1597_v26  ;;  %v2113_v26 = vld [vmem:[%s2750_s7] sm:$0xff] }
0x2062   :  { %1807 = vmatpush.bf16.msra.mxu2 %v2113_v26 }
0x20a9   :  { %v1594_v23 = vpop.permute.xlu0 %1593 }
0x20aa   :  { %1596 = vst.msk [vmem:[#allocation4] sm:$0xff] %vm178_vm0, %v1594_v23 }
0x20b1   :  { %v1599_v24 = vld [vmem:[#allocation4] sm:$0xff]  ;;  %v1657_v45 = vpop.permute.xlu0 %1656 }
0x20b2   :  { %v1600_v25 = vpack.c.bf16 %v1599_v24, %v1599_v24 }
0x20b4   :  { %2042 = vmatmul.msk.bf16.vlgmr.msrb.gmra.mxu0 %vm178_vm0, %v1600_v25 }
0x2131   :  { %v1629_v28 = vpop.f32.mrf.mxu0 }
0x2132   :  { %v1633_v29 = vadd.f32 %v1629_v28, %v1598_v27 }
0x2134   :  { %2280 = vtanh.f32 %v1633_v29  ;;  %v2043_v31 = vmul.f32 -1.442695, %v1633_v29 }
0x2136   :  { %2282 = vpow2.f32 %v2043_v31 }
0x2139   :  { %v1631_v30 = vpop.f32.mrf.mxu0 }
0x213a   :  { %v2281_v18 = vpop.eup %2280  ;;  %v2167_v30 = vld [vmem:[%s2751_s8] ss:$0 sm:$0xff] }
0x213b   :  { %1661 = vrot.lane.b32.xlu2 %v2281_v18, %s2297_s1 }
0x213c   :  { %v2283_v19 = vpop.eup %2282 }
0x213d   :  { %v1637_v32 = vadd.f32 1.0, %v2283_v19 }
0x213f   :  { %2284 = vrcp.f32 %v1637_v32  ;;  %v1649_v40 = vand.u32 2147483648, %v1637_v32  ;;  %vm1643_vm15 = vweird.f32 %v1637_v32  ;;  %v1647_v38 = vand.u32 2147483647, %v1637_v32 }
0x2141   :  { %v1650_v2 = vor.u32 1.1754944e-38, %v1649_v40  ;;  %vm1648_vm2 = vcmp.eq.f32.partialorder %v1647_v38, 8.507059e+37 }
0x2145   :  { %v2285_v33 = vpop.eup %2284 }
0x2146   :  { %v1639_v34 = vmul.f32 %v2285_v33, %v1637_v32  ;;  %vm1644_vm14 = vweird.f32 %v2285_v33 }
0x2147   :  { %vm1645_vm1 = vmor %vm1643_vm15, %vm1644_vm14 }
0x2148   :  { %v1640_v35 = vsub.f32 1.0, %v1639_v34 }
0x214a   :  { %v1641_v37 = vmul.f32 %v2285_v33, %v1640_v35 }
0x214c   :  { %v1642_v39 = vadd.f32 %v2285_v33, %v1641_v37 }
0x214e   :  { %v1646_v41 = vsel %vm1645_vm1, %v2285_v33, %v1642_v39 }
0x214f   :  { %v1651_v43 = vsel %vm1648_vm2, %v1650_v2, %v1646_v41 }
0x2150   :  { %v1659_v48 = vmul.f32 %v1657_v45, %v1651_v43 }
0x2195   :  { %v1662_v42 = vpop.permute.xlu2 %1661 }
0x2196   :  { %v1664_v44 = vmul.f32 %v1662_v42, %v1651_v43 }
0x2198   :  { %1666 = vrot.lane.b32.xlu1 %v1664_v44, %s2298_s12 }
0x220a   :  { %v1667_v46 = vpop.permute.xlu1 %1666 }
0x220b   :  { %v1669_v36 = vadd.f32 %v1667_v46, %v1659_v48 }
0x220d   :  { %2286 = vtanh.f32 %v1669_v36  ;;  %1677 = vrot.lane.b32.xlu1 %v1669_v36, %s2299_s3 }
0x2213   :  { %v2287_v47 = vpop.eup %2286 }
0x2214   :  { %1672 = vrot.lane.b32.xlu2 %v2287_v47, %s2297_s1 }
0x226e   :  { %v1673_v50 = vpop.permute.xlu2 %1672 }
0x226f   :  { %v1675_v51 = vmul.f32 %v1673_v50, %v1651_v43 }
0x2271   :  { %1682 = vrot.lane.b32.xlu0 %v1675_v51, %s2298_s12 }
0x227f   :  { %v1678_v52 = vpop.permute.xlu1 %1677 }
0x2280   :  { %1680 = vst.msk [vmem:[#allocation5] sm:$0xff] %vm178_vm0, %v1678_v52 }
0x2287   :  { %v1743_v53 = vld [vmem:[#allocation5] sm:$0xff] }
0x2288   :  { %1745 = vrot.lane.b32.xlu0 %v1743_v53, %s2298_s12 }
0x22e3   :  { %v1683_v55 = vpop.permute.xlu0 %1682 }
0x22e4   :  { %1685 = vst.msk [vmem:[#allocation4] sm:$0xff] %vm178_vm0, %v1683_v55 }
0x22eb   :  { %v1688_v57 = vld [vmem:[#allocation4] sm:$0xff] }
0x22ec   :  { %v1689_v56 = vpack.c.bf16 %v1688_v57, %v1688_v57 }
0x22ee   :  { %2052 = vmatmul.msk.bf16.vlgmr.msra.gmra.mxu1 %vm178_vm0, %v1689_v56 }
0x22fa   :  { %v1746_v12 = vpop.permute.xlu0 %1745 }
0x236b   :  { %v1718_v59 = vpop.f32.mrf.mxu1 }
0x236c   :  { %v1722_v60 = vadd.f32 %v1718_v59, %v1687_v58 }
0x236e   :  { %2288 = vtanh.f32 %v1722_v60  ;;  %v2053_v63 = vmul.f32 -1.442695, %v1722_v60 }
0x2370   :  { %2290 = vpow2.f32 %v2053_v63 }
0x2373   :  { %v1720_v61 = vpop.f32.mrf.mxu1 }
0x2374   :  { %v2289_v62 = vpop.eup %2288 }
0x2375   :  { %1750 = vrot.lane.b32.xlu2 %v2289_v62, %s2297_s1 }
0x2376   :  { %v2291_v1 = vpop.eup %2290 }
0x2377   :  { %v1726_v3 = vadd.f32 1.0, %v2291_v1 }
0x2379   :  { %2292 = vrcp.f32 %v1726_v3  ;;  %v1738_v0 = vand.u32 2147483648, %v1726_v3  ;;  %vm1732_vm4 = vweird.f32 %v1726_v3  ;;  %v1736_v9 = vand.u32 2147483647, %v1726_v3 }
0x237b   :  { %v1739_v14 = vor.u32 1.1754944e-38, %v1738_v0  ;;  %vm1737_vm6 = vcmp.eq.f32.partialorder %v1736_v9, 8.507059e+37 }
0x237f   :  { %v2293_v4 = vpop.eup %2292 }
0x2380   :  { %v1728_v5 = vmul.f32 %v2293_v4, %v1726_v3  ;;  %vm1733_vm3 = vweird.f32 %v2293_v4 }
0x2381   :  { %vm1734_vm5 = vmor %vm1732_vm4, %vm1733_vm3 }
0x2382   :  { %v1729_v6 = vsub.f32 1.0, %v1728_v5 }
0x2384   :  { %v1730_v7 = vmul.f32 %v2293_v4, %v1729_v6 }
0x2386   :  { %v1731_v8 = vadd.f32 %v2293_v4, %v1730_v7 }
0x2388   :  { %v1735_v10 = vsel %vm1734_vm5, %v2293_v4, %v1731_v8 }
0x2389   :  { %v1740_v22 = vsel %vm1737_vm6, %v1739_v14, %v1735_v10 }
0x238a   :  { %v1748_v13 = vmul.f32 %v1746_v12, %v1740_v22 }
0x23cf   :  { %v1751_v17 = vpop.permute.xlu2 %1750 }
0x23d0   :  { %v1753_v11 = vmul.f32 %v1751_v17, %v1740_v22 }
0x23d2   :  { %1755 = vrot.lane.b32.xlu1 %v1753_v11, %s2298_s12 }
0x2444   :  { %v1756_v15 = vpop.permute.xlu1 %1755 }
0x2445   :  { %v1758_v16 = vadd.f32 %v1756_v15, %v1748_v13 }
0x2447   :  { %2294 = vtanh.f32 %v1758_v16  ;;  %1766 = vrot.lane.b32.xlu1 %v1758_v16, %s2299_s3 }
0x244d   :  { %v2295_v20 = vpop.eup %2294 }
0x244e   :  { %1761 = vrot.lane.b32.xlu2 %v2295_v20, %s2297_s1 }
0x24a8   :  { %v1762_v23 = vpop.permute.xlu2 %1761 }
0x24a9   :  { %v1764_v24 = vmul.f32 %v1762_v23, %v1740_v22 }
0x24ab   :  { %1771 = vrot.lane.b32.xlu0 %v1764_v24, %s2298_s12 }
0x24b9   :  { %v1767_v25 = vpop.permute.xlu1 %1766 }
0x24ba   :  { %1769 = vst.msk [vmem:[#allocation5] sm:$0xff] %vm178_vm0, %v1767_v25 }
0x251d   :  { %v1772_v27 = vpop.permute.xlu0 %1771 }
0x251e   :  { %1774 = vst.msk [vmem:[#allocation4] sm:$0xff] %vm178_vm0, %v1772_v27 }
0x2525   :  { %v1775_v28 = vld [vmem:[#allocation4] sm:$0xff] }
0x2526   :  { %v1776_v29 = vpack.c.bf16 %v1775_v28, %v1775_v28 }
0x2528   :  { %2062 = vmatmul.msk.bf16.vlgmr.msra.gmra.mxu2 %vm178_vm0, %v1776_v29 }
0x25ab   :  { %v1809_v18 = vpop.f32.mrf.mxu2 }
0x25ac   :  { %v1810_v31 = vadd.f32 %v2167_v30, %v1809_v18 }
0x25ae   :  { %1813 = vst [vmem:[%s2752_s9] sm:$0xff] %v1810_v31 }
0x25b3   :  { %v1811_v19 = vpop.f32.mrf.mxu2 }

</bundles_post_ra>
